<compile_context>
chip_gen: v6e
topology: v6e:2x2x1
jax: 0.10.0
libtpu: 0.0.40
codegen_flags: <defaults>
</compile_context>

<pallas_src>
import random

import numpy as np
import jax
import jax.numpy as jnp
from jax.experimental import pallas as pl
from jax.experimental.pallas import tpu as pltpu


def _round_up(x, m):
    return ((x + m - 1) // m) * m


# ----------------------------------------------------------------------------
# Pallas kernel 1: per-patch Mahalanobis distance (VPU quad form).
#   emb_t : (B, D, N_pad)   mean_t : (D, N_pad)   cov_t : (D, D, N_pad)
#   out   : (B, N_pad)      with cov_t[d, e, n] == cov_inv[n, d, e]
# Feature-major cov keeps per-d slices layout-aligned (leading-dim index),
# unlike a flattened (N, D*D) block whose 50-wide lane slices would need
# cross-lane shifts; the patch axis stays lane-dense for DMA and stores.
# ----------------------------------------------------------------------------
_LANE_CHUNK = 128  # in-kernel n-chunk: keeps delta/m accumulators vreg-resident


def _make_mahalanobis_kernel(B, D, tile_n):
    n_chunks = tile_n // _LANE_CHUNK

    def kernel(emb_ref, mean_ref, cov_ref, out_ref):
        for c in range(n_chunks):
            nsl = pl.ds(c * _LANE_CHUNK, _LANE_CHUNK)
            delta = emb_ref[:, :, nsl] - mean_ref[:, nsl][None, :, :]   # (B, D, L)
            # m[b, e, n] = sum_d cov_inv[n, d, e] * delta[b, n, d]
            m = jnp.zeros_like(delta)
            for d in range(D):                                          # unrolled fma loop
                cov_d = cov_ref[d, :, nsl]                              # (D, L) aligned view
                m = m + cov_d[None, :, :] * delta[:, d:d + 1, :]
            dist2 = jnp.sum(delta * m, axis=1)                          # (B, L)
            out_ref[:, nsl] = jnp.sqrt(jnp.maximum(dist2, 0.0))

    return kernel


def _plan_tile_n(N, D, cov_vmem_budget=12 << 20, max_tile=256):
    """Pick (tile_n, N_pad): tile_n multiple of 128, sized from a VMEM budget
    that is a function of D, preferring >= 4 pipelined grid steps and minimal
    padding + per-step overhead.  max_tile bounds the in-kernel unroll
    (tile_n/128 chunks x D fma iterations)."""
    pad8_d = _round_up(D, 8)
    per_lane = 2 * D * pad8_d * 4                  # double-buffered cov bytes / lane
    cap = max(128, (cov_vmem_budget // per_lane) // 128 * 128)
    cap = min(cap, max_tile)

    overhead_bytes = 500_000                       # ~0.35us per grid step @ ~1.4 TB/s
    cands = []
    t = 128
    while t <= cap:
        n_pad = _round_up(N, t)
        steps = n_pad // t
        score = n_pad * D * D * 4 + steps * overhead_bytes
        cands.append((score, t, n_pad, steps))
        t += 128
    for min_steps in (4, 2, 1):                    # prefer >=4 steps, then >=2
        ok = [c for c in cands if c[3] >= min_steps]
        if ok:
            score, tile_n, n_pad, _ = min(ok)
            return tile_n, n_pad
    return 128, _round_up(N, 128)


def _vmem_limit_bytes(B, D, tile_n):
    pad8_d = _round_up(D, 8)
    pad8_b = _round_up(B, 8)
    per_step = (D * pad8_d + B * pad8_d + pad8_d + pad8_b) * tile_n * 4
    est = 2 * per_step                             # double-buffered pipeline
    # explicit limit: above v5e's 16 MiB default, safely below v7x's 64 MiB.
    return int(min(48 << 20, max(32 << 20, 2 * est)))


def mahalanobis_pallas(emb_t, mean_t, cov_t, tile_n):
    B, D, Np = emb_t.shape
    assert Np % tile_n == 0 and tile_n % _LANE_CHUNK == 0
    kernel = _make_mahalanobis_kernel(B, D, tile_n)
    return pl.pallas_call(
        kernel,
        grid=(Np // tile_n,),
        in_specs=[
            pl.BlockSpec((B, D, tile_n), lambda i: (0, 0, i)),
            pl.BlockSpec((D, tile_n), lambda i: (0, i)),
            pl.BlockSpec((D, D, tile_n), lambda i: (0, 0, i)),
        ],
        out_specs=pl.BlockSpec((B, tile_n), lambda i: (0, i)),
        out_shape=jax.ShapeDtypeStruct((B, Np), jnp.float32),
        compiler_params=pltpu.CompilerParams(
            dimension_semantics=("parallel",),
            vmem_limit_bytes=_vmem_limit_bytes(B, D, tile_n),
        ),
    )(emb_t, mean_t, cov_t)                                             # (B, N_pad)


# ----------------------------------------------------------------------------
# Pallas kernel 2: fused bilinear upsample + Gaussian blur as two matmuls.
#   patch_scores: (B, Hp, Wp)   Mh: (H, Hp)   MwT_pad: (Wp, W_pad)
#   output: (B, H, W_pad)  (lane-dense stores; crop / reduce outside)
# Grid over (B, H/tile_h), both axes parallel (both v7x TCs busy at B=1).
# ----------------------------------------------------------------------------
def _upsample_blur_kernel(p_ref, mh_ref, mwt_ref, sm_ref):
    tmp = jnp.dot(mh_ref[...], p_ref[0], preferred_element_type=jnp.float32)    # (th, Wp)
    sm_ref[0] = jnp.dot(tmp, mwt_ref[...], preferred_element_type=jnp.float32)  # (th, Wpad)


def _pick_tile_h(H, B):
    cands = [t for t in range(8, H + 1, 8) if H % t == 0]
    if not cands:
        return H
    want = max(1, -(-4 // B))          # aim for >= 4 total grid steps
    ok = [t for t in cands if H // t >= want]
    return max(ok) if ok else min(cands)


def upsample_blur_pallas(patch_scores, Mh, MwT_pad):
    B, Hp, Wp = patch_scores.shape
    H = Mh.shape[0]
    Wpad = MwT_pad.shape[1]
    tile_h = _pick_tile_h(H, B)
    return pl.pallas_call(
        _upsample_blur_kernel,
        grid=(B, H // tile_h),
        in_specs=[
            pl.BlockSpec((1, Hp, Wp), lambda b, i: (b, 0, 0)),
            pl.BlockSpec((tile_h, Hp), lambda b, i: (i, 0)),
            pl.BlockSpec((Wp, Wpad), lambda b, i: (0, 0)),
        ],
        out_specs=pl.BlockSpec((1, tile_h, Wpad), lambda b, i: (b, i, 0)),
        out_shape=jax.ShapeDtypeStruct((B, H, Wpad), jnp.float32),
        compiler_params=pltpu.CompilerParams(
            dimension_semantics=("parallel", "parallel")),
    )(patch_scores, Mh, MwT_pad)                                        # (B, H, Wpad)


# ----------------------------------------------------------------------------
# Glue: operator matrices for bilinear interpolation (align_corners=False)
# and torchvision GaussianBlur(33, sigma=4) with reflect padding.
# ----------------------------------------------------------------------------
def _bilinear_matrix(out_size, in_size):
    scale = in_size / out_size
    A = np.zeros((out_size, in_size), np.float32)
    for i in range(out_size):
        src = (i + 0.5) * scale - 0.5
        if src < 0.0:
            src = 0.0
        i0 = min(int(np.floor(src)), in_size - 1)
        lam = src - i0
        i1 = min(i0 + 1, in_size - 1)
        A[i, i0] += 1.0 - lam
        A[i, i1] += lam
    return A


def _reflect(p, n):
    if p < 0:
        p = -p
    if p >= n:
        p = 2 * (n - 1) - p
    return p


def _gaussian_blur_matrix(n, ksize=33, sigma=4.0):
    half = (ksize - 1) * 0.5
    xs = np.linspace(-half, half, ksize)
    pdf = np.exp(-0.5 * (xs / sigma) ** 2)
    k = (pdf / pdf.sum()).astype(np.float32)
    M = np.zeros((n, n), np.float32)
    pad = ksize // 2
    for i in range(n):
        for t in range(ksize):
            M[i, _reflect(i - pad + t, n)] += k[t]
    return M


def _get_dims_indices_resnet18_layer0(feat_dim=50):
    # Replicates get_dims_indices([0], 50, {0:[64],...}) exactly (python random).
    random.seed(1024)
    total = 64
    feat_dim = min(feat_dim, total)
    return np.array(random.sample(range(0, total), feat_dim), dtype=np.int32)


def make_params(key, C, H, W, feat_dim=50):
    Hp, Wp = H // 4, W // 4
    N = Hp * Wp
    idx = _get_dims_indices_resnet18_layer0(feat_dim)
    D = int(idx.shape[0])
    tile_n, n_pad = _plan_tile_n(N, D)

    k0, k1, k2, k3 = jax.random.split(key, 4)
    # Stand-in backbone projection: (C*16) -> 64 channels, with the PaDiM
    # channel selection folded into the weights (no runtime gather).
    w0 = 0.05 * jax.random.normal(k0, (C * 16, 64), jnp.float32)
    b0 = 0.01 * jax.random.normal(k1, (64,), jnp.float32)
    idx_j = jnp.asarray(idx)
    w0_sel = w0[:, idx_j]
    b0_sel = b0[idx_j]

    # Deterministic "trained" statistics: mean (N, D), SPD inverse covariance.
    mean = 0.1 * jax.random.normal(k2, (N, D), jnp.float32)
    A = 0.1 * jax.random.normal(k3, (N, D, D), jnp.float32)
    cov_inv = jnp.eye(D, dtype=jnp.float32)[None] + jnp.einsum("nij,nkj->nik", A, A)

    # Kernel-1 layouts: feature-major, lane-dense in N, zero-padded to n_pad
    # (pad patches give delta = 0 -> distance 0, cropped afterwards).
    mean_np = np.zeros((D, n_pad), np.float32)
    mean_np[:, :N] = np.asarray(mean).T
    cov_np = np.zeros((D, D, n_pad), np.float32)
    cov_np[:, :, :N] = np.transpose(np.asarray(cov_inv), (1, 2, 0))

    # Kernel-2 operators: fused blur @ bilinear, transposed, lane-padded to 128.
    Mh = _gaussian_blur_matrix(H) @ _bilinear_matrix(H, Hp)              # (H, Hp)
    Mw = _gaussian_blur_matrix(W) @ _bilinear_matrix(W, Wp)              # (W, Wp)
    Wpad = _round_up(W, 128)
    MwT_pad = np.zeros((Wp, Wpad), np.float32)
    MwT_pad[:, :W] = Mw.T.astype(np.float32)

    return dict(w0_sel=w0_sel, b0_sel=b0_sel,
                mean_t=jnp.asarray(mean_np), cov_t=jnp.asarray(cov_np),
                Mh=jnp.asarray(Mh.astype(np.float32)), MwT=jnp.asarray(MwT_pad),
                tile_n=tile_n, n_pad=n_pad)


def padim_forward(x, params):
    """x: (B, C, H, W) float32 -> (image_scores (B,), score_map (B, H, W))."""
    B, C, H, W = x.shape
    Hp, Wp = H // 4, W // 4
    N = Hp * Wp
    n_pad = params["n_pad"]

    # --- embeddings extractor stand-in (see TODO(synk) at top) ---
    patches = x.reshape(B, C, Hp, 4, Wp, 4).transpose(0, 2, 4, 1, 3, 5)
    patches = patches.reshape(B, Hp, Wp, C * 16)
    feats = jax.nn.relu(patches @ params["w0_sel"] + params["b0_sel"])   # (B,Hp,Wp,D)
    D = feats.shape[-1]

    # Feature-major, lane-dense in N, zero-padded to n_pad.
    emb_t = feats.reshape(B, N, D).transpose(0, 2, 1)                    # (B, D, N)
    if n_pad > N:
        emb_t = jnp.pad(emb_t, ((0, 0), (0, 0), (0, n_pad - N)))

    # --- Mahalanobis patch scores (Pallas, VPU quad form) ---
    patch_scores = mahalanobis_pallas(emb_t, params["mean_t"], params["cov_t"],
                                      params["tile_n"])                  # (B, n_pad)
    patch_scores = patch_scores[:, :N].reshape(B, Hp, Wp)

    # --- bilinear upsample + Gaussian blur (Pallas, parallel over B, H-tiles) ---
    sm_pad = upsample_blur_pallas(patch_scores, params["Mh"], params["MwT"])  # (B,H,Wpad)

    # Image-level score: max over the padded map (scores >= 0, pad columns are
    # exactly 0), so the reduction is not serialized behind the crop copy.
    image_scores = jnp.max(sm_pad.reshape(B, -1), axis=-1)
    score_map = sm_pad[:, :, :W]
    return image_scores, score_map


if __name__ == "__main__":
    B, C, H, W = 2, 3, 32, 32
    key = jax.random.PRNGKey(0)
    kx, kp = jax.random.split(key)
    x = jax.random.normal(kx, (B, C, H, W), jnp.float32)
    params = make_params(kp, C, H, W)

    image_scores, score_map = padim_forward(x, params)
    jax.block_until_ready((image_scores, score_map))

    assert image_scores.shape == (B,)
    assert score_map.shape == (B, H, W)
    assert bool(jnp.all(jnp.isfinite(image_scores)))
    assert bool(jnp.all(jnp.isfinite(score_map)))
    assert bool(jnp.all(score_map >= 0.0))
    print("KERNEL_OK")
</pallas_src>

<mosaic_0001>
module attributes {stable_mosaic.version = 11 : i64} {
  func.func @kernel(%arg0: i32, %arg1: memref<2x50x128xf32, #tpu.memory_space<vmem>>, %arg2: memref<50x128xf32, #tpu.memory_space<vmem>>, %arg3: memref<50x50x128xf32, #tpu.memory_space<vmem>>, %arg4: memref<2x128xf32, #tpu.memory_space<vmem>>) attributes {dimension_semantics = [#tpu.dimension_semantics<parallel>], iteration_bounds = array<i64: 1>, scalar_prefetch = 0 : i64, scratch_operands = 0 : i64, tpu.core_type = #tpu.core_type<tc>, window_params = [{transform_indices = @transform_0, window_bounds = array<i64: 2, 50, 128>}, {transform_indices = @transform_1, window_bounds = array<i64: 50, 128>}, {transform_indices = @transform_2, window_bounds = array<i64: 50, 50, 128>}, {transform_indices = @transform_3, window_bounds = array<i64: 2, 128>}]} {
    %c0 = arith.constant 0 : index
    %c0_0 = arith.constant 0 : index
    %c0_1 = arith.constant 0 : index
    %0 = vector.load %arg1[%c0, %c0_0, %c0_1] : memref<2x50x128xf32, #tpu.memory_space<vmem>>, vector<2x50x128xf32>
    %c0_2 = arith.constant 0 : index
    %c0_3 = arith.constant 0 : index
    %1 = vector.load %arg2[%c0_2, %c0_3] : memref<50x128xf32, #tpu.memory_space<vmem>>, vector<50x128xf32>
    %2 = vector.shape_cast %1 : vector<50x128xf32> to vector<1x50x128xf32>
    %3 = vector.broadcast %2 : vector<1x50x128xf32> to vector<2x50x128xf32>
    %4 = arith.subf %0, %3 : vector<2x50x128xf32>
    %cst = arith.constant 0.000000e+00 : f32
    %5 = vector.broadcast %cst : f32 to vector<2x50x128xf32>
    %c0_4 = arith.constant 0 : index
    %c0_5 = arith.constant 0 : index
    %c0_6 = arith.constant 0 : index
    %6 = vector.load %arg3[%c0_4, %c0_5, %c0_6] : memref<50x50x128xf32, #tpu.memory_space<vmem>>, vector<1x50x128xf32>
    %7 = vector.shape_cast %6 : vector<1x50x128xf32> to vector<50x128xf32>
    %8 = vector.shape_cast %7 : vector<50x128xf32> to vector<1x50x128xf32>
    %9 = vector.extract_strided_slice %4 {offsets = [0, 0, 0], sizes = [2, 1, 128], strides = [1, 1, 1]} : vector<2x50x128xf32> to vector<2x1x128xf32>
    %10 = vector.broadcast %8 : vector<1x50x128xf32> to vector<2x50x128xf32>
    %11 = vector.broadcast %9 : vector<2x1x128xf32> to vector<2x50x128xf32>
    %12 = arith.mulf %10, %11 : vector<2x50x128xf32>
    %13 = arith.addf %5, %12 : vector<2x50x128xf32>
    %c1 = arith.constant 1 : index
    %c0_7 = arith.constant 0 : index
    %c0_8 = arith.constant 0 : index
    %14 = vector.load %arg3[%c1, %c0_7, %c0_8] : memref<50x50x128xf32, #tpu.memory_space<vmem>>, vector<1x50x128xf32>
    %15 = vector.shape_cast %14 : vector<1x50x128xf32> to vector<50x128xf32>
    %16 = vector.shape_cast %15 : vector<50x128xf32> to vector<1x50x128xf32>
    %17 = vector.extract_strided_slice %4 {offsets = [0, 1, 0], sizes = [2, 1, 128], strides = [1, 1, 1]} : vector<2x50x128xf32> to vector<2x1x128xf32>
    %18 = vector.broadcast %16 : vector<1x50x128xf32> to vector<2x50x128xf32>
    %19 = vector.broadcast %17 : vector<2x1x128xf32> to vector<2x50x128xf32>
    %20 = arith.mulf %18, %19 : vector<2x50x128xf32>
    %21 = arith.addf %13, %20 : vector<2x50x128xf32>
    %c2 = arith.constant 2 : index
    %c0_9 = arith.constant 0 : index
    %c0_10 = arith.constant 0 : index
    %22 = vector.load %arg3[%c2, %c0_9, %c0_10] : memref<50x50x128xf32, #tpu.memory_space<vmem>>, vector<1x50x128xf32>
    %23 = vector.shape_cast %22 : vector<1x50x128xf32> to vector<50x128xf32>
    %24 = vector.shape_cast %23 : vector<50x128xf32> to vector<1x50x128xf32>
    %25 = vector.extract_strided_slice %4 {offsets = [0, 2, 0], sizes = [2, 1, 128], strides = [1, 1, 1]} : vector<2x50x128xf32> to vector<2x1x128xf32>
    %26 = vector.broadcast %24 : vector<1x50x128xf32> to vector<2x50x128xf32>
    %27 = vector.broadcast %25 : vector<2x1x128xf32> to vector<2x50x128xf32>
    %28 = arith.mulf %26, %27 : vector<2x50x128xf32>
    %29 = arith.addf %21, %28 : vector<2x50x128xf32>
    %c3 = arith.constant 3 : index
    %c0_11 = arith.constant 0 : index
    %c0_12 = arith.constant 0 : index
    %30 = vector.load %arg3[%c3, %c0_11, %c0_12] : memref<50x50x128xf32, #tpu.memory_space<vmem>>, vector<1x50x128xf32>
    %31 = vector.shape_cast %30 : vector<1x50x128xf32> to vector<50x128xf32>
    %32 = vector.shape_cast %31 : vector<50x128xf32> to vector<1x50x128xf32>
    %33 = vector.extract_strided_slice %4 {offsets = [0, 3, 0], sizes = [2, 1, 128], strides = [1, 1, 1]} : vector<2x50x128xf32> to vector<2x1x128xf32>
    %34 = vector.broadcast %32 : vector<1x50x128xf32> to vector<2x50x128xf32>
    %35 = vector.broadcast %33 : vector<2x1x128xf32> to vector<2x50x128xf32>
    %36 = arith.mulf %34, %35 : vector<2x50x128xf32>
    %37 = arith.addf %29, %36 : vector<2x50x128xf32>
    %c4 = arith.constant 4 : index
    %c0_13 = arith.constant 0 : index
    %c0_14 = arith.constant 0 : index
    %38 = vector.load %arg3[%c4, %c0_13, %c0_14] : memref<50x50x128xf32, #tpu.memory_space<vmem>>, vector<1x50x128xf32>
    %39 = vector.shape_cast %38 : vector<1x50x128xf32> to vector<50x128xf32>
    %40 = vector.shape_cast %39 : vector<50x128xf32> to vector<1x50x128xf32>
    %41 = vector.extract_strided_slice %4 {offsets = [0, 4, 0], sizes = [2, 1, 128], strides = [1, 1, 1]} : vector<2x50x128xf32> to vector<2x1x128xf32>
    %42 = vector.broadcast %40 : vector<1x50x128xf32> to vector<2x50x128xf32>
    %43 = vector.broadcast %41 : vector<2x1x128xf32> to vector<2x50x128xf32>
    %44 = arith.mulf %42, %43 : vector<2x50x128xf32>
    %45 = arith.addf %37, %44 : vector<2x50x128xf32>
    %c5 = arith.constant 5 : index
    %c0_15 = arith.constant 0 : index
    %c0_16 = arith.constant 0 : index
    %46 = vector.load %arg3[%c5, %c0_15, %c0_16] : memref<50x50x128xf32, #tpu.memory_space<vmem>>, vector<1x50x128xf32>
    %47 = vector.shape_cast %46 : vector<1x50x128xf32> to vector<50x128xf32>
    %48 = vector.shape_cast %47 : vector<50x128xf32> to vector<1x50x128xf32>
    %49 = vector.extract_strided_slice %4 {offsets = [0, 5, 0], sizes = [2, 1, 128], strides = [1, 1, 1]} : vector<2x50x128xf32> to vector<2x1x128xf32>
    %50 = vector.broadcast %48 : vector<1x50x128xf32> to vector<2x50x128xf32>
    %51 = vector.broadcast %49 : vector<2x1x128xf32> to vector<2x50x128xf32>
    %52 = arith.mulf %50, %51 : vector<2x50x128xf32>
    %53 = arith.addf %45, %52 : vector<2x50x128xf32>
    %c6 = arith.constant 6 : index
    %c0_17 = arith.constant 0 : index
    %c0_18 = arith.constant 0 : index
    %54 = vector.load %arg3[%c6, %c0_17, %c0_18] : memref<50x50x128xf32, #tpu.memory_space<vmem>>, vector<1x50x128xf32>
    %55 = vector.shape_cast %54 : vector<1x50x128xf32> to vector<50x128xf32>
    %56 = vector.shape_cast %55 : vector<50x128xf32> to vector<1x50x128xf32>
    %57 = vector.extract_strided_slice %4 {offsets = [0, 6, 0], sizes = [2, 1, 128], strides = [1, 1, 1]} : vector<2x50x128xf32> to vector<2x1x128xf32>
    %58 = vector.broadcast %56 : vector<1x50x128xf32> to vector<2x50x128xf32>
    %59 = vector.broadcast %57 : vector<2x1x128xf32> to vector<2x50x128xf32>
    %60 = arith.mulf %58, %59 : vector<2x50x128xf32>
    %61 = arith.addf %53, %60 : vector<2x50x128xf32>
    %c7 = arith.constant 7 : index
    %c0_19 = arith.constant 0 : index
    %c0_20 = arith.constant 0 : index
    %62 = vector.load %arg3[%c7, %c0_19, %c0_20] : memref<50x50x128xf32, #tpu.memory_space<vmem>>, vector<1x50x128xf32>
    %63 = vector.shape_cast %62 : vector<1x50x128xf32> to vector<50x128xf32>
    %64 = vector.shape_cast %63 : vector<50x128xf32> to vector<1x50x128xf32>
    %65 = vector.extract_strided_slice %4 {offsets = [0, 7, 0], sizes = [2, 1, 128], strides = [1, 1, 1]} : vector<2x50x128xf32> to vector<2x1x128xf32>
    %66 = vector.broadcast %64 : vector<1x50x128xf32> to vector<2x50x128xf32>
    %67 = vector.broadcast %65 : vector<2x1x128xf32> to vector<2x50x128xf32>
    %68 = arith.mulf %66, %67 : vector<2x50x128xf32>
    %69 = arith.addf %61, %68 : vector<2x50x128xf32>
    %c8 = arith.constant 8 : index
    %c0_21 = arith.constant 0 : index
    %c0_22 = arith.constant 0 : index
    %70 = vector.load %arg3[%c8, %c0_21, %c0_22] : memref<50x50x128xf32, #tpu.memory_space<vmem>>, vector<1x50x128xf32>
    %71 = vector.shape_cast %70 : vector<1x50x128xf32> to vector<50x128xf32>
    %72 = vector.shape_cast %71 : vector<50x128xf32> to vector<1x50x128xf32>
    %73 = vector.extract_strided_slice %4 {offsets = [0, 8, 0], sizes = [2, 1, 128], strides = [1, 1, 1]} : vector<2x50x128xf32> to vector<2x1x128xf32>
    %74 = vector.broadcast %72 : vector<1x50x128xf32> to vector<2x50x128xf32>
    %75 = vector.broadcast %73 : vector<2x1x128xf32> to vector<2x50x128xf32>
    %76 = arith.mulf %74, %75 : vector<2x50x128xf32>
    %77 = arith.addf %69, %76 : vector<2x50x128xf32>
    %c9 = arith.constant 9 : index
    %c0_23 = arith.constant 0 : index
    %c0_24 = arith.constant 0 : index
    %78 = vector.load %arg3[%c9, %c0_23, %c0_24] : memref<50x50x128xf32, #tpu.memory_space<vmem>>, vector<1x50x128xf32>
    %79 = vector.shape_cast %78 : vector<1x50x128xf32> to vector<50x128xf32>
    %80 = vector.shape_cast %79 : vector<50x128xf32> to vector<1x50x128xf32>
    %81 = vector.extract_strided_slice %4 {offsets = [0, 9, 0], sizes = [2, 1, 128], strides = [1, 1, 1]} : vector<2x50x128xf32> to vector<2x1x128xf32>
    %82 = vector.broadcast %80 : vector<1x50x128xf32> to vector<2x50x128xf32>
    %83 = vector.broadcast %81 : vector<2x1x128xf32> to vector<2x50x128xf32>
    %84 = arith.mulf %82, %83 : vector<2x50x128xf32>
    %85 = arith.addf %77, %84 : vector<2x50x128xf32>
    %c10 = arith.constant 10 : index
    %c0_25 = arith.constant 0 : index
    %c0_26 = arith.constant 0 : index
    %86 = vector.load %arg3[%c10, %c0_25, %c0_26] : memref<50x50x128xf32, #tpu.memory_space<vmem>>, vector<1x50x128xf32>
    %87 = vector.shape_cast %86 : vector<1x50x128xf32> to vector<50x128xf32>
    %88 = vector.shape_cast %87 : vector<50x128xf32> to vector<1x50x128xf32>
    %89 = vector.extract_strided_slice %4 {offsets = [0, 10, 0], sizes = [2, 1, 128], strides = [1, 1, 1]} : vector<2x50x128xf32> to vector<2x1x128xf32>
    %90 = vector.broadcast %88 : vector<1x50x128xf32> to vector<2x50x128xf32>
    %91 = vector.broadcast %89 : vector<2x1x128xf32> to vector<2x50x128xf32>
    %92 = arith.mulf %90, %91 : vector<2x50x128xf32>
    %93 = arith.addf %85, %92 : vector<2x50x128xf32>
    %c11 = arith.constant 11 : index
    %c0_27 = arith.constant 0 : index
    %c0_28 = arith.constant 0 : index
    %94 = vector.load %arg3[%c11, %c0_27, %c0_28] : memref<50x50x128xf32, #tpu.memory_space<vmem>>, vector<1x50x128xf32>
    %95 = vector.shape_cast %94 : vector<1x50x128xf32> to vector<50x128xf32>
    %96 = vector.shape_cast %95 : vector<50x128xf32> to vector<1x50x128xf32>
    %97 = vector.extract_strided_slice %4 {offsets = [0, 11, 0], sizes = [2, 1, 128], strides = [1, 1, 1]} : vector<2x50x128xf32> to vector<2x1x128xf32>
    %98 = vector.broadcast %96 : vector<1x50x128xf32> to vector<2x50x128xf32>
    %99 = vector.broadcast %97 : vector<2x1x128xf32> to vector<2x50x128xf32>
    %100 = arith.mulf %98, %99 : vector<2x50x128xf32>
    %101 = arith.addf %93, %100 : vector<2x50x128xf32>
    %c12 = arith.constant 12 : index
    %c0_29 = arith.constant 0 : index
    %c0_30 = arith.constant 0 : index
    %102 = vector.load %arg3[%c12, %c0_29, %c0_30] : memref<50x50x128xf32, #tpu.memory_space<vmem>>, vector<1x50x128xf32>
    %103 = vector.shape_cast %102 : vector<1x50x128xf32> to vector<50x128xf32>
    %104 = vector.shape_cast %103 : vector<50x128xf32> to vector<1x50x128xf32>
    %105 = vector.extract_strided_slice %4 {offsets = [0, 12, 0], sizes = [2, 1, 128], strides = [1, 1, 1]} : vector<2x50x128xf32> to vector<2x1x128xf32>
    %106 = vector.broadcast %104 : vector<1x50x128xf32> to vector<2x50x128xf32>
    %107 = vector.broadcast %105 : vector<2x1x128xf32> to vector<2x50x128xf32>
    %108 = arith.mulf %106, %107 : vector<2x50x128xf32>
    %109 = arith.addf %101, %108 : vector<2x50x128xf32>
    %c13 = arith.constant 13 : index
    %c0_31 = arith.constant 0 : index
    %c0_32 = arith.constant 0 : index
    %110 = vector.load %arg3[%c13, %c0_31, %c0_32] : memref<50x50x128xf32, #tpu.memory_space<vmem>>, vector<1x50x128xf32>
    %111 = vector.shape_cast %110 : vector<1x50x128xf32> to vector<50x128xf32>
    %112 = vector.shape_cast %111 : vector<50x128xf32> to vector<1x50x128xf32>
    %113 = vector.extract_strided_slice %4 {offsets = [0, 13, 0], sizes = [2, 1, 128], strides = [1, 1, 1]} : vector<2x50x128xf32> to vector<2x1x128xf32>
    %114 = vector.broadcast %112 : vector<1x50x128xf32> to vector<2x50x128xf32>
    %115 = vector.broadcast %113 : vector<2x1x128xf32> to vector<2x50x128xf32>
    %116 = arith.mulf %114, %115 : vector<2x50x128xf32>
    %117 = arith.addf %109, %116 : vector<2x50x128xf32>
    %c14 = arith.constant 14 : index
    %c0_33 = arith.constant 0 : index
    %c0_34 = arith.constant 0 : index
    %118 = vector.load %arg3[%c14, %c0_33, %c0_34] : memref<50x50x128xf32, #tpu.memory_space<vmem>>, vector<1x50x128xf32>
    %119 = vector.shape_cast %118 : vector<1x50x128xf32> to vector<50x128xf32>
    %120 = vector.shape_cast %119 : vector<50x128xf32> to vector<1x50x128xf32>
    %121 = vector.extract_strided_slice %4 {offsets = [0, 14, 0], sizes = [2, 1, 128], strides = [1, 1, 1]} : vector<2x50x128xf32> to vector<2x1x128xf32>
    %122 = vector.broadcast %120 : vector<1x50x128xf32> to vector<2x50x128xf32>
    %123 = vector.broadcast %121 : vector<2x1x128xf32> to vector<2x50x128xf32>
    %124 = arith.mulf %122, %123 : vector<2x50x128xf32>
    %125 = arith.addf %117, %124 : vector<2x50x128xf32>
    %c15 = arith.constant 15 : index
    %c0_35 = arith.constant 0 : index
    %c0_36 = arith.constant 0 : index
    %126 = vector.load %arg3[%c15, %c0_35, %c0_36] : memref<50x50x128xf32, #tpu.memory_space<vmem>>, vector<1x50x128xf32>
    %127 = vector.shape_cast %126 : vector<1x50x128xf32> to vector<50x128xf32>
    %128 = vector.shape_cast %127 : vector<50x128xf32> to vector<1x50x128xf32>
    %129 = vector.extract_strided_slice %4 {offsets = [0, 15, 0], sizes = [2, 1, 128], strides = [1, 1, 1]} : vector<2x50x128xf32> to vector<2x1x128xf32>
    %130 = vector.broadcast %128 : vector<1x50x128xf32> to vector<2x50x128xf32>
    %131 = vector.broadcast %129 : vector<2x1x128xf32> to vector<2x50x128xf32>
    %132 = arith.mulf %130, %131 : vector<2x50x128xf32>
    %133 = arith.addf %125, %132 : vector<2x50x128xf32>
    %c16 = arith.constant 16 : index
    %c0_37 = arith.constant 0 : index
    %c0_38 = arith.constant 0 : index
    %134 = vector.load %arg3[%c16, %c0_37, %c0_38] : memref<50x50x128xf32, #tpu.memory_space<vmem>>, vector<1x50x128xf32>
    %135 = vector.shape_cast %134 : vector<1x50x128xf32> to vector<50x128xf32>
    %136 = vector.shape_cast %135 : vector<50x128xf32> to vector<1x50x128xf32>
    %137 = vector.extract_strided_slice %4 {offsets = [0, 16, 0], sizes = [2, 1, 128], strides = [1, 1, 1]} : vector<2x50x128xf32> to vector<2x1x128xf32>
    %138 = vector.broadcast %136 : vector<1x50x128xf32> to vector<2x50x128xf32>
    %139 = vector.broadcast %137 : vector<2x1x128xf32> to vector<2x50x128xf32>
    %140 = arith.mulf %138, %139 : vector<2x50x128xf32>
    %141 = arith.addf %133, %140 : vector<2x50x128xf32>
    %c17 = arith.constant 17 : index
    %c0_39 = arith.constant 0 : index
    %c0_40 = arith.constant 0 : index
    %142 = vector.load %arg3[%c17, %c0_39, %c0_40] : memref<50x50x128xf32, #tpu.memory_space<vmem>>, vector<1x50x128xf32>
    %143 = vector.shape_cast %142 : vector<1x50x128xf32> to vector<50x128xf32>
    %144 = vector.shape_cast %143 : vector<50x128xf32> to vector<1x50x128xf32>
    %145 = vector.extract_strided_slice %4 {offsets = [0, 17, 0], sizes = [2, 1, 128], strides = [1, 1, 1]} : vector<2x50x128xf32> to vector<2x1x128xf32>
    %146 = vector.broadcast %144 : vector<1x50x128xf32> to vector<2x50x128xf32>
    %147 = vector.broadcast %145 : vector<2x1x128xf32> to vector<2x50x128xf32>
    %148 = arith.mulf %146, %147 : vector<2x50x128xf32>
    %149 = arith.addf %141, %148 : vector<2x50x128xf32>
    %c18 = arith.constant 18 : index
    %c0_41 = arith.constant 0 : index
    %c0_42 = arith.constant 0 : index
    %150 = vector.load %arg3[%c18, %c0_41, %c0_42] : memref<50x50x128xf32, #tpu.memory_space<vmem>>, vector<1x50x128xf32>
    %151 = vector.shape_cast %150 : vector<1x50x128xf32> to vector<50x128xf32>
    %152 = vector.shape_cast %151 : vector<50x128xf32> to vector<1x50x128xf32>
    %153 = vector.extract_strided_slice %4 {offsets = [0, 18, 0], sizes = [2, 1, 128], strides = [1, 1, 1]} : vector<2x50x128xf32> to vector<2x1x128xf32>
    %154 = vector.broadcast %152 : vector<1x50x128xf32> to vector<2x50x128xf32>
    %155 = vector.broadcast %153 : vector<2x1x128xf32> to vector<2x50x128xf32>
    %156 = arith.mulf %154, %155 : vector<2x50x128xf32>
    %157 = arith.addf %149, %156 : vector<2x50x128xf32>
    %c19 = arith.constant 19 : index
    %c0_43 = arith.constant 0 : index
    %c0_44 = arith.constant 0 : index
    %158 = vector.load %arg3[%c19, %c0_43, %c0_44] : memref<50x50x128xf32, #tpu.memory_space<vmem>>, vector<1x50x128xf32>
    %159 = vector.shape_cast %158 : vector<1x50x128xf32> to vector<50x128xf32>
    %160 = vector.shape_cast %159 : vector<50x128xf32> to vector<1x50x128xf32>
    %161 = vector.extract_strided_slice %4 {offsets = [0, 19, 0], sizes = [2, 1, 128], strides = [1, 1, 1]} : vector<2x50x128xf32> to vector<2x1x128xf32>
    %162 = vector.broadcast %160 : vector<1x50x128xf32> to vector<2x50x128xf32>
    %163 = vector.broadcast %161 : vector<2x1x128xf32> to vector<2x50x128xf32>
    %164 = arith.mulf %162, %163 : vector<2x50x128xf32>
    %165 = arith.addf %157, %164 : vector<2x50x128xf32>
    %c20 = arith.constant 20 : index
    %c0_45 = arith.constant 0 : index
    %c0_46 = arith.constant 0 : index
    %166 = vector.load %arg3[%c20, %c0_45, %c0_46] : memref<50x50x128xf32, #tpu.memory_space<vmem>>, vector<1x50x128xf32>
    %167 = vector.shape_cast %166 : vector<1x50x128xf32> to vector<50x128xf32>
    %168 = vector.shape_cast %167 : vector<50x128xf32> to vector<1x50x128xf32>
    %169 = vector.extract_strided_slice %4 {offsets = [0, 20, 0], sizes = [2, 1, 128], strides = [1, 1, 1]} : vector<2x50x128xf32> to vector<2x1x128xf32>
    %170 = vector.broadcast %168 : vector<1x50x128xf32> to vector<2x50x128xf32>
    %171 = vector.broadcast %169 : vector<2x1x128xf32> to vector<2x50x128xf32>
    %172 = arith.mulf %170, %171 : vector<2x50x128xf32>
    %173 = arith.addf %165, %172 : vector<2x50x128xf32>
    %c21 = arith.constant 21 : index
    %c0_47 = arith.constant 0 : index
    %c0_48 = arith.constant 0 : index
    %174 = vector.load %arg3[%c21, %c0_47, %c0_48] : memref<50x50x128xf32, #tpu.memory_space<vmem>>, vector<1x50x128xf32>
    %175 = vector.shape_cast %174 : vector<1x50x128xf32> to vector<50x128xf32>
    %176 = vector.shape_cast %175 : vector<50x128xf32> to vector<1x50x128xf32>
    %177 = vector.extract_strided_slice %4 {offsets = [0, 21, 0], sizes = [2, 1, 128], strides = [1, 1, 1]} : vector<2x50x128xf32> to vector<2x1x128xf32>
    %178 = vector.broadcast %176 : vector<1x50x128xf32> to vector<2x50x128xf32>
    %179 = vector.broadcast %177 : vector<2x1x128xf32> to vector<2x50x128xf32>
    %180 = arith.mulf %178, %179 : vector<2x50x128xf32>
    %181 = arith.addf %173, %180 : vector<2x50x128xf32>
    %c22 = arith.constant 22 : index
    %c0_49 = arith.constant 0 : index
    %c0_50 = arith.constant 0 : index
    %182 = vector.load %arg3[%c22, %c0_49, %c0_50] : memref<50x50x128xf32, #tpu.memory_space<vmem>>, vector<1x50x128xf32>
    %183 = vector.shape_cast %182 : vector<1x50x128xf32> to vector<50x128xf32>
    %184 = vector.shape_cast %183 : vector<50x128xf32> to vector<1x50x128xf32>
    %185 = vector.extract_strided_slice %4 {offsets = [0, 22, 0], sizes = [2, 1, 128], strides = [1, 1, 1]} : vector<2x50x128xf32> to vector<2x1x128xf32>
    %186 = vector.broadcast %184 : vector<1x50x128xf32> to vector<2x50x128xf32>
    %187 = vector.broadcast %185 : vector<2x1x128xf32> to vector<2x50x128xf32>
    %188 = arith.mulf %186, %187 : vector<2x50x128xf32>
    %189 = arith.addf %181, %188 : vector<2x50x128xf32>
    %c23 = arith.constant 23 : index
    %c0_51 = arith.constant 0 : index
    %c0_52 = arith.constant 0 : index
    %190 = vector.load %arg3[%c23, %c0_51, %c0_52] : memref<50x50x128xf32, #tpu.memory_space<vmem>>, vector<1x50x128xf32>
    %191 = vector.shape_cast %190 : vector<1x50x128xf32> to vector<50x128xf32>
    %192 = vector.shape_cast %191 : vector<50x128xf32> to vector<1x50x128xf32>
    %193 = vector.extract_strided_slice %4 {offsets = [0, 23, 0], sizes = [2, 1, 128], strides = [1, 1, 1]} : vector<2x50x128xf32> to vector<2x1x128xf32>
    %194 = vector.broadcast %192 : vector<1x50x128xf32> to vector<2x50x128xf32>
    %195 = vector.broadcast %193 : vector<2x1x128xf32> to vector<2x50x128xf32>
    %196 = arith.mulf %194, %195 : vector<2x50x128xf32>
    %197 = arith.addf %189, %196 : vector<2x50x128xf32>
    %c24 = arith.constant 24 : index
    %c0_53 = arith.constant 0 : index
    %c0_54 = arith.constant 0 : index
    %198 = vector.load %arg3[%c24, %c0_53, %c0_54] : memref<50x50x128xf32, #tpu.memory_space<vmem>>, vector<1x50x128xf32>
    %199 = vector.shape_cast %198 : vector<1x50x128xf32> to vector<50x128xf32>
    %200 = vector.shape_cast %199 : vector<50x128xf32> to vector<1x50x128xf32>
    %201 = vector.extract_strided_slice %4 {offsets = [0, 24, 0], sizes = [2, 1, 128], strides = [1, 1, 1]} : vector<2x50x128xf32> to vector<2x1x128xf32>
    %202 = vector.broadcast %200 : vector<1x50x128xf32> to vector<2x50x128xf32>
    %203 = vector.broadcast %201 : vector<2x1x128xf32> to vector<2x50x128xf32>
    %204 = arith.mulf %202, %203 : vector<2x50x128xf32>
    %205 = arith.addf %197, %204 : vector<2x50x128xf32>
    %c25 = arith.constant 25 : index
    %c0_55 = arith.constant 0 : index
    %c0_56 = arith.constant 0 : index
    %206 = vector.load %arg3[%c25, %c0_55, %c0_56] : memref<50x50x128xf32, #tpu.memory_space<vmem>>, vector<1x50x128xf32>
    %207 = vector.shape_cast %206 : vector<1x50x128xf32> to vector<50x128xf32>
    %208 = vector.shape_cast %207 : vector<50x128xf32> to vector<1x50x128xf32>
    %209 = vector.extract_strided_slice %4 {offsets = [0, 25, 0], sizes = [2, 1, 128], strides = [1, 1, 1]} : vector<2x50x128xf32> to vector<2x1x128xf32>
    %210 = vector.broadcast %208 : vector<1x50x128xf32> to vector<2x50x128xf32>
    %211 = vector.broadcast %209 : vector<2x1x128xf32> to vector<2x50x128xf32>
    %212 = arith.mulf %210, %211 : vector<2x50x128xf32>
    %213 = arith.addf %205, %212 : vector<2x50x128xf32>
    %c26 = arith.constant 26 : index
    %c0_57 = arith.constant 0 : index
    %c0_58 = arith.constant 0 : index
    %214 = vector.load %arg3[%c26, %c0_57, %c0_58] : memref<50x50x128xf32, #tpu.memory_space<vmem>>, vector<1x50x128xf32>
    %215 = vector.shape_cast %214 : vector<1x50x128xf32> to vector<50x128xf32>
    %216 = vector.shape_cast %215 : vector<50x128xf32> to vector<1x50x128xf32>
    %217 = vector.extract_strided_slice %4 {offsets = [0, 26, 0], sizes = [2, 1, 128], strides = [1, 1, 1]} : vector<2x50x128xf32> to vector<2x1x128xf32>
    %218 = vector.broadcast %216 : vector<1x50x128xf32> to vector<2x50x128xf32>
    %219 = vector.broadcast %217 : vector<2x1x128xf32> to vector<2x50x128xf32>
    %220 = arith.mulf %218, %219 : vector<2x50x128xf32>
    %221 = arith.addf %213, %220 : vector<2x50x128xf32>
    %c27 = arith.constant 27 : index
    %c0_59 = arith.constant 0 : index
    %c0_60 = arith.constant 0 : index
    %222 = vector.load %arg3[%c27, %c0_59, %c0_60] : memref<50x50x128xf32, #tpu.memory_space<vmem>>, vector<1x50x128xf32>
    %223 = vector.shape_cast %222 : vector<1x50x128xf32> to vector<50x128xf32>
    %224 = vector.shape_cast %223 : vector<50x128xf32> to vector<1x50x128xf32>
    %225 = vector.extract_strided_slice %4 {offsets = [0, 27, 0], sizes = [2, 1, 128], strides = [1, 1, 1]} : vector<2x50x128xf32> to vector<2x1x128xf32>
    %226 = vector.broadcast %224 : vector<1x50x128xf32> to vector<2x50x128xf32>
    %227 = vector.broadcast %225 : vector<2x1x128xf32> to vector<2x50x128xf32>
    %228 = arith.mulf %226, %227 : vector<2x50x128xf32>
    %229 = arith.addf %221, %228 : vector<2x50x128xf32>
    %c28 = arith.constant 28 : index
    %c0_61 = arith.constant 0 : index
    %c0_62 = arith.constant 0 : index
    %230 = vector.load %arg3[%c28, %c0_61, %c0_62] : memref<50x50x128xf32, #tpu.memory_space<vmem>>, vector<1x50x128xf32>
    %231 = vector.shape_cast %230 : vector<1x50x128xf32> to vector<50x128xf32>
    %232 = vector.shape_cast %231 : vector<50x128xf32> to vector<1x50x128xf32>
    %233 = vector.extract_strided_slice %4 {offsets = [0, 28, 0], sizes = [2, 1, 128], strides = [1, 1, 1]} : vector<2x50x128xf32> to vector<2x1x128xf32>
    %234 = vector.broadcast %232 : vector<1x50x128xf32> to vector<2x50x128xf32>
    %235 = vector.broadcast %233 : vector<2x1x128xf32> to vector<2x50x128xf32>
    %236 = arith.mulf %234, %235 : vector<2x50x128xf32>
    %237 = arith.addf %229, %236 : vector<2x50x128xf32>
    %c29 = arith.constant 29 : index
    %c0_63 = arith.constant 0 : index
    %c0_64 = arith.constant 0 : index
    %238 = vector.load %arg3[%c29, %c0_63, %c0_64] : memref<50x50x128xf32, #tpu.memory_space<vmem>>, vector<1x50x128xf32>
    %239 = vector.shape_cast %238 : vector<1x50x128xf32> to vector<50x128xf32>
    %240 = vector.shape_cast %239 : vector<50x128xf32> to vector<1x50x128xf32>
    %241 = vector.extract_strided_slice %4 {offsets = [0, 29, 0], sizes = [2, 1, 128], strides = [1, 1, 1]} : vector<2x50x128xf32> to vector<2x1x128xf32>
    %242 = vector.broadcast %240 : vector<1x50x128xf32> to vector<2x50x128xf32>
    %243 = vector.broadcast %241 : vector<2x1x128xf32> to vector<2x50x128xf32>
    %244 = arith.mulf %242, %243 : vector<2x50x128xf32>
    %245 = arith.addf %237, %244 : vector<2x50x128xf32>
    %c30 = arith.constant 30 : index
    %c0_65 = arith.constant 0 : index
    %c0_66 = arith.constant 0 : index
    %246 = vector.load %arg3[%c30, %c0_65, %c0_66] : memref<50x50x128xf32, #tpu.memory_space<vmem>>, vector<1x50x128xf32>
    %247 = vector.shape_cast %246 : vector<1x50x128xf32> to vector<50x128xf32>
    %248 = vector.shape_cast %247 : vector<50x128xf32> to vector<1x50x128xf32>
    %249 = vector.extract_strided_slice %4 {offsets = [0, 30, 0], sizes = [2, 1, 128], strides = [1, 1, 1]} : vector<2x50x128xf32> to vector<2x1x128xf32>
    %250 = vector.broadcast %248 : vector<1x50x128xf32> to vector<2x50x128xf32>
    %251 = vector.broadcast %249 : vector<2x1x128xf32> to vector<2x50x128xf32>
    %252 = arith.mulf %250, %251 : vector<2x50x128xf32>
    %253 = arith.addf %245, %252 : vector<2x50x128xf32>
    %c31 = arith.constant 31 : index
    %c0_67 = arith.constant 0 : index
    %c0_68 = arith.constant 0 : index
    %254 = vector.load %arg3[%c31, %c0_67, %c0_68] : memref<50x50x128xf32, #tpu.memory_space<vmem>>, vector<1x50x128xf32>
    %255 = vector.shape_cast %254 : vector<1x50x128xf32> to vector<50x128xf32>
    %256 = vector.shape_cast %255 : vector<50x128xf32> to vector<1x50x128xf32>
    %257 = vector.extract_strided_slice %4 {offsets = [0, 31, 0], sizes = [2, 1, 128], strides = [1, 1, 1]} : vector<2x50x128xf32> to vector<2x1x128xf32>
    %258 = vector.broadcast %256 : vector<1x50x128xf32> to vector<2x50x128xf32>
    %259 = vector.broadcast %257 : vector<2x1x128xf32> to vector<2x50x128xf32>
    %260 = arith.mulf %258, %259 : vector<2x50x128xf32>
    %261 = arith.addf %253, %260 : vector<2x50x128xf32>
    %c32 = arith.constant 32 : index
    %c0_69 = arith.constant 0 : index
    %c0_70 = arith.constant 0 : index
    %262 = vector.load %arg3[%c32, %c0_69, %c0_70] : memref<50x50x128xf32, #tpu.memory_space<vmem>>, vector<1x50x128xf32>
    %263 = vector.shape_cast %262 : vector<1x50x128xf32> to vector<50x128xf32>
    %264 = vector.shape_cast %263 : vector<50x128xf32> to vector<1x50x128xf32>
    %265 = vector.extract_strided_slice %4 {offsets = [0, 32, 0], sizes = [2, 1, 128], strides = [1, 1, 1]} : vector<2x50x128xf32> to vector<2x1x128xf32>
    %266 = vector.broadcast %264 : vector<1x50x128xf32> to vector<2x50x128xf32>
    %267 = vector.broadcast %265 : vector<2x1x128xf32> to vector<2x50x128xf32>
    %268 = arith.mulf %266, %267 : vector<2x50x128xf32>
    %269 = arith.addf %261, %268 : vector<2x50x128xf32>
    %c33 = arith.constant 33 : index
    %c0_71 = arith.constant 0 : index
    %c0_72 = arith.constant 0 : index
    %270 = vector.load %arg3[%c33, %c0_71, %c0_72] : memref<50x50x128xf32, #tpu.memory_space<vmem>>, vector<1x50x128xf32>
    %271 = vector.shape_cast %270 : vector<1x50x128xf32> to vector<50x128xf32>
    %272 = vector.shape_cast %271 : vector<50x128xf32> to vector<1x50x128xf32>
    %273 = vector.extract_strided_slice %4 {offsets = [0, 33, 0], sizes = [2, 1, 128], strides = [1, 1, 1]} : vector<2x50x128xf32> to vector<2x1x128xf32>
    %274 = vector.broadcast %272 : vector<1x50x128xf32> to vector<2x50x128xf32>
    %275 = vector.broadcast %273 : vector<2x1x128xf32> to vector<2x50x128xf32>
    %276 = arith.mulf %274, %275 : vector<2x50x128xf32>
    %277 = arith.addf %269, %276 : vector<2x50x128xf32>
    %c34 = arith.constant 34 : index
    %c0_73 = arith.constant 0 : index
    %c0_74 = arith.constant 0 : index
    %278 = vector.load %arg3[%c34, %c0_73, %c0_74] : memref<50x50x128xf32, #tpu.memory_space<vmem>>, vector<1x50x128xf32>
    %279 = vector.shape_cast %278 : vector<1x50x128xf32> to vector<50x128xf32>
    %280 = vector.shape_cast %279 : vector<50x128xf32> to vector<1x50x128xf32>
    %281 = vector.extract_strided_slice %4 {offsets = [0, 34, 0], sizes = [2, 1, 128], strides = [1, 1, 1]} : vector<2x50x128xf32> to vector<2x1x128xf32>
    %282 = vector.broadcast %280 : vector<1x50x128xf32> to vector<2x50x128xf32>
    %283 = vector.broadcast %281 : vector<2x1x128xf32> to vector<2x50x128xf32>
    %284 = arith.mulf %282, %283 : vector<2x50x128xf32>
    %285 = arith.addf %277, %284 : vector<2x50x128xf32>
    %c35 = arith.constant 35 : index
    %c0_75 = arith.constant 0 : index
    %c0_76 = arith.constant 0 : index
    %286 = vector.load %arg3[%c35, %c0_75, %c0_76] : memref<50x50x128xf32, #tpu.memory_space<vmem>>, vector<1x50x128xf32>
    %287 = vector.shape_cast %286 : vector<1x50x128xf32> to vector<50x128xf32>
    %288 = vector.shape_cast %287 : vector<50x128xf32> to vector<1x50x128xf32>
    %289 = vector.extract_strided_slice %4 {offsets = [0, 35, 0], sizes = [2, 1, 128], strides = [1, 1, 1]} : vector<2x50x128xf32> to vector<2x1x128xf32>
    %290 = vector.broadcast %288 : vector<1x50x128xf32> to vector<2x50x128xf32>
    %291 = vector.broadcast %289 : vector<2x1x128xf32> to vector<2x50x128xf32>
    %292 = arith.mulf %290, %291 : vector<2x50x128xf32>
    %293 = arith.addf %285, %292 : vector<2x50x128xf32>
    %c36 = arith.constant 36 : index
    %c0_77 = arith.constant 0 : index
    %c0_78 = arith.constant 0 : index
    %294 = vector.load %arg3[%c36, %c0_77, %c0_78] : memref<50x50x128xf32, #tpu.memory_space<vmem>>, vector<1x50x128xf32>
    %295 = vector.shape_cast %294 : vector<1x50x128xf32> to vector<50x128xf32>
    %296 = vector.shape_cast %295 : vector<50x128xf32> to vector<1x50x128xf32>
    %297 = vector.extract_strided_slice %4 {offsets = [0, 36, 0], sizes = [2, 1, 128], strides = [1, 1, 1]} : vector<2x50x128xf32> to vector<2x1x128xf32>
    %298 = vector.broadcast %296 : vector<1x50x128xf32> to vector<2x50x128xf32>
    %299 = vector.broadcast %297 : vector<2x1x128xf32> to vector<2x50x128xf32>
    %300 = arith.mulf %298, %299 : vector<2x50x128xf32>
    %301 = arith.addf %293, %300 : vector<2x50x128xf32>
    %c37 = arith.constant 37 : index
    %c0_79 = arith.constant 0 : index
    %c0_80 = arith.constant 0 : index
    %302 = vector.load %arg3[%c37, %c0_79, %c0_80] : memref<50x50x128xf32, #tpu.memory_space<vmem>>, vector<1x50x128xf32>
    %303 = vector.shape_cast %302 : vector<1x50x128xf32> to vector<50x128xf32>
    %304 = vector.shape_cast %303 : vector<50x128xf32> to vector<1x50x128xf32>
    %305 = vector.extract_strided_slice %4 {offsets = [0, 37, 0], sizes = [2, 1, 128], strides = [1, 1, 1]} : vector<2x50x128xf32> to vector<2x1x128xf32>
    %306 = vector.broadcast %304 : vector<1x50x128xf32> to vector<2x50x128xf32>
    %307 = vector.broadcast %305 : vector<2x1x128xf32> to vector<2x50x128xf32>
    %308 = arith.mulf %306, %307 : vector<2x50x128xf32>
    %309 = arith.addf %301, %308 : vector<2x50x128xf32>
    %c38 = arith.constant 38 : index
    %c0_81 = arith.constant 0 : index
    %c0_82 = arith.constant 0 : index
    %310 = vector.load %arg3[%c38, %c0_81, %c0_82] : memref<50x50x128xf32, #tpu.memory_space<vmem>>, vector<1x50x128xf32>
    %311 = vector.shape_cast %310 : vector<1x50x128xf32> to vector<50x128xf32>
    %312 = vector.shape_cast %311 : vector<50x128xf32> to vector<1x50x128xf32>
    %313 = vector.extract_strided_slice %4 {offsets = [0, 38, 0], sizes = [2, 1, 128], strides = [1, 1, 1]} : vector<2x50x128xf32> to vector<2x1x128xf32>
    %314 = vector.broadcast %312 : vector<1x50x128xf32> to vector<2x50x128xf32>
    %315 = vector.broadcast %313 : vector<2x1x128xf32> to vector<2x50x128xf32>
    %316 = arith.mulf %314, %315 : vector<2x50x128xf32>
    %317 = arith.addf %309, %316 : vector<2x50x128xf32>
    %c39 = arith.constant 39 : index
    %c0_83 = arith.constant 0 : index
    %c0_84 = arith.constant 0 : index
    %318 = vector.load %arg3[%c39, %c0_83, %c0_84] : memref<50x50x128xf32, #tpu.memory_space<vmem>>, vector<1x50x128xf32>
    %319 = vector.shape_cast %318 : vector<1x50x128xf32> to vector<50x128xf32>
    %320 = vector.shape_cast %319 : vector<50x128xf32> to vector<1x50x128xf32>
    %321 = vector.extract_strided_slice %4 {offsets = [0, 39, 0], sizes = [2, 1, 128], strides = [1, 1, 1]} : vector<2x50x128xf32> to vector<2x1x128xf32>
    %322 = vector.broadcast %320 : vector<1x50x128xf32> to vector<2x50x128xf32>
    %323 = vector.broadcast %321 : vector<2x1x128xf32> to vector<2x50x128xf32>
    %324 = arith.mulf %322, %323 : vector<2x50x128xf32>
    %325 = arith.addf %317, %324 : vector<2x50x128xf32>
    %c40 = arith.constant 40 : index
    %c0_85 = arith.constant 0 : index
    %c0_86 = arith.constant 0 : index
    %326 = vector.load %arg3[%c40, %c0_85, %c0_86] : memref<50x50x128xf32, #tpu.memory_space<vmem>>, vector<1x50x128xf32>
    %327 = vector.shape_cast %326 : vector<1x50x128xf32> to vector<50x128xf32>
    %328 = vector.shape_cast %327 : vector<50x128xf32> to vector<1x50x128xf32>
    %329 = vector.extract_strided_slice %4 {offsets = [0, 40, 0], sizes = [2, 1, 128], strides = [1, 1, 1]} : vector<2x50x128xf32> to vector<2x1x128xf32>
    %330 = vector.broadcast %328 : vector<1x50x128xf32> to vector<2x50x128xf32>
    %331 = vector.broadcast %329 : vector<2x1x128xf32> to vector<2x50x128xf32>
    %332 = arith.mulf %330, %331 : vector<2x50x128xf32>
    %333 = arith.addf %325, %332 : vector<2x50x128xf32>
    %c41 = arith.constant 41 : index
    %c0_87 = arith.constant 0 : index
    %c0_88 = arith.constant 0 : index
    %334 = vector.load %arg3[%c41, %c0_87, %c0_88] : memref<50x50x128xf32, #tpu.memory_space<vmem>>, vector<1x50x128xf32>
    %335 = vector.shape_cast %334 : vector<1x50x128xf32> to vector<50x128xf32>
    %336 = vector.shape_cast %335 : vector<50x128xf32> to vector<1x50x128xf32>
    %337 = vector.extract_strided_slice %4 {offsets = [0, 41, 0], sizes = [2, 1, 128], strides = [1, 1, 1]} : vector<2x50x128xf32> to vector<2x1x128xf32>
    %338 = vector.broadcast %336 : vector<1x50x128xf32> to vector<2x50x128xf32>
    %339 = vector.broadcast %337 : vector<2x1x128xf32> to vector<2x50x128xf32>
    %340 = arith.mulf %338, %339 : vector<2x50x128xf32>
    %341 = arith.addf %333, %340 : vector<2x50x128xf32>
    %c42 = arith.constant 42 : index
    %c0_89 = arith.constant 0 : index
    %c0_90 = arith.constant 0 : index
    %342 = vector.load %arg3[%c42, %c0_89, %c0_90] : memref<50x50x128xf32, #tpu.memory_space<vmem>>, vector<1x50x128xf32>
    %343 = vector.shape_cast %342 : vector<1x50x128xf32> to vector<50x128xf32>
    %344 = vector.shape_cast %343 : vector<50x128xf32> to vector<1x50x128xf32>
    %345 = vector.extract_strided_slice %4 {offsets = [0, 42, 0], sizes = [2, 1, 128], strides = [1, 1, 1]} : vector<2x50x128xf32> to vector<2x1x128xf32>
    %346 = vector.broadcast %344 : vector<1x50x128xf32> to vector<2x50x128xf32>
    %347 = vector.broadcast %345 : vector<2x1x128xf32> to vector<2x50x128xf32>
    %348 = arith.mulf %346, %347 : vector<2x50x128xf32>
    %349 = arith.addf %341, %348 : vector<2x50x128xf32>
    %c43 = arith.constant 43 : index
    %c0_91 = arith.constant 0 : index
    %c0_92 = arith.constant 0 : index
    %350 = vector.load %arg3[%c43, %c0_91, %c0_92] : memref<50x50x128xf32, #tpu.memory_space<vmem>>, vector<1x50x128xf32>
    %351 = vector.shape_cast %350 : vector<1x50x128xf32> to vector<50x128xf32>
    %352 = vector.shape_cast %351 : vector<50x128xf32> to vector<1x50x128xf32>
    %353 = vector.extract_strided_slice %4 {offsets = [0, 43, 0], sizes = [2, 1, 128], strides = [1, 1, 1]} : vector<2x50x128xf32> to vector<2x1x128xf32>
    %354 = vector.broadcast %352 : vector<1x50x128xf32> to vector<2x50x128xf32>
    %355 = vector.broadcast %353 : vector<2x1x128xf32> to vector<2x50x128xf32>
    %356 = arith.mulf %354, %355 : vector<2x50x128xf32>
    %357 = arith.addf %349, %356 : vector<2x50x128xf32>
    %c44 = arith.constant 44 : index
    %c0_93 = arith.constant 0 : index
    %c0_94 = arith.constant 0 : index
    %358 = vector.load %arg3[%c44, %c0_93, %c0_94] : memref<50x50x128xf32, #tpu.memory_space<vmem>>, vector<1x50x128xf32>
    %359 = vector.shape_cast %358 : vector<1x50x128xf32> to vector<50x128xf32>
    %360 = vector.shape_cast %359 : vector<50x128xf32> to vector<1x50x128xf32>
    %361 = vector.extract_strided_slice %4 {offsets = [0, 44, 0], sizes = [2, 1, 128], strides = [1, 1, 1]} : vector<2x50x128xf32> to vector<2x1x128xf32>
    %362 = vector.broadcast %360 : vector<1x50x128xf32> to vector<2x50x128xf32>
    %363 = vector.broadcast %361 : vector<2x1x128xf32> to vector<2x50x128xf32>
    %364 = arith.mulf %362, %363 : vector<2x50x128xf32>
    %365 = arith.addf %357, %364 : vector<2x50x128xf32>
    %c45 = arith.constant 45 : index
    %c0_95 = arith.constant 0 : index
    %c0_96 = arith.constant 0 : index
    %366 = vector.load %arg3[%c45, %c0_95, %c0_96] : memref<50x50x128xf32, #tpu.memory_space<vmem>>, vector<1x50x128xf32>
    %367 = vector.shape_cast %366 : vector<1x50x128xf32> to vector<50x128xf32>
    %368 = vector.shape_cast %367 : vector<50x128xf32> to vector<1x50x128xf32>
    %369 = vector.extract_strided_slice %4 {offsets = [0, 45, 0], sizes = [2, 1, 128], strides = [1, 1, 1]} : vector<2x50x128xf32> to vector<2x1x128xf32>
    %370 = vector.broadcast %368 : vector<1x50x128xf32> to vector<2x50x128xf32>
    %371 = vector.broadcast %369 : vector<2x1x128xf32> to vector<2x50x128xf32>
    %372 = arith.mulf %370, %371 : vector<2x50x128xf32>
    %373 = arith.addf %365, %372 : vector<2x50x128xf32>
    %c46 = arith.constant 46 : index
    %c0_97 = arith.constant 0 : index
    %c0_98 = arith.constant 0 : index
    %374 = vector.load %arg3[%c46, %c0_97, %c0_98] : memref<50x50x128xf32, #tpu.memory_space<vmem>>, vector<1x50x128xf32>
    %375 = vector.shape_cast %374 : vector<1x50x128xf32> to vector<50x128xf32>
    %376 = vector.shape_cast %375 : vector<50x128xf32> to vector<1x50x128xf32>
    %377 = vector.extract_strided_slice %4 {offsets = [0, 46, 0], sizes = [2, 1, 128], strides = [1, 1, 1]} : vector<2x50x128xf32> to vector<2x1x128xf32>
    %378 = vector.broadcast %376 : vector<1x50x128xf32> to vector<2x50x128xf32>
    %379 = vector.broadcast %377 : vector<2x1x128xf32> to vector<2x50x128xf32>
    %380 = arith.mulf %378, %379 : vector<2x50x128xf32>
    %381 = arith.addf %373, %380 : vector<2x50x128xf32>
    %c47 = arith.constant 47 : index
    %c0_99 = arith.constant 0 : index
    %c0_100 = arith.constant 0 : index
    %382 = vector.load %arg3[%c47, %c0_99, %c0_100] : memref<50x50x128xf32, #tpu.memory_space<vmem>>, vector<1x50x128xf32>
    %383 = vector.shape_cast %382 : vector<1x50x128xf32> to vector<50x128xf32>
    %384 = vector.shape_cast %383 : vector<50x128xf32> to vector<1x50x128xf32>
    %385 = vector.extract_strided_slice %4 {offsets = [0, 47, 0], sizes = [2, 1, 128], strides = [1, 1, 1]} : vector<2x50x128xf32> to vector<2x1x128xf32>
    %386 = vector.broadcast %384 : vector<1x50x128xf32> to vector<2x50x128xf32>
    %387 = vector.broadcast %385 : vector<2x1x128xf32> to vector<2x50x128xf32>
    %388 = arith.mulf %386, %387 : vector<2x50x128xf32>
    %389 = arith.addf %381, %388 : vector<2x50x128xf32>
    %c48 = arith.constant 48 : index
    %c0_101 = arith.constant 0 : index
    %c0_102 = arith.constant 0 : index
    %390 = vector.load %arg3[%c48, %c0_101, %c0_102] : memref<50x50x128xf32, #tpu.memory_space<vmem>>, vector<1x50x128xf32>
    %391 = vector.shape_cast %390 : vector<1x50x128xf32> to vector<50x128xf32>
    %392 = vector.shape_cast %391 : vector<50x128xf32> to vector<1x50x128xf32>
    %393 = vector.extract_strided_slice %4 {offsets = [0, 48, 0], sizes = [2, 1, 128], strides = [1, 1, 1]} : vector<2x50x128xf32> to vector<2x1x128xf32>
    %394 = vector.broadcast %392 : vector<1x50x128xf32> to vector<2x50x128xf32>
    %395 = vector.broadcast %393 : vector<2x1x128xf32> to vector<2x50x128xf32>
    %396 = arith.mulf %394, %395 : vector<2x50x128xf32>
    %397 = arith.addf %389, %396 : vector<2x50x128xf32>
    %c49 = arith.constant 49 : index
    %c0_103 = arith.constant 0 : index
    %c0_104 = arith.constant 0 : index
    %398 = vector.load %arg3[%c49, %c0_103, %c0_104] : memref<50x50x128xf32, #tpu.memory_space<vmem>>, vector<1x50x128xf32>
    %399 = vector.shape_cast %398 : vector<1x50x128xf32> to vector<50x128xf32>
    %400 = vector.shape_cast %399 : vector<50x128xf32> to vector<1x50x128xf32>
    %401 = vector.extract_strided_slice %4 {offsets = [0, 49, 0], sizes = [2, 1, 128], strides = [1, 1, 1]} : vector<2x50x128xf32> to vector<2x1x128xf32>
    %402 = vector.broadcast %400 : vector<1x50x128xf32> to vector<2x50x128xf32>
    %403 = vector.broadcast %401 : vector<2x1x128xf32> to vector<2x50x128xf32>
    %404 = arith.mulf %402, %403 : vector<2x50x128xf32>
    %405 = arith.addf %397, %404 : vector<2x50x128xf32>
    %406 = arith.mulf %4, %405 : vector<2x50x128xf32>
    %cst_105 = arith.constant dense<0.000000e+00> : vector<2x128xf32>
    %407 = vector.multi_reduction <add>, %406, %cst_105 [1] : vector<2x50x128xf32> to vector<2x128xf32>
    %cst_106 = arith.constant 0.000000e+00 : f32
    %408 = vector.broadcast %cst_106 : f32 to vector<2x128xf32>
    %409 = arith.maximumf %407, %408 : vector<2x128xf32>
    %410 = math.sqrt %409 : vector<2x128xf32>
    %c0_107 = arith.constant 0 : index
    %c0_108 = arith.constant 0 : index
    %411 = vector.load %arg4[%c0_107, %c0_108] : memref<2x128xf32, #tpu.memory_space<vmem>>, vector<2x128xf32>
    tpu.vector_store %arg4[%c0_107, %c0_108], %410 {strides = array<i32>} : memref<2x128xf32, #tpu.memory_space<vmem>>, vector<2x128xf32>,
    return
  }
  func.func @transform_0(%arg0: i32) -> (i32, i32, i32) {
    %c0_i32 = arith.constant 0 : i32
    %c0_i32_0 = arith.constant 0 : i32
    %c0_i32_1 = arith.constant 0 : i32
    return %c0_i32, %c0_i32_0, %arg0 : i32, i32, i32
  }
  func.func @transform_1(%arg0: i32) -> (i32, i32) {
    %c0_i32 = arith.constant 0 : i32
    %c0_i32_0 = arith.constant 0 : i32
    return %c0_i32, %arg0 : i32, i32
  }
  func.func @transform_2(%arg0: i32) -> (i32, i32, i32) {
    %c0_i32 = arith.constant 0 : i32
    %c0_i32_0 = arith.constant 0 : i32
    %c0_i32_1 = arith.constant 0 : i32
    return %c0_i32, %c0_i32_0, %arg0 : i32, i32, i32
  }
  func.func @transform_3(%arg0: i32) -> (i32, i32) {
    %c0_i32 = arith.constant 0 : i32
    %c0_i32_0 = arith.constant 0 : i32
    return %c0_i32, %arg0 : i32, i32
  }
}

</mosaic_0001>

<bundles_post_ra>
// kernel: tpu_custom_call.1
= control target key start
LH: loop header
LB: loop body
LE: loop exit
PB: predicated region body
PF: predicated region fallthrough
CT: control target
= control target key end

     0   :  { %8 = vsyncpa [#allocation3], 0  ;;  %s3188_s0 = inlined_call_operand.vmem [shape: f32[2,50,128], index: 0, kind: input, shape index: {}]   ;;  %s3189_s1 = inlined_call_operand.hbm [shape: f32[50,128], index: 1, kind: input, shape index: {}]   ;;  %s3190_s2 = inlined_call_operand.hbm [shape: f32[50,50,128], index: 2, kind: input, shape index: {}]   ;;  %s3191_s3 = inlined_call_operand.hbm [shape: f32[2,128], index: 3, kind: output, shape index: {}]  }
   0x1   :  { %9 = vsyncpa [#allocation6], 0 }
   0x2   :  { %10 = vsyncpa [#allocation4], 0  ;;  %s2431_s12 = smov [#allocation2]  }
   0x3   :  { %s18_s13 = sshll.u32 %s2431_s12, 4  ;;  %s19_s13 = int_to_ptr.vmem [resolvable:$true] %s18_s13 }
   0x4   :  { %s2373_s14 = scalar_lea.vmem %s19_s13, 896  ;;  %p2378_p1 = scmp.lt.s32.totalorder %s19_s13, %s19_s13 }
   0x5   :  { %p2374_p0 = scmp.ne.s32.totalorder %s19_s13, %s2373_s14  ;;  %p2379_p2 = scmp.lt.s32.totalorder %s2373_s14, %s2373_s14 }
   0x7   :  { %p2380_p3 = por %p2379_p2, %p2378_p1 }
   0x9   :  { %p2381_p4 = pnand %p2380_p3, %p2374_p0 }
   0xb   :  { %2384 = shalt.err (!%p2381_p4)
}
   0xc   :  { %s2432_s15 = smov 128   ;;  %s2433_s16 = smov 8  }
   0xd   :  { %24 = dma.hbm_to_vmem [thread:$0]  %s3189_s1, 896, %s19_s13, [#allocation3], %s2432_s15, %s2432_s15, %s2433_s16  }
   0xe   :  { %s2434_s19 = smov [#allocation5]  }
   0xf   :  { %s30_s20 = sshll.u32 %s2434_s19, 4  ;;  %s31_s20 = int_to_ptr.vmem [resolvable:$true] %s30_s20 }
  0x10   :  { %s2393_s21 = scalar_lea.vmem %s31_s20, 44800  ;;  %p2398_p6 = scmp.lt.s32.totalorder %s31_s20, %s31_s20 }
  0x11   :  { %p2394_p5 = scmp.ne.s32.totalorder %s31_s20, %s2393_s21  ;;  %p2399_p7 = scmp.lt.s32.totalorder %s2393_s21, %s2393_s21 }
  0x13   :  { %p2400_p8 = por %p2399_p7, %p2398_p6 }
  0x15   :  { %p2401_p9 = pnand %p2400_p8, %p2394_p5 }
  0x17   :  { %2404 = shalt.err (!%p2401_p9)
}
  0x18   :  { %36 = dma.hbm_to_vmem [thread:$0]  %s3190_s2, 44800, %s31_s20, [#allocation6], %s2432_s15, %s2432_s15, %s2433_s16  }
  0x19   :  { %2425 = dma.done.wait [#allocation3], 896  }
  0x1a   :  { %2426 = vsyncadd [#allocation3], 4294966400 }
  0x1b   :  { %2427 = dma.done.wait [#allocation6], 44800  }
  0x1c   :  { %2428 = vsyncadd [#allocation6], 4294922496  ;;  %v85_v0 = vlaneseq  ;;  %v43_v2 = vld [vmem:[%s3188_s0] sm:$0xff]  ;;  %v44_v3 = vld [vmem:[%s3188_s0 + $0x8] sm:$0xff]  ;;  %vm2296_vm0 = vcmask 1041408   ;;  %vm2336_vm5 = vcmask 1041409  }
  0x1d   :  { %v45_v4 = vld [vmem:[%s3188_s0 + $0x10] sm:$0xff]  ;;  %v46_v5 = vld [vmem:[%s3188_s0 + $0x18] sm:$0xff]  ;;  %v47_v6 = vld [vmem:[%s3188_s0 + $0x20] sm:$0xff] }
  0x1e   :  { %v86_v1 = vshrl.u32 %v85_v0, 7  ;;  %v50_v7 = vld [vmem:[%s3188_s0 + $0x38] sm:$0xff]  ;;  %v57_v8 = vld [vmem:[#allocation2] sm:$0xff]  ;;  %v48_v9 = vld [vmem:[%s3188_s0 + $0x28] sm:$0xff] }
  0x1f   :  { %v49_v10 = vld [vmem:[%s3188_s0 + $0x30] sm:$0x3]  ;;  %v51_v11 = vld [vmem:[%s3188_s0 + $0x40] sm:$0xff]  ;;  %v58_v12 = vld [vmem:[#allocation2 + $0x8] sm:$0xff]  ;;  %v2489_v14 = vsub.f32 %v43_v2, %v57_v8  ;;  %v2505_v25 = vsub.f32 %v50_v7, %v57_v8 }
  0x20   :  { %v59_v13 = vld [vmem:[#allocation2 + $0x10] sm:$0xff]  ;;  %v2491_v15 = vsub.s32 0, %v86_v1  ;;  %v52_v16 = vld [vmem:[%s3188_s0 + $0x48] sm:$0xff]  ;;  %v60_v17 = vld [vmem:[#allocation2 + $0x18] sm:$0xff]  ;;  %v2496_v19 = vsub.s32 1, %v86_v1  ;;  %v2498_v20 = vsub.s32 2, %v86_v1  ;;  %v2520_v31 = vsub.f32 %v44_v3, %v58_v12 }
  0x21   :  { %3220 = vst [vmem:[#allocation11_spill] sm:$0xff] %v2489_v14  ;;  %v61_v18 = vld [vmem:[#allocation2 + $0x20] sm:$0xff]  ;;  %v2500_v21 = vsub.s32 3, %v86_v1  ;;  %v53_v22 = vld [vmem:[%s3188_s0 + $0x50] sm:$0xff]  ;;  %v62_v23 = vld [vmem:[#allocation2 + $0x28] sm:$0xff]  ;;  %v2507_v26 = vsub.s32 4, %v86_v1  ;;  %v2522_v32 = vsub.f32 %v45_v4, %v59_v13  ;;  %v2528_v35 = vsub.f32 %v46_v5, %v60_v17 }
  0x22   :  { %3221 = vst [vmem:[#allocation12_spill] sm:$0xff] %v2498_v20  ;;  %v63_v24 = vld [vmem:[#allocation2 + $0x30] sm:$0x3]  ;;  %3223 = vst [vmem:[#allocation14_spill] sm:$0xff] %v2505_v25  ;;  %v2509_v27 = vsub.s32 5, %v86_v1  ;;  %v54_v28 = vld [vmem:[%s3188_s0 + $0x58] sm:$0xff]  ;;  %v2530_v36 = vsub.f32 %v47_v6, %v61_v18  ;;  %v2532_v37 = vsub.f32 %v51_v11, %v58_v12  ;;  %v88_v38 = vrot.slane %v2489_v14, %v2491_v15 }
  0x23   :  { %3222 = vst [vmem:[#allocation13_spill] sm:$0xff] %v2500_v21  ;;  %v55_v29 = vld [vmem:[%s3188_s0 + $0x60] sm:$0xff]  ;;  %v56_v30 = vld [vmem:[%s3188_s0 + $0x68] sm:$0x3]  ;;  %3224 = vst [vmem:[#allocation15_spill] sm:$0xff] %v2520_v31  ;;  %v2524_v33 = vsub.s32 6, %v86_v1  ;;  %v2536_v39 = vsub.f32 %v48_v9, %v62_v23  ;;  %v2538_v40 = vsub.f32 %v49_v10, %v63_v24  ;;  %v2540_v41 = vsub.f32 %v52_v16, %v59_v13 }
  0x24   :  { %3225 = vst [vmem:[#allocation16_spill] sm:$0xff] %v2522_v32  ;;  %v2526_v34 = vsub.s32 7, %v86_v1  ;;  %3227 = vst [vmem:[#allocation18_spill] sm:$0xff] %v2528_v35  ;;  %v2542_v42 = vsub.f32 %v53_v22, %v60_v17  ;;  %v78_v43 = vld [vmem:[#allocation5] sm:$0xff]  ;;  %v79_v44 = vld [vmem:[#allocation5 + $0x8] sm:$0xff]  ;;  %v2544_v46 = vsub.f32 %v54_v28, %v61_v18  ;;  %v2546_v47 = vsub.f32 %v55_v29, %v62_v23  ;;  %s2435_s0 = smov [#allocation7]  }
  0x25   :  { %3226 = vst [vmem:[#allocation17_spill] sm:$0xff] %v2524_v33  ;;  %3228 = vst [vmem:[#allocation19_spill] sm:$0xff] %v2530_v36  ;;  %v80_v45 = vld [vmem:[#allocation5 + $0x10] sm:$0xff]  ;;  %v2548_v48 = vsub.f32 %v56_v30, %v63_v24  ;;  %v81_v49 = vld [vmem:[#allocation5 + $0x18] sm:$0xff]  ;;  %v92_v52 = vrot.slane %v2505_v25, %v2491_v15  ;;  %v132_v54 = vrot.slane %v2489_v14, %v2496_v19  ;;  %s2346_s23 = sshll.u32 %s2435_s0, 4  ;;  %s2347_s23 = int_to_ptr.vmem [resolvable:$true] %s2346_s23 }
  0x26   :  { %3229 = vst [vmem:[#allocation20_spill] sm:$0xff] %v2532_v37  ;;  %3230 = vst [vmem:[#allocation21_spill] sm:$0xff] %v2536_v39  ;;  %v82_v50 = vld [vmem:[#allocation5 + $0x20] sm:$0xff]  ;;  %v83_v51 = vld [vmem:[#allocation5 + $0x28] sm:$0xff]  ;;  %v136_v55 = vrot.slane %v2505_v25, %v2496_v19  ;;  %v2558_v56 = vrot.slane %v2489_v14, %v2498_v20  ;;  %v2562_v57 = vrot.slane %v2505_v25, %v2498_v20  ;;  %s2405_s1 = scalar_lea.vmem %s2347_s23, 32  ;;  %p2410_p11 = scmp.lt.s32.totalorder %s2347_s23, %s2347_s23 }
  0x27   :  { %3231 = vst [vmem:[#allocation22_spill] sm:$0xff] %v2538_v40  ;;  %3232 = vst [vmem:[#allocation23_spill] sm:$0xff] %v2540_v41  ;;  %v84_v53 = vld [vmem:[#allocation5 + $0x30] sm:$0x3]  ;;  %v93_v58 = vmul.f32 %v88_v38, %v78_v43  ;;  %v94_v59 = vmul.f32 %v88_v38, %v79_v44  ;;  %v122_v60 = vld [vmem:[#allocation5 + $0x38] sm:$0xff]  ;;  %v2566_v63 = vrot.slane %v2489_v14, %v2500_v21  ;;  %p2406_p10 = scmp.ne.s32.totalorder %s2347_s23, %s2405_s1  ;;  %p2411_p12 = scmp.lt.s32.totalorder %s2405_s1, %s2405_s1 }
  0x28   :  { %3233 = vst [vmem:[#allocation24_spill] sm:$0xff] %v2542_v42  ;;  %3234 = vst [vmem:[#allocation25_spill] sm:$0xff] %v2544_v46  ;;  %v123_v61 = vld [vmem:[#allocation5 + $0x40] sm:$0xff]  ;;  %v124_v62 = vld [vmem:[#allocation5 + $0x48] sm:$0xff]  ;;  %v2570_v0 = vrot.slane %v2505_v25, %v2500_v21  ;;  %v95_v1 = vmul.f32 %v88_v38, %v80_v45  ;;  %v96_v2 = vmul.f32 %v88_v38, %v81_v49 }
  0x29   :  { %3235 = vst [vmem:[#allocation26_spill] sm:$0xff] %v2546_v47  ;;  %3236 = vst [vmem:[#allocation27_spill] sm:$0xff] %v2548_v48  ;;  %v97_v3 = vmul.f32 %v88_v38, %v82_v50  ;;  %v98_v4 = vmul.f32 %v88_v38, %v83_v51  ;;  %v125_v5 = vld [vmem:[#allocation5 + $0x50] sm:$0xff]  ;;  %v126_v6 = vld [vmem:[#allocation5 + $0x58] sm:$0xff]  ;;  %v99_v8 = vmul.f32 %v88_v38, %v84_v53  ;;  %p2412_p13 = por %p2411_p12, %p2410_p11 }
  0x2a   :  { %v127_v7 = vld [vmem:[#allocation5 + $0x60] sm:$0xff]  ;;  %v100_v9 = vmul.f32 %v92_v52, %v78_v43  ;;  %v101_v10 = vmul.f32 %v92_v52, %v79_v44  ;;  %v102_v11 = vmul.f32 %v92_v52, %v80_v45  ;;  %v128_v12 = vld [vmem:[#allocation5 + $0x68] sm:$0x3]  ;;  %v103_v13 = vmul.f32 %v92_v52, %v81_v49  ;;  %v166_v49 = vld [vmem:[#allocation5 + $0x70] sm:$0xff] }
  0x2b   :  { %v104_v16 = vmul.f32 %v92_v52, %v82_v50  ;;  %v137_v17 = vmul.f32 %v132_v54, %v122_v60  ;;  %v138_v18 = vmul.f32 %v132_v54, %v123_v61  ;;  %v139_v22 = vmul.f32 %v132_v54, %v124_v62  ;;  %v167_v50 = vld [vmem:[#allocation5 + $0x78] sm:$0xff]  ;;  %v168_v42 = vld [vmem:[#allocation5 + $0x80] sm:$0xff]  ;;  %v169_v20 = vld [vmem:[#allocation5 + $0x88] sm:$0xff]  ;;  %p2413_p0 = pnand %p2412_p13, %p2406_p10 }
  0x2c   :  { %v140_v23 = vmul.f32 %v132_v54, %v125_v5  ;;  %v141_v24 = vmul.f32 %v132_v54, %v126_v6  ;;  %v142_v28 = vmul.f32 %v132_v54, %v127_v7  ;;  %v143_v29 = vmul.f32 %v132_v54, %v128_v12  ;;  %v170_v54 = vld [vmem:[#allocation5 + $0x90] sm:$0xff] }
  0x2d   :  { %v144_v30 = vmul.f32 %v136_v55, %v122_v60  ;;  %v145_v48 = vmul.f32 %v136_v55, %v123_v61  ;;  %v146_v40 = vmul.f32 %v136_v55, %v124_v62  ;;  %v105_v47 = vmul.f32 %v92_v52, %v83_v51  ;;  %v171_v60 = vld [vmem:[#allocation5 + $0x98] sm:$0xff] }
  0x2e   :  { %v106_v39 = vmul.f32 %v92_v52, %v84_v53  ;;  %v147_v46 = vmul.f32 %v136_v55, %v125_v5  ;;  %v148_v38 = vmul.f32 %v136_v55, %v126_v6  ;;  %v149_v43 = vmul.f32 %v136_v55, %v127_v7  ;;  %v172_v53 = vld [vmem:[#allocation5 + $0xa0] sm:$0x3] }
  0x2f   :  { %v150_v44 = vmul.f32 %v136_v55, %v128_v12  ;;  %v151_v45 = vadd.f32 %v137_v17, %v93_v58  ;;  %v152_v36 = vadd.f32 %v138_v18, %v94_v59  ;;  %v153_v35 = vadd.f32 %v139_v22, %v95_v1  ;;  %v210_v17 = vld [vmem:[#allocation5 + $0xa8] sm:$0xff] }
  0x30   :  { %v154_v41 = vadd.f32 %v140_v23, %v96_v2  ;;  %v155_v32 = vadd.f32 %v141_v24, %v97_v3  ;;  %v156_v21 = vadd.f32 %v142_v28, %v98_v4  ;;  %v157_v61 = vadd.f32 %v143_v29, %v99_v8  ;;  %v212_v28 = vld [vmem:[#allocation5 + $0xb8] sm:$0xff] }
  0x31   :  { %v158_v62 = vadd.f32 %v144_v30, %v100_v9  ;;  %v159_v51 = vadd.f32 %v145_v48, %v101_v10  ;;  %v160_v52 = vadd.f32 %v146_v40, %v102_v11  ;;  %v161_v5 = vadd.f32 %v147_v46, %v103_v13 }
  0x32   :  { %v162_v6 = vadd.f32 %v148_v38, %v104_v16  ;;  %v181_v55 = vmul.f32 %v2558_v56, %v166_v49  ;;  %v182_v58 = vmul.f32 %v2558_v56, %v167_v50  ;;  %v183_v59 = vmul.f32 %v2558_v56, %v168_v42  ;;  %v215_v38 = vld [vmem:[#allocation5 + $0xd0] sm:$0xff] }
  0x33   :  { %v184_v1 = vmul.f32 %v2558_v56, %v169_v20  ;;  %v185_v2 = vmul.f32 %v2558_v56, %v170_v54  ;;  %v186_v3 = vmul.f32 %v2558_v56, %v171_v60  ;;  %v187_v4 = vmul.f32 %v2558_v56, %v172_v53  ;;  %v211_v56 = vld [vmem:[#allocation5 + $0xb0] sm:$0xff] }
  0x34   :  { %v188_v48 = vmul.f32 %v2562_v57, %v166_v49  ;;  %v189_v40 = vmul.f32 %v2562_v57, %v167_v50  ;;  %v190_v46 = vmul.f32 %v2562_v57, %v168_v42  ;;  %v163_v7 = vadd.f32 %v149_v43, %v105_v47  ;;  %v213_v42 = vld [vmem:[#allocation5 + $0xc0] sm:$0xff]  ;;  %v214_v47 = vld [vmem:[#allocation5 + $0xc8] sm:$0xff]  ;;  %v216_v43 = vld [vmem:[#allocation5 + $0xd8] sm:$0x3] }
  0x35   :  { %v164_v8 = vadd.f32 %v150_v44, %v106_v39  ;;  %v191_v9 = vmul.f32 %v2562_v57, %v169_v20  ;;  %v192_v10 = vmul.f32 %v2562_v57, %v170_v54  ;;  %v193_v11 = vmul.f32 %v2562_v57, %v171_v60 }
  0x36   :  { %v194_v12 = vmul.f32 %v2562_v57, %v172_v53  ;;  %v195_v13 = vadd.f32 %v181_v55, %v151_v45  ;;  %v196_v16 = vadd.f32 %v182_v58, %v152_v36  ;;  %v197_v18 = vadd.f32 %v183_v59, %v153_v35 }
  0x37   :  { %v198_v22 = vadd.f32 %v184_v1, %v154_v41  ;;  %v199_v23 = vadd.f32 %v185_v2, %v155_v32  ;;  %v200_v24 = vadd.f32 %v186_v3, %v156_v21  ;;  %v201_v39 = vadd.f32 %v187_v4, %v157_v61 }
  0x38   :  { %v202_v29 = vadd.f32 %v188_v48, %v158_v62  ;;  %v203_v20 = vadd.f32 %v189_v40, %v159_v51  ;;  %v204_v30 = vadd.f32 %v190_v46, %v160_v52  ;;  %v205_v44 = vadd.f32 %v191_v9, %v161_v5  ;;  %v255_v40 = vld [vmem:[#allocation5 + $0xe8] sm:$0xff]  ;;  %v256_v46 = vld [vmem:[#allocation5 + $0xf0] sm:$0xff] }
  0x39   :  { %v206_v49 = vadd.f32 %v192_v10, %v162_v6  ;;  %v225_v57 = vmul.f32 %v2566_v63, %v210_v17  ;;  %v226_v36 = vmul.f32 %v2566_v63, %v211_v56  ;;  %v207_v45 = vadd.f32 %v193_v11, %v163_v7  ;;  %v257_v7 = vld [vmem:[#allocation5 + $0xf8] sm:$0xff] }
  0x3a   :  { %v227_v35 = vmul.f32 %v2566_v63, %v212_v28  ;;  %v228_v21 = vmul.f32 %v2566_v63, %v213_v42  ;;  %v229_v32 = vmul.f32 %v2566_v63, %v214_v47  ;;  %v208_v41 = vadd.f32 %v194_v12, %v164_v8  ;;  %v258_v12 = vld [vmem:[#allocation5 + $0x100] sm:$0xff] }
  0x3b   :  { %v230_v50 = vmul.f32 %v2566_v63, %v215_v38  ;;  %v231_v54 = vmul.f32 %v2566_v63, %v216_v43  ;;  %v232_v60 = vmul.f32 %v2570_v0, %v210_v17  ;;  %v233_v61 = vmul.f32 %v2570_v0, %v211_v56  ;;  %v254_v63 = vld [vmem:[#allocation5 + $0xe0] sm:$0xff] }
  0x3c   :  { %v234_v62 = vmul.f32 %v2570_v0, %v212_v28  ;;  %v235_v51 = vmul.f32 %v2570_v0, %v213_v42  ;;  %v236_v52 = vmul.f32 %v2570_v0, %v214_v47  ;;  %v237_v53 = vmul.f32 %v2570_v0, %v215_v38 }
  0x3d   :  { %v238_v5 = vmul.f32 %v2570_v0, %v216_v43  ;;  %v239_v6 = vadd.f32 %v225_v57, %v195_v13  ;;  %v240_v55 = vadd.f32 %v226_v36, %v196_v16  ;;  %v241_v58 = vadd.f32 %v227_v35, %v197_v18  ;;  %v259_v13 = vld [vmem:[#allocation5 + $0x108] sm:$0xff]  ;;  %v260_v16 = vld [vmem:[#allocation5 + $0x110] sm:$0x3]  ;;  %v298_v36 = vld [vmem:[#allocation5 + $0x118] sm:$0xff] }
  0x3e   :  { %v242_v59 = vadd.f32 %v228_v21, %v198_v22  ;;  %v243_v1 = vadd.f32 %v229_v32, %v199_v23  ;;  %v264_v2 = vrot.slane %v2489_v14, %v2507_v26  ;;  %v244_v3 = vadd.f32 %v230_v50, %v200_v24 }
  0x3f   :  { %v245_v4 = vadd.f32 %v231_v54, %v201_v39  ;;  %v246_v48 = vadd.f32 %v232_v60, %v202_v29  ;;  %v268_v8 = vrot.slane %v2505_v25, %v2507_v26  ;;  %v247_v9 = vadd.f32 %v233_v61, %v203_v20  ;;  %v299_v54 = vld [vmem:[#allocation5 + $0x120] sm:$0xff]  ;;  %v300_v60 = vld [vmem:[#allocation5 + $0x128] sm:$0xff]  ;;  %v301_v61 = vld [vmem:[#allocation5 + $0x130] sm:$0xff] }
  0x40   :  { %v248_v0 = vadd.f32 %v234_v62, %v204_v30  ;;  %v249_v10 = vadd.f32 %v235_v51, %v205_v44  ;;  %v250_v11 = vadd.f32 %v236_v52, %v206_v49  ;;  %v251_v17 = vadd.f32 %v237_v53, %v207_v45 }
  0x41   :  { %v252_v56 = vadd.f32 %v238_v5, %v208_v41  ;;  %v308_v18 = vrot.slane %v2489_v14, %v2509_v27  ;;  %v312_v22 = vrot.slane %v2505_v25, %v2509_v27  ;;  %v269_v23 = vmul.f32 %v264_v2, %v254_v63  ;;  %v302_v5 = vld [vmem:[#allocation5 + $0x138] sm:$0xff] }
  0x42   :  { %v270_v24 = vmul.f32 %v264_v2, %v255_v40  ;;  %v271_v28 = vmul.f32 %v264_v2, %v256_v46  ;;  %v272_v42 = vmul.f32 %v264_v2, %v257_v7  ;;  %v273_v47 = vmul.f32 %v264_v2, %v258_v12 }
  0x43   :  { %v274_v39 = vmul.f32 %v264_v2, %v259_v13  ;;  %v275_v29 = vmul.f32 %v264_v2, %v260_v16  ;;  %v276_v20 = vmul.f32 %v268_v8, %v254_v63  ;;  %v277_v30 = vmul.f32 %v268_v8, %v255_v40  ;;  %v303_v63 = vld [vmem:[#allocation5 + $0x140] sm:$0xff]  ;;  %v304_v2 = vld [vmem:[#allocation5 + $0x148] sm:$0x3] }
  0x44   :  { %v278_v38 = vmul.f32 %v268_v8, %v256_v46  ;;  %v279_v43 = vmul.f32 %v268_v8, %v257_v7  ;;  %v280_v44 = vmul.f32 %v268_v8, %v258_v12  ;;  %v281_v49 = vmul.f32 %v268_v8, %v259_v13 }
  0x45   :  { %v282_v57 = vmul.f32 %v268_v8, %v260_v16  ;;  %v352_v45 = vrot.slane %v2489_v14, %v2524_v33  ;;  %v2612_v35 = vrot.slane %v2505_v25, %v2524_v33  ;;  %v283_v21 = vadd.f32 %v269_v23, %v239_v6 }
  0x46   :  { %v284_v32 = vadd.f32 %v270_v24, %v240_v55  ;;  %v285_v41 = vadd.f32 %v271_v28, %v241_v58  ;;  %v286_v50 = vadd.f32 %v272_v42, %v242_v59  ;;  %v287_v62 = vadd.f32 %v273_v47, %v243_v1 }
  0x47   :  { %v288_v51 = vadd.f32 %v274_v39, %v244_v3  ;;  %v289_v52 = vadd.f32 %v275_v29, %v245_v4  ;;  %v290_v53 = vadd.f32 %v276_v20, %v246_v48  ;;  %v291_v40 = vadd.f32 %v277_v30, %v247_v9  ;;  %v342_v9 = vld [vmem:[#allocation5 + $0x150] sm:$0xff]  ;;  %v343_v29 = vld [vmem:[#allocation5 + $0x158] sm:$0xff]  ;;  %v344_v20 = vld [vmem:[#allocation5 + $0x160] sm:$0xff] }
  0x48   :  { %v292_v46 = vadd.f32 %v278_v38, %v248_v0  ;;  %v293_v7 = vadd.f32 %v279_v43, %v249_v10  ;;  %v294_v8 = vadd.f32 %v280_v44, %v250_v11  ;;  %v313_v12 = vmul.f32 %v308_v18, %v298_v36  ;;  %v345_v30 = vld [vmem:[#allocation5 + $0x168] sm:$0xff] }
  0x49   :  { %v314_v13 = vmul.f32 %v308_v18, %v299_v54  ;;  %v315_v6 = vmul.f32 %v308_v18, %v300_v60  ;;  %v316_v55 = vmul.f32 %v308_v18, %v301_v61  ;;  %v317_v58 = vmul.f32 %v308_v18, %v302_v5 }
  0x4a   :  { %v318_v59 = vmul.f32 %v308_v18, %v303_v63  ;;  %v319_v16 = vmul.f32 %v308_v18, %v304_v2  ;;  %v320_v23 = vmul.f32 %v312_v22, %v298_v36  ;;  %v321_v24 = vmul.f32 %v312_v22, %v299_v54  ;;  %v346_v36 = vld [vmem:[#allocation5 + $0x170] sm:$0xff]  ;;  %v347_v54 = vld [vmem:[#allocation5 + $0x178] sm:$0xff] }
  0x4b   :  { %v322_v1 = vmul.f32 %v312_v22, %v300_v60  ;;  %v323_v3 = vmul.f32 %v312_v22, %v301_v61  ;;  %v324_v4 = vmul.f32 %v312_v22, %v302_v5  ;;  %v295_v48 = vadd.f32 %v281_v49, %v251_v17  ;;  %v348_v60 = vld [vmem:[#allocation5 + $0x180] sm:$0x3] }
  0x4c   :  { %v296_v28 = vadd.f32 %v282_v57, %v252_v56  ;;  %v325_v42 = vmul.f32 %v312_v22, %v303_v63  ;;  %v326_v47 = vmul.f32 %v312_v22, %v304_v2  ;;  %v327_v0 = vadd.f32 %v313_v12, %v283_v21 }
  0x4d   :  { %v328_v10 = vadd.f32 %v314_v13, %v284_v32  ;;  %v329_v11 = vadd.f32 %v315_v6, %v285_v41  ;;  %v330_v39 = vadd.f32 %v316_v55, %v286_v50  ;;  %v331_v38 = vadd.f32 %v317_v58, %v287_v62 }
  0x4e   :  { %v332_v43 = vadd.f32 %v318_v59, %v288_v51  ;;  %v333_v18 = vadd.f32 %v319_v16, %v289_v52  ;;  %v334_v44 = vadd.f32 %v320_v23, %v290_v53  ;;  %v335_v61 = vadd.f32 %v321_v24, %v291_v40  ;;  %v386_v59 = vld [vmem:[#allocation5 + $0x188] sm:$0xff] }
  0x4f   :  { %v336_v17 = vadd.f32 %v322_v1, %v292_v46  ;;  %v337_v56 = vadd.f32 %v323_v3, %v293_v7  ;;  %v338_v49 = vadd.f32 %v324_v4, %v294_v8  ;;  %v357_v22 = vmul.f32 %v352_v45, %v342_v9  ;;  %v387_v3 = vld [vmem:[#allocation5 + $0x190] sm:$0xff]  ;;  %v388_v4 = vld [vmem:[#allocation5 + $0x198] sm:$0xff] }
  0x50   :  { %v358_v57 = vmul.f32 %v352_v45, %v343_v29  ;;  %v359_v21 = vmul.f32 %v352_v45, %v344_v20  ;;  %v360_v32 = vmul.f32 %v352_v45, %v345_v30  ;;  %v339_v41 = vadd.f32 %v325_v42, %v295_v48  ;;  %v389_v48 = vld [vmem:[#allocation5 + $0x1a0] sm:$0xff] }
  0x51   :  { %v361_v50 = vmul.f32 %v352_v45, %v346_v36  ;;  %v362_v5 = vmul.f32 %v352_v45, %v347_v54  ;;  %v363_v63 = vmul.f32 %v352_v45, %v348_v60  ;;  %v340_v2 = vadd.f32 %v326_v47, %v296_v28 }
  0x52   :  { %v364_v62 = vmul.f32 %v2612_v35, %v342_v9  ;;  %v365_v51 = vmul.f32 %v2612_v35, %v343_v29  ;;  %v366_v52 = vmul.f32 %v2612_v35, %v344_v20  ;;  %v367_v53 = vmul.f32 %v2612_v35, %v345_v30 }
  0x53   :  { %v368_v40 = vmul.f32 %v2612_v35, %v346_v36  ;;  %v369_v46 = vmul.f32 %v2612_v35, %v347_v54  ;;  %v370_v7 = vmul.f32 %v2612_v35, %v348_v60  ;;  %v371_v8 = vadd.f32 %v357_v22, %v327_v0  ;;  %v390_v0 = vld [vmem:[#allocation5 + $0x1a8] sm:$0xff] }
  0x54   :  { %v372_v12 = vadd.f32 %v358_v57, %v328_v10  ;;  %v373_v13 = vadd.f32 %v359_v21, %v329_v11  ;;  %v374_v6 = vadd.f32 %v360_v32, %v330_v39  ;;  %v375_v45 = vadd.f32 %v361_v50, %v331_v38  ;;  %v391_v10 = vld [vmem:[#allocation5 + $0x1b0] sm:$0xff]  ;;  %v392_v11 = vld [vmem:[#allocation5 + $0x1b8] sm:$0x3]  ;;  %v430_v32 = vld [vmem:[#allocation5 + $0x1c0] sm:$0xff] }
  0x55   :  { %v376_v55 = vadd.f32 %v362_v5, %v332_v43  ;;  %v377_v58 = vadd.f32 %v363_v63, %v333_v18  ;;  %v396_v16 = vrot.slane %v2489_v14, %v2526_v34  ;;  %v378_v23 = vadd.f32 %v364_v62, %v334_v44 }
  0x56   :  { %v379_v24 = vadd.f32 %v365_v51, %v335_v61  ;;  %v380_v1 = vadd.f32 %v366_v52, %v336_v17  ;;  %v400_v35 = vrot.slane %v2505_v25, %v2526_v34  ;;  %v381_v28 = vadd.f32 %v367_v53, %v337_v56  ;;  %v431_v52 = vld [vmem:[#allocation5 + $0x1c8] sm:$0xff]  ;;  %v432_v53 = vld [vmem:[#allocation5 + $0x1d0] sm:$0xff] }
  0x57   :  { %v382_v42 = vadd.f32 %v368_v40, %v338_v49  ;;  %v383_v47 = vadd.f32 %v369_v46, %v339_v41  ;;  %v384_v9 = vadd.f32 %v370_v7, %v340_v2  ;;  %v440_v39 = vrot.slane %v2520_v31, %v2491_v15  ;;  %v3237_v41 = vld [vmem:[#allocation12_spill] sm:$0xff] }
  0x58   :  { %v444_v29 = vrot.slane %v2532_v37, %v2491_v15  ;;  %v2631_v20 = vrot.slane %v2520_v31, %v2496_v19  ;;  %v2635_v30 = vrot.slane %v2532_v37, %v2496_v19  ;;  %v401_v38 = vmul.f32 %v396_v16, %v386_v59  ;;  %v433_v40 = vld [vmem:[#allocation5 + $0x1d8] sm:$0xff] }
  0x59   :  { %v402_v43 = vmul.f32 %v396_v16, %v387_v3  ;;  %v403_v18 = vmul.f32 %v396_v16, %v388_v4  ;;  %v404_v44 = vmul.f32 %v396_v16, %v389_v48  ;;  %v405_v36 = vmul.f32 %v396_v16, %v390_v0 }
  0x5a   :  { %v406_v54 = vmul.f32 %v396_v16, %v391_v10  ;;  %v407_v60 = vmul.f32 %v396_v16, %v392_v11  ;;  %v408_v61 = vmul.f32 %v400_v35, %v386_v59  ;;  %v409_v17 = vmul.f32 %v400_v35, %v387_v3  ;;  %v434_v3 = vld [vmem:[#allocation5 + $0x1e0] sm:$0xff] }
  0x5b   :  { %v410_v56 = vmul.f32 %v400_v35, %v388_v4  ;;  %v411_v49 = vmul.f32 %v400_v35, %v389_v48  ;;  %v412_v22 = vmul.f32 %v400_v35, %v390_v0  ;;  %v413_v57 = vmul.f32 %v400_v35, %v391_v10  ;;  %v435_v4 = vld [vmem:[#allocation5 + $0x1e8] sm:$0xff]  ;;  %v436_v48 = vld [vmem:[#allocation5 + $0x1f0] sm:$0x3] }
  0x5c   :  { %v414_v21 = vmul.f32 %v400_v35, %v392_v11  ;;  %v2639_v50 = vrot.slane %v2520_v31, %v3237_v41  ;;  %v2643_v5 = vrot.slane %v2532_v37, %v3237_v41  ;;  %v415_v63 = vadd.f32 %v401_v38, %v371_v8 }
  0x5d   :  { %v416_v2 = vadd.f32 %v402_v43, %v372_v12  ;;  %v417_v62 = vadd.f32 %v403_v18, %v373_v13  ;;  %v418_v51 = vadd.f32 %v404_v44, %v374_v6  ;;  %v419_v46 = vadd.f32 %v405_v36, %v375_v45 }
  0x5e   :  { %v420_v7 = vadd.f32 %v406_v54, %v376_v55  ;;  %v421_v59 = vadd.f32 %v407_v60, %v377_v58  ;;  %v422_v16 = vadd.f32 %v408_v61, %v378_v23  ;;  %v423_v35 = vadd.f32 %v409_v17, %v379_v24  ;;  %v474_v24 = vld [vmem:[#allocation5 + $0x1f8] sm:$0xff]  ;;  %v475_v61 = vld [vmem:[#allocation5 + $0x200] sm:$0xff]  ;;  %v476_v17 = vld [vmem:[#allocation5 + $0x208] sm:$0xff] }
  0x5f   :  { %v424_v0 = vadd.f32 %v410_v56, %v380_v1  ;;  %v425_v10 = vadd.f32 %v411_v49, %v381_v28  ;;  %v426_v11 = vadd.f32 %v412_v22, %v382_v42  ;;  %v445_v25 = vmul.f32 %v440_v39, %v430_v32  ;;  %v477_v56 = vld [vmem:[#allocation5 + $0x210] sm:$0xff] }
  0x60   :  { %v446_v14 = vmul.f32 %v440_v39, %v431_v52  ;;  %v447_v8 = vmul.f32 %v440_v39, %v432_v53  ;;  %v448_v12 = vmul.f32 %v440_v39, %v433_v40  ;;  %v449_v13 = vmul.f32 %v440_v39, %v434_v3 }
  0x61   :  { %v450_v6 = vmul.f32 %v440_v39, %v435_v4  ;;  %v451_v38 = vmul.f32 %v440_v39, %v436_v48  ;;  %v452_v43 = vmul.f32 %v444_v29, %v430_v32  ;;  %v453_v18 = vmul.f32 %v444_v29, %v431_v52  ;;  %v478_v52 = vld [vmem:[#allocation5 + $0x218] sm:$0xff] }
  0x62   :  { %v454_v45 = vmul.f32 %v444_v29, %v432_v53  ;;  %v455_v55 = vmul.f32 %v444_v29, %v433_v40  ;;  %v456_v58 = vmul.f32 %v444_v29, %v434_v3  ;;  %v427_v23 = vadd.f32 %v413_v57, %v383_v47  ;;  %v479_v53 = vld [vmem:[#allocation5 + $0x220] sm:$0xff]  ;;  %v480_v40 = vld [vmem:[#allocation5 + $0x228] sm:$0x3] }
  0x63   :  { %v428_v44 = vadd.f32 %v414_v21, %v384_v9  ;;  %v457_v36 = vmul.f32 %v444_v29, %v435_v4  ;;  %v458_v54 = vmul.f32 %v444_v29, %v436_v48  ;;  %v459_v1 = vadd.f32 %v445_v25, %v415_v63 }
  0x64   :  { %v460_v28 = vadd.f32 %v446_v14, %v416_v2  ;;  %v461_v42 = vadd.f32 %v447_v8, %v417_v62  ;;  %v462_v60 = vadd.f32 %v448_v12, %v418_v51  ;;  %v463_v49 = vadd.f32 %v449_v13, %v419_v46  ;;  %v519_v13 = vld [vmem:[#allocation5 + $0x238] sm:$0xff] }
  0x65   :  { %v464_v22 = vadd.f32 %v450_v6, %v420_v7  ;;  %v465_v39 = vadd.f32 %v451_v38, %v421_v59  ;;  %v466_v32 = vadd.f32 %v452_v43, %v422_v16  ;;  %v467_v3 = vadd.f32 %v453_v18, %v423_v35  ;;  %v520_v6 = vld [vmem:[#allocation5 + $0x240] sm:$0xff]  ;;  %v521_v38 = vld [vmem:[#allocation5 + $0x248] sm:$0xff] }
  0x66   :  { %v468_v47 = vadd.f32 %v454_v45, %v424_v0  ;;  %v469_v9 = vadd.f32 %v455_v55, %v425_v10  ;;  %v470_v57 = vadd.f32 %v456_v58, %v426_v11  ;;  %v489_v29 = vmul.f32 %v2631_v20, %v474_v24  ;;  %v518_v10 = vld [vmem:[#allocation5 + $0x230] sm:$0xff] }
  0x67   :  { %v490_v14 = vmul.f32 %v2631_v20, %v475_v61  ;;  %v491_v25 = vmul.f32 %v2631_v20, %v476_v17  ;;  %v492_v21 = vmul.f32 %v2631_v20, %v477_v56  ;;  %v493_v63 = vmul.f32 %v2631_v20, %v478_v52  ;;  %v522_v58 = vld [vmem:[#allocation5 + $0x250] sm:$0xff] }
  0x68   :  { %v494_v2 = vmul.f32 %v2631_v20, %v479_v53  ;;  %v495_v62 = vmul.f32 %v2631_v20, %v480_v40  ;;  %v496_v51 = vmul.f32 %v2635_v30, %v474_v24  ;;  %v497_v46 = vmul.f32 %v2635_v30, %v475_v61  ;;  %v523_v24 = vld [vmem:[#allocation5 + $0x258] sm:$0xff] }
  0x69   :  { %v498_v7 = vmul.f32 %v2635_v30, %v476_v17  ;;  %v499_v59 = vmul.f32 %v2635_v30, %v477_v56  ;;  %v500_v16 = vmul.f32 %v2635_v30, %v478_v52  ;;  %v471_v4 = vadd.f32 %v457_v36, %v427_v23  ;;  %v524_v23 = vld [vmem:[#allocation5 + $0x260] sm:$0x3] }
  0x6a   :  { %v472_v48 = vadd.f32 %v458_v54, %v428_v44  ;;  %v501_v35 = vmul.f32 %v2635_v30, %v479_v53  ;;  %v502_v0 = vmul.f32 %v2635_v30, %v480_v40  ;;  %v503_v11 = vadd.f32 %v489_v29, %v459_v1 }
  0x6b   :  { %v504_v8 = vadd.f32 %v490_v14, %v460_v28  ;;  %v505_v20 = vadd.f32 %v491_v25, %v461_v42  ;;  %v506_v12 = vadd.f32 %v492_v21, %v462_v60  ;;  %v507_v43 = vadd.f32 %v493_v63, %v463_v49  ;;  %v562_v63 = vld [vmem:[#allocation5 + $0x268] sm:$0xff] }
  0x6c   :  { %v508_v18 = vadd.f32 %v494_v2, %v464_v22  ;;  %v509_v45 = vadd.f32 %v495_v62, %v465_v39  ;;  %v510_v55 = vadd.f32 %v496_v51, %v466_v32  ;;  %v511_v44 = vadd.f32 %v497_v46, %v467_v3  ;;  %v3238_v2 = vld [vmem:[#allocation13_spill] sm:$0xff] }
  0x6d   :  { %v512_v36 = vadd.f32 %v498_v7, %v468_v47  ;;  %v513_v54 = vadd.f32 %v499_v59, %v469_v9  ;;  %v514_v61 = vadd.f32 %v500_v16, %v470_v57  ;;  %v533_v30 = vmul.f32 %v2639_v50, %v518_v10  ;;  %v563_v59 = vld [vmem:[#allocation5 + $0x270] sm:$0xff]  ;;  %v564_v16 = vld [vmem:[#allocation5 + $0x278] sm:$0xff] }
  0x6e   :  { %v534_v1 = vmul.f32 %v2639_v50, %v519_v13  ;;  %v535_v28 = vmul.f32 %v2639_v50, %v520_v6  ;;  %v536_v42 = vmul.f32 %v2639_v50, %v521_v38  ;;  %v515_v60 = vadd.f32 %v501_v35, %v471_v4  ;;  %v565_v4 = vld [vmem:[#allocation5 + $0x280] sm:$0xff] }
  0x6f   :  { %v537_v17 = vmul.f32 %v2639_v50, %v522_v58  ;;  %v538_v56 = vmul.f32 %v2639_v50, %v523_v24  ;;  %v539_v49 = vmul.f32 %v2639_v50, %v524_v23  ;;  %v516_v22 = vadd.f32 %v502_v0, %v472_v48 }
  0x70   :  { %v540_v39 = vmul.f32 %v2643_v5, %v518_v10  ;;  %v541_v32 = vmul.f32 %v2643_v5, %v519_v13  ;;  %v542_v52 = vmul.f32 %v2643_v5, %v520_v6  ;;  %v543_v53 = vmul.f32 %v2643_v5, %v521_v38 }
  0x71   :  { %v544_v40 = vmul.f32 %v2643_v5, %v522_v58  ;;  %v545_v3 = vmul.f32 %v2643_v5, %v523_v24  ;;  %v546_v47 = vmul.f32 %v2643_v5, %v524_v23  ;;  %v547_v9 = vadd.f32 %v533_v30, %v503_v11  ;;  %v566_v11 = vld [vmem:[#allocation5 + $0x288] sm:$0xff] }
  0x72   :  { %v548_v57 = vadd.f32 %v534_v1, %v504_v8  ;;  %v549_v29 = vadd.f32 %v535_v28, %v505_v20  ;;  %v550_v14 = vadd.f32 %v536_v42, %v506_v12  ;;  %v551_v50 = vadd.f32 %v537_v17, %v507_v43  ;;  %v567_v8 = vld [vmem:[#allocation5 + $0x290] sm:$0xff]  ;;  %v568_v20 = vld [vmem:[#allocation5 + $0x298] sm:$0x3]  ;;  %v606_v42 = vld [vmem:[#allocation5 + $0x2a0] sm:$0xff] }
  0x73   :  { %v552_v25 = vadd.f32 %v538_v56, %v508_v18  ;;  %v553_v21 = vadd.f32 %v539_v49, %v509_v45  ;;  %v572_v62 = vrot.slane %v2520_v31, %v3238_v2  ;;  %v554_v51 = vadd.f32 %v540_v39, %v510_v55 }
  0x74   :  { %v555_v46 = vadd.f32 %v541_v32, %v511_v44  ;;  %v556_v7 = vadd.f32 %v542_v52, %v512_v36  ;;  %v576_v5 = vrot.slane %v2532_v37, %v3238_v2  ;;  %v557_v48 = vadd.f32 %v543_v53, %v513_v54  ;;  %v607_v32 = vld [vmem:[#allocation5 + $0x2a8] sm:$0xff]  ;;  %v608_v52 = vld [vmem:[#allocation5 + $0x2b0] sm:$0xff]  ;;  %v609_v53 = vld [vmem:[#allocation5 + $0x2b8] sm:$0xff] }
  0x75   :  { %v558_v35 = vadd.f32 %v544_v40, %v514_v61  ;;  %v559_v0 = vadd.f32 %v545_v3, %v515_v60  ;;  %v560_v10 = vadd.f32 %v546_v47, %v516_v22  ;;  %v616_v12 = vrot.slane %v2520_v31, %v2507_v26 }
  0x76   :  { %v620_v13 = vrot.slane %v2532_v37, %v2507_v26  ;;  %v2683_v6 = vrot.slane %v2520_v31, %v2509_v27  ;;  %v2687_v38 = vrot.slane %v2532_v37, %v2509_v27  ;;  %v577_v43 = vmul.f32 %v572_v62, %v562_v63 }
  0x77   :  { %v578_v18 = vmul.f32 %v572_v62, %v563_v59  ;;  %v579_v45 = vmul.f32 %v572_v62, %v564_v16  ;;  %v580_v55 = vmul.f32 %v572_v62, %v565_v4  ;;  %v581_v58 = vmul.f32 %v572_v62, %v566_v11 }
  0x78   :  { %v582_v24 = vmul.f32 %v572_v62, %v567_v8  ;;  %v583_v23 = vmul.f32 %v572_v62, %v568_v20  ;;  %v584_v44 = vmul.f32 %v576_v5, %v562_v63  ;;  %v585_v36 = vmul.f32 %v576_v5, %v563_v59  ;;  %v610_v62 = vld [vmem:[#allocation5 + $0x2c0] sm:$0xff]  ;;  %v611_v59 = vld [vmem:[#allocation5 + $0x2c8] sm:$0xff] }
  0x79   :  { %v586_v54 = vmul.f32 %v576_v5, %v564_v16  ;;  %v587_v61 = vmul.f32 %v576_v5, %v565_v4  ;;  %v588_v30 = vmul.f32 %v576_v5, %v566_v11  ;;  %v589_v1 = vmul.f32 %v576_v5, %v567_v8  ;;  %v612_v16 = vld [vmem:[#allocation5 + $0x2d0] sm:$0x3] }
  0x7a   :  { %v590_v28 = vmul.f32 %v576_v5, %v568_v20  ;;  %v2691_v60 = vrot.slane %v2520_v31, %v2524_v33  ;;  %v2695_v17 = vrot.slane %v2532_v37, %v2524_v33  ;;  %v591_v56 = vadd.f32 %v577_v43, %v547_v9 }
  0x7b   :  { %v592_v49 = vadd.f32 %v578_v18, %v548_v57  ;;  %v593_v22 = vadd.f32 %v579_v45, %v549_v29  ;;  %v594_v39 = vadd.f32 %v580_v55, %v550_v14  ;;  %v595_v40 = vadd.f32 %v581_v58, %v551_v50 }
  0x7c   :  { %v596_v3 = vadd.f32 %v582_v24, %v552_v25  ;;  %v597_v47 = vadd.f32 %v583_v23, %v553_v21  ;;  %v598_v63 = vadd.f32 %v584_v44, %v554_v51  ;;  %v599_v4 = vadd.f32 %v585_v36, %v555_v46  ;;  %v650_v46 = vld [vmem:[#allocation5 + $0x2d8] sm:$0xff]  ;;  %v651_v44 = vld [vmem:[#allocation5 + $0x2e0] sm:$0xff]  ;;  %v652_v36 = vld [vmem:[#allocation5 + $0x2e8] sm:$0xff] }
  0x7d   :  { %v600_v5 = vadd.f32 %v586_v54, %v556_v7  ;;  %v601_v11 = vadd.f32 %v587_v61, %v557_v48  ;;  %v602_v8 = vadd.f32 %v588_v30, %v558_v35  ;;  %v621_v20 = vmul.f32 %v616_v12, %v606_v42  ;;  %v653_v54 = vld [vmem:[#allocation5 + $0x2f0] sm:$0xff] }
  0x7e   :  { %v622_v33 = vmul.f32 %v616_v12, %v607_v32  ;;  %v623_v9 = vmul.f32 %v616_v12, %v608_v52  ;;  %v624_v57 = vmul.f32 %v616_v12, %v609_v53  ;;  %v625_v29 = vmul.f32 %v616_v12, %v610_v62 }
  0x7f   :  { %v626_v14 = vmul.f32 %v616_v12, %v611_v59  ;;  %v627_v43 = vmul.f32 %v616_v12, %v612_v16  ;;  %v628_v18 = vmul.f32 %v620_v13, %v606_v42  ;;  %v629_v45 = vmul.f32 %v620_v13, %v607_v32  ;;  %v654_v32 = vld [vmem:[#allocation5 + $0x2f8] sm:$0xff] }
  0x80   :  { %v630_v50 = vmul.f32 %v620_v13, %v608_v52  ;;  %v631_v25 = vmul.f32 %v620_v13, %v609_v53  ;;  %v632_v21 = vmul.f32 %v620_v13, %v610_v62  ;;  %v603_v51 = vadd.f32 %v589_v1, %v559_v0  ;;  %v655_v52 = vld [vmem:[#allocation5 + $0x300] sm:$0xff]  ;;  %v656_v53 = vld [vmem:[#allocation5 + $0x308] sm:$0x3] }
  0x81   :  { %v604_v55 = vadd.f32 %v590_v28, %v560_v10  ;;  %v633_v58 = vmul.f32 %v620_v13, %v611_v59  ;;  %v634_v24 = vmul.f32 %v620_v13, %v612_v16  ;;  %v635_v7 = vadd.f32 %v621_v20, %v591_v56 }
  0x82   :  { %v636_v48 = vadd.f32 %v622_v33, %v592_v49  ;;  %v637_v35 = vadd.f32 %v623_v9, %v593_v22  ;;  %v638_v23 = vadd.f32 %v624_v57, %v594_v39  ;;  %v639_v61 = vadd.f32 %v625_v29, %v595_v40  ;;  %v695_v29 = vld [vmem:[#allocation5 + $0x318] sm:$0xff] }
  0x83   :  { %v640_v30 = vadd.f32 %v626_v14, %v596_v3  ;;  %v641_v12 = vadd.f32 %v627_v43, %v597_v47  ;;  %v642_v42 = vadd.f32 %v628_v18, %v598_v63  ;;  %v643_v62 = vadd.f32 %v629_v45, %v599_v4  ;;  %v696_v14 = vld [vmem:[#allocation5 + $0x320] sm:$0xff]  ;;  %v697_v43 = vld [vmem:[#allocation5 + $0x328] sm:$0xff] }
  0x84   :  { %v644_v0 = vadd.f32 %v630_v50, %v600_v5  ;;  %v645_v10 = vadd.f32 %v631_v25, %v601_v11  ;;  %v646_v1 = vadd.f32 %v632_v21, %v602_v8  ;;  %v665_v13 = vmul.f32 %v2683_v6, %v650_v46  ;;  %v694_v8 = vld [vmem:[#allocation5 + $0x310] sm:$0xff] }
  0x85   :  { %v666_v33 = vmul.f32 %v2683_v6, %v651_v44  ;;  %v667_v28 = vmul.f32 %v2683_v6, %v652_v36  ;;  %v668_v56 = vmul.f32 %v2683_v6, %v653_v54  ;;  %v669_v49 = vmul.f32 %v2683_v6, %v654_v32  ;;  %v698_v21 = vld [vmem:[#allocation5 + $0x330] sm:$0xff] }
  0x86   :  { %v670_v22 = vmul.f32 %v2683_v6, %v655_v52  ;;  %v671_v39 = vmul.f32 %v2683_v6, %v656_v53  ;;  %v672_v40 = vmul.f32 %v2687_v38, %v650_v46  ;;  %v673_v3 = vmul.f32 %v2687_v38, %v651_v44  ;;  %v699_v46 = vld [vmem:[#allocation5 + $0x338] sm:$0xff] }
  0x87   :  { %v674_v47 = vmul.f32 %v2687_v38, %v652_v36  ;;  %v675_v63 = vmul.f32 %v2687_v38, %v653_v54  ;;  %v676_v59 = vmul.f32 %v2687_v38, %v654_v32  ;;  %v647_v16 = vadd.f32 %v633_v58, %v603_v51  ;;  %v700_v51 = vld [vmem:[#allocation5 + $0x340] sm:$0x3] }
  0x88   :  { %v648_v4 = vadd.f32 %v634_v24, %v604_v55  ;;  %v677_v5 = vmul.f32 %v2687_v38, %v655_v52  ;;  %v678_v11 = vmul.f32 %v2687_v38, %v656_v53  ;;  %v679_v20 = vadd.f32 %v665_v13, %v635_v7 }
  0x89   :  { %v680_v9 = vadd.f32 %v666_v33, %v636_v48  ;;  %v681_v6 = vadd.f32 %v667_v28, %v637_v35  ;;  %v682_v57 = vadd.f32 %v668_v56, %v638_v23  ;;  %v683_v18 = vadd.f32 %v669_v49, %v639_v61  ;;  %v738_v49 = vld [vmem:[#allocation5 + $0x348] sm:$0xff] }
  0x8a   :  { %v684_v45 = vadd.f32 %v670_v22, %v640_v30  ;;  %v685_v50 = vadd.f32 %v671_v39, %v641_v12  ;;  %v686_v25 = vadd.f32 %v672_v40, %v642_v42  ;;  %v687_v55 = vadd.f32 %v673_v3, %v643_v62 }
  0x8b   :  { %v688_v58 = vadd.f32 %v674_v47, %v644_v0  ;;  %v689_v24 = vadd.f32 %v675_v63, %v645_v10  ;;  %v690_v44 = vadd.f32 %v676_v59, %v646_v1  ;;  %v709_v38 = vmul.f32 %v2691_v60, %v694_v8  ;;  %v739_v47 = vld [vmem:[#allocation5 + $0x350] sm:$0xff]  ;;  %v740_v63 = vld [vmem:[#allocation5 + $0x358] sm:$0xff]  ;;  %v741_v59 = vld [vmem:[#allocation5 + $0x360] sm:$0xff] }
  0x8c   :  { %v710_v7 = vmul.f32 %v2691_v60, %v695_v29  ;;  %v711_v48 = vmul.f32 %v2691_v60, %v696_v14  ;;  %v712_v35 = vmul.f32 %v2691_v60, %v697_v43  ;;  %v691_v23 = vadd.f32 %v677_v5, %v647_v16 }
  0x8d   :  { %v713_v36 = vmul.f32 %v2691_v60, %v698_v21  ;;  %v714_v54 = vmul.f32 %v2691_v60, %v699_v46  ;;  %v715_v61 = vmul.f32 %v2691_v60, %v700_v51  ;;  %v692_v30 = vadd.f32 %v678_v11, %v648_v4 }
  0x8e   :  { %v716_v12 = vmul.f32 %v2695_v17, %v694_v8  ;;  %v717_v42 = vmul.f32 %v2695_v17, %v695_v29  ;;  %v718_v32 = vmul.f32 %v2695_v17, %v696_v14  ;;  %v719_v52 = vmul.f32 %v2695_v17, %v697_v43  ;;  %v742_v8 = vld [vmem:[#allocation5 + $0x368] sm:$0xff]  ;;  %v3240_v29 = vld [vmem:[#allocation23_spill] sm:$0xff] }
  0x8f   :  { %v720_v53 = vmul.f32 %v2695_v17, %v698_v21  ;;  %v721_v62 = vmul.f32 %v2695_v17, %v699_v46  ;;  %v722_v0 = vmul.f32 %v2695_v17, %v700_v51  ;;  %v723_v10 = vadd.f32 %v709_v38, %v679_v20  ;;  %v743_v20 = vld [vmem:[#allocation5 + $0x370] sm:$0xff] }
  0x90   :  { %v724_v1 = vadd.f32 %v710_v7, %v680_v9  ;;  %v725_v13 = vadd.f32 %v711_v48, %v681_v6  ;;  %v726_v33 = vadd.f32 %v712_v35, %v682_v57  ;;  %v727_v60 = vadd.f32 %v713_v36, %v683_v18  ;;  %v744_v9 = vld [vmem:[#allocation5 + $0x378] sm:$0x3]  ;;  %v3239_v6 = vld [vmem:[#allocation16_spill] sm:$0xff] }
  0x91   :  { %v728_v28 = vadd.f32 %v714_v54, %v684_v45  ;;  %v729_v56 = vadd.f32 %v715_v61, %v685_v50  ;;  %v748_v22 = vrot.slane %v2520_v31, %v2526_v34  ;;  %v730_v39 = vadd.f32 %v716_v12, %v686_v25 }
  0x92   :  { %v731_v40 = vadd.f32 %v717_v42, %v687_v55  ;;  %v732_v3 = vadd.f32 %v718_v32, %v688_v58  ;;  %v752_v17 = vrot.slane %v2532_v37, %v2526_v34  ;;  %v733_v16 = vadd.f32 %v719_v52, %v689_v24  ;;  %v783_v32 = vld [vmem:[#allocation5 + $0x388] sm:$0xff]  ;;  %v784_v52 = vld [vmem:[#allocation5 + $0x390] sm:$0xff] }
  0x93   :  { %v734_v4 = vadd.f32 %v720_v53, %v690_v44  ;;  %v735_v5 = vadd.f32 %v721_v62, %v691_v23  ;;  %v736_v11 = vadd.f32 %v722_v0, %v692_v30  ;;  %v792_v57 = vrot.slane %v3239_v6, %v2491_v15  ;;  %v782_v23 = vld [vmem:[#allocation5 + $0x380] sm:$0xff]  ;;  %v785_v53 = vld [vmem:[#allocation5 + $0x398] sm:$0xff] }
  0x94   :  { %v796_v14 = vrot.slane %v3240_v29, %v2491_v15  ;;  %v2735_v43 = vrot.slane %v3239_v6, %v2496_v19  ;;  %v2739_v18 = vrot.slane %v3240_v29, %v2496_v19  ;;  %v753_v45 = vmul.f32 %v748_v22, %v738_v49 }
  0x95   :  { %v754_v50 = vmul.f32 %v748_v22, %v739_v47  ;;  %v755_v25 = vmul.f32 %v748_v22, %v740_v63  ;;  %v756_v21 = vmul.f32 %v748_v22, %v741_v59  ;;  %v757_v46 = vmul.f32 %v748_v22, %v742_v8 }
  0x96   :  { %v758_v51 = vmul.f32 %v748_v22, %v743_v20  ;;  %v759_v55 = vmul.f32 %v748_v22, %v744_v9  ;;  %v760_v58 = vmul.f32 %v752_v17, %v738_v49  ;;  %v761_v24 = vmul.f32 %v752_v17, %v739_v47  ;;  %v786_v47 = vld [vmem:[#allocation5 + $0x3a0] sm:$0xff] }
  0x97   :  { %v762_v44 = vmul.f32 %v752_v17, %v740_v63  ;;  %v763_v38 = vmul.f32 %v752_v17, %v741_v59  ;;  %v764_v7 = vmul.f32 %v752_v17, %v742_v8  ;;  %v765_v48 = vmul.f32 %v752_v17, %v743_v20  ;;  %v787_v63 = vld [vmem:[#allocation5 + $0x3a8] sm:$0xff]  ;;  %v788_v59 = vld [vmem:[#allocation5 + $0x3b0] sm:$0x3] }
  0x98   :  { %v766_v35 = vmul.f32 %v752_v17, %v744_v9  ;;  %v2743_v36 = vrot.slane %v3239_v6, %v3237_v41  ;;  %v2747_v54 = vrot.slane %v3240_v29, %v3237_v41  ;;  %v767_v61 = vadd.f32 %v753_v45, %v723_v10 }
  0x99   :  { %v768_v30 = vadd.f32 %v754_v50, %v724_v1  ;;  %v769_v12 = vadd.f32 %v755_v25, %v725_v13  ;;  %v770_v42 = vadd.f32 %v756_v21, %v726_v33  ;;  %v771_v62 = vadd.f32 %v757_v46, %v727_v60 }
  0x9a   :  { %v772_v0 = vadd.f32 %v758_v51, %v728_v28  ;;  %v773_v49 = vadd.f32 %v759_v55, %v729_v56  ;;  %v774_v22 = vadd.f32 %v760_v58, %v730_v39  ;;  %v775_v17 = vadd.f32 %v761_v24, %v731_v40  ;;  %v826_v40 = vld [vmem:[#allocation5 + $0x3b8] sm:$0xff]  ;;  %v827_v58 = vld [vmem:[#allocation5 + $0x3c0] sm:$0xff]  ;;  %v828_v24 = vld [vmem:[#allocation5 + $0x3c8] sm:$0xff] }
  0x9b   :  { %v776_v8 = vadd.f32 %v762_v44, %v732_v3  ;;  %v777_v20 = vadd.f32 %v763_v38, %v733_v16  ;;  %v778_v9 = vadd.f32 %v764_v7, %v734_v4  ;;  %v797_v37 = vmul.f32 %v792_v57, %v782_v23  ;;  %v829_v44 = vld [vmem:[#allocation5 + $0x3d0] sm:$0xff] }
  0x9c   :  { %v798_v31 = vmul.f32 %v792_v57, %v783_v32  ;;  %v799_v10 = vmul.f32 %v792_v57, %v784_v52  ;;  %v800_v1 = vmul.f32 %v792_v57, %v785_v53  ;;  %v801_v13 = vmul.f32 %v792_v57, %v786_v47 }
  0x9d   :  { %v802_v33 = vmul.f32 %v792_v57, %v787_v63  ;;  %v803_v45 = vmul.f32 %v792_v57, %v788_v59  ;;  %v804_v50 = vmul.f32 %v796_v14, %v782_v23  ;;  %v805_v25 = vmul.f32 %v796_v14, %v783_v32  ;;  %v830_v32 = vld [vmem:[#allocation5 + $0x3d8] sm:$0xff] }
  0x9e   :  { %v806_v60 = vmul.f32 %v796_v14, %v784_v52  ;;  %v807_v28 = vmul.f32 %v796_v14, %v785_v53  ;;  %v808_v56 = vmul.f32 %v796_v14, %v786_v47  ;;  %v779_v39 = vadd.f32 %v765_v48, %v735_v5  ;;  %v831_v52 = vld [vmem:[#allocation5 + $0x3e0] sm:$0xff]  ;;  %v832_v53 = vld [vmem:[#allocation5 + $0x3e8] sm:$0x3] }
  0x9f   :  { %v780_v21 = vadd.f32 %v766_v35, %v736_v11  ;;  %v809_v46 = vmul.f32 %v796_v14, %v787_v63  ;;  %v810_v51 = vmul.f32 %v796_v14, %v788_v59  ;;  %v811_v3 = vadd.f32 %v797_v37, %v767_v61 }
  0xa0   :  { %v812_v16 = vadd.f32 %v798_v31, %v768_v30  ;;  %v813_v4 = vadd.f32 %v799_v10, %v769_v12  ;;  %v814_v55 = vadd.f32 %v800_v1, %v770_v42  ;;  %v815_v38 = vadd.f32 %v801_v13, %v771_v62  ;;  %v871_v13 = vld [vmem:[#allocation5 + $0x3f8] sm:$0xff] }
  0xa1   :  { %v816_v7 = vadd.f32 %v802_v33, %v772_v0  ;;  %v817_v57 = vadd.f32 %v803_v45, %v773_v49  ;;  %v818_v23 = vadd.f32 %v804_v50, %v774_v22  ;;  %v819_v47 = vadd.f32 %v805_v25, %v775_v17  ;;  %v872_v33 = vld [vmem:[#allocation5 + $0x400] sm:$0xff]  ;;  %v873_v45 = vld [vmem:[#allocation5 + $0x408] sm:$0xff] }
  0xa2   :  { %v820_v5 = vadd.f32 %v806_v60, %v776_v8  ;;  %v821_v11 = vadd.f32 %v807_v28, %v777_v20  ;;  %v822_v48 = vadd.f32 %v808_v56, %v778_v9  ;;  %v841_v14 = vmul.f32 %v2735_v43, %v826_v40  ;;  %v870_v20 = vld [vmem:[#allocation5 + $0x3f0] sm:$0xff] }
  0xa3   :  { %v842_v31 = vmul.f32 %v2735_v43, %v827_v58  ;;  %v843_v37 = vmul.f32 %v2735_v43, %v828_v24  ;;  %v844_v35 = vmul.f32 %v2735_v43, %v829_v44  ;;  %v845_v61 = vmul.f32 %v2735_v43, %v830_v32  ;;  %v874_v56 = vld [vmem:[#allocation5 + $0x410] sm:$0xff] }
  0xa4   :  { %v846_v30 = vmul.f32 %v2735_v43, %v831_v52  ;;  %v847_v12 = vmul.f32 %v2735_v43, %v832_v53  ;;  %v848_v42 = vmul.f32 %v2739_v18, %v826_v40  ;;  %v849_v62 = vmul.f32 %v2739_v18, %v827_v58  ;;  %v875_v40 = vld [vmem:[#allocation5 + $0x418] sm:$0xff] }
  0xa5   :  { %v850_v0 = vmul.f32 %v2739_v18, %v828_v24  ;;  %v851_v49 = vmul.f32 %v2739_v18, %v829_v44  ;;  %v852_v22 = vmul.f32 %v2739_v18, %v830_v32  ;;  %v823_v63 = vadd.f32 %v809_v46, %v779_v39  ;;  %v876_v39 = vld [vmem:[#allocation5 + $0x420] sm:$0x3] }
  0xa6   :  { %v824_v59 = vadd.f32 %v810_v51, %v780_v21  ;;  %v853_v17 = vmul.f32 %v2739_v18, %v831_v52  ;;  %v854_v8 = vmul.f32 %v2739_v18, %v832_v53  ;;  %v855_v9 = vadd.f32 %v841_v14, %v811_v3 }
  0xa7   :  { %v856_v10 = vadd.f32 %v842_v31, %v812_v16  ;;  %v857_v43 = vadd.f32 %v843_v37, %v813_v4  ;;  %v858_v1 = vadd.f32 %v844_v35, %v814_v55  ;;  %v859_v50 = vadd.f32 %v845_v61, %v815_v38  ;;  %v914_v61 = vld [vmem:[#allocation5 + $0x428] sm:$0xff] }
  0xa8   :  { %v860_v25 = vadd.f32 %v846_v30, %v816_v7  ;;  %v861_v60 = vadd.f32 %v847_v12, %v817_v57  ;;  %v862_v28 = vadd.f32 %v848_v42, %v818_v23  ;;  %v863_v21 = vadd.f32 %v849_v62, %v819_v47 }
  0xa9   :  { %v864_v46 = vadd.f32 %v850_v0, %v820_v5  ;;  %v865_v51 = vadd.f32 %v851_v49, %v821_v11  ;;  %v866_v58 = vadd.f32 %v852_v22, %v822_v48  ;;  %v885_v18 = vmul.f32 %v2743_v36, %v870_v20  ;;  %v915_v0 = vld [vmem:[#allocation5 + $0x430] sm:$0xff]  ;;  %v916_v49 = vld [vmem:[#allocation5 + $0x438] sm:$0xff]  ;;  %v917_v22 = vld [vmem:[#allocation5 + $0x440] sm:$0xff] }
  0xaa   :  { %v886_v3 = vmul.f32 %v2743_v36, %v871_v13  ;;  %v887_v16 = vmul.f32 %v2743_v36, %v872_v33  ;;  %v888_v4 = vmul.f32 %v2743_v36, %v873_v45  ;;  %v867_v55 = vadd.f32 %v853_v17, %v823_v63 }
  0xab   :  { %v889_v24 = vmul.f32 %v2743_v36, %v874_v56  ;;  %v890_v44 = vmul.f32 %v2743_v36, %v875_v40  ;;  %v891_v38 = vmul.f32 %v2743_v36, %v876_v39  ;;  %v868_v7 = vadd.f32 %v854_v8, %v824_v59 }
  0xac   :  { %v892_v57 = vmul.f32 %v2747_v54, %v870_v20  ;;  %v893_v23 = vmul.f32 %v2747_v54, %v871_v13  ;;  %v894_v32 = vmul.f32 %v2747_v54, %v872_v33  ;;  %v895_v52 = vmul.f32 %v2747_v54, %v873_v45  ;;  %v918_v20 = vld [vmem:[#allocation5 + $0x448] sm:$0xff] }
  0xad   :  { %v896_v53 = vmul.f32 %v2747_v54, %v874_v56  ;;  %v897_v47 = vmul.f32 %v2747_v54, %v875_v40  ;;  %v898_v5 = vmul.f32 %v2747_v54, %v876_v39  ;;  %v899_v11 = vadd.f32 %v885_v18, %v855_v9  ;;  %v919_v9 = vld [vmem:[#allocation5 + $0x450] sm:$0xff] }
  0xae   :  { %v900_v48 = vadd.f32 %v886_v3, %v856_v10  ;;  %v901_v14 = vadd.f32 %v887_v16, %v857_v43  ;;  %v902_v31 = vadd.f32 %v888_v4, %v858_v1  ;;  %v903_v36 = vadd.f32 %v889_v24, %v859_v50  ;;  %v920_v10 = vld [vmem:[#allocation5 + $0x458] sm:$0x3]  ;;  %v958_v16 = vld [vmem:[#allocation5 + $0x460] sm:$0xff] }
  0xaf   :  { %v904_v37 = vadd.f32 %v890_v44, %v860_v25  ;;  %v905_v35 = vadd.f32 %v891_v38, %v861_v60  ;;  %v924_v30 = vrot.slane %v3239_v6, %v3238_v2  ;;  %v906_v12 = vadd.f32 %v892_v57, %v862_v28  ;;  %v3241_v4 = vld [vmem:[#allocation17_spill] sm:$0xff] }
  0xb0   :  { %v907_v42 = vadd.f32 %v893_v23, %v863_v21  ;;  %v908_v62 = vadd.f32 %v894_v32, %v864_v46  ;;  %v928_v54 = vrot.slane %v3240_v29, %v3238_v2  ;;  %v909_v63 = vadd.f32 %v895_v52, %v865_v51  ;;  %v959_v23 = vld [vmem:[#allocation5 + $0x468] sm:$0xff]  ;;  %v960_v32 = vld [vmem:[#allocation5 + $0x470] sm:$0xff]  ;;  %v961_v52 = vld [vmem:[#allocation5 + $0x478] sm:$0xff] }
  0xb1   :  { %v910_v59 = vadd.f32 %v896_v53, %v866_v58  ;;  %v911_v17 = vadd.f32 %v897_v47, %v867_v55  ;;  %v912_v8 = vadd.f32 %v898_v5, %v868_v7  ;;  %v968_v43 = vrot.slane %v3239_v6, %v2507_v26 }
  0xb2   :  { %v972_v1 = vrot.slane %v3240_v29, %v2507_v26  ;;  %v2787_v13 = vrot.slane %v3239_v6, %v2509_v27  ;;  %v2791_v33 = vrot.slane %v3240_v29, %v2509_v27  ;;  %v929_v45 = vmul.f32 %v924_v30, %v914_v61 }
  0xb3   :  { %v930_v50 = vmul.f32 %v924_v30, %v915_v0  ;;  %v931_v25 = vmul.f32 %v924_v30, %v916_v49  ;;  %v932_v60 = vmul.f32 %v924_v30, %v917_v22  ;;  %v933_v28 = vmul.f32 %v924_v30, %v918_v20 }
  0xb4   :  { %v934_v56 = vmul.f32 %v924_v30, %v919_v9  ;;  %v935_v40 = vmul.f32 %v924_v30, %v920_v10  ;;  %v936_v39 = vmul.f32 %v928_v54, %v914_v61  ;;  %v937_v21 = vmul.f32 %v928_v54, %v915_v0  ;;  %v962_v30 = vld [vmem:[#allocation5 + $0x480] sm:$0xff]  ;;  %v963_v0 = vld [vmem:[#allocation5 + $0x488] sm:$0xff] }
  0xb5   :  { %v938_v46 = vmul.f32 %v928_v54, %v916_v49  ;;  %v939_v51 = vmul.f32 %v928_v54, %v917_v22  ;;  %v940_v58 = vmul.f32 %v928_v54, %v918_v20  ;;  %v941_v18 = vmul.f32 %v928_v54, %v919_v9  ;;  %v964_v49 = vld [vmem:[#allocation5 + $0x490] sm:$0x3] }
  0xb6   :  { %v942_v3 = vmul.f32 %v928_v54, %v920_v10  ;;  %v2795_v55 = vrot.slane %v3239_v6, %v3241_v4  ;;  %v2799_v24 = vrot.slane %v3240_v29, %v3241_v4  ;;  %v943_v44 = vadd.f32 %v929_v45, %v899_v11 }
  0xb7   :  { %v944_v38 = vadd.f32 %v930_v50, %v900_v48  ;;  %v945_v7 = vadd.f32 %v931_v25, %v901_v14  ;;  %v946_v57 = vadd.f32 %v932_v60, %v902_v31  ;;  %v947_v53 = vadd.f32 %v933_v28, %v903_v36 }
  0xb8   :  { %v948_v47 = vadd.f32 %v934_v56, %v904_v37  ;;  %v949_v5 = vadd.f32 %v935_v40, %v905_v35  ;;  %v950_v61 = vadd.f32 %v936_v39, %v906_v12  ;;  %v951_v22 = vadd.f32 %v937_v21, %v907_v42  ;;  %v1002_v42 = vld [vmem:[#allocation5 + $0x498] sm:$0xff]  ;;  %v1003_v39 = vld [vmem:[#allocation5 + $0x4a0] sm:$0xff]  ;;  %v1004_v21 = vld [vmem:[#allocation5 + $0x4a8] sm:$0xff] }
  0xb9   :  { %v952_v54 = vadd.f32 %v938_v46, %v908_v62  ;;  %v953_v20 = vadd.f32 %v939_v51, %v909_v63  ;;  %v954_v9 = vadd.f32 %v940_v58, %v910_v59  ;;  %v973_v10 = vmul.f32 %v968_v43, %v958_v16  ;;  %v1005_v46 = vld [vmem:[#allocation5 + $0x4b0] sm:$0xff] }
  0xba   :  { %v974_v4 = vmul.f32 %v968_v43, %v959_v23  ;;  %v975_v11 = vmul.f32 %v968_v43, %v960_v32  ;;  %v976_v48 = vmul.f32 %v968_v43, %v961_v52  ;;  %v977_v14 = vmul.f32 %v968_v43, %v962_v30 }
  0xbb   :  { %v978_v31 = vmul.f32 %v968_v43, %v963_v0  ;;  %v979_v45 = vmul.f32 %v968_v43, %v964_v49  ;;  %v980_v50 = vmul.f32 %v972_v1, %v958_v16  ;;  %v981_v25 = vmul.f32 %v972_v1, %v959_v23  ;;  %v1006_v23 = vld [vmem:[#allocation5 + $0x4b8] sm:$0xff] }
  0xbc   :  { %v982_v36 = vmul.f32 %v972_v1, %v960_v32  ;;  %v983_v37 = vmul.f32 %v972_v1, %v961_v52  ;;  %v984_v35 = vmul.f32 %v972_v1, %v962_v30  ;;  %v955_v12 = vadd.f32 %v941_v18, %v911_v17  ;;  %v1007_v32 = vld [vmem:[#allocation5 + $0x4c0] sm:$0xff]  ;;  %v1008_v52 = vld [vmem:[#allocation5 + $0x4c8] sm:$0x3] }
  0xbd   :  { %v956_v60 = vadd.f32 %v942_v3, %v912_v8  ;;  %v985_v28 = vmul.f32 %v972_v1, %v963_v0  ;;  %v986_v56 = vmul.f32 %v972_v1, %v964_v49  ;;  %v987_v62 = vadd.f32 %v973_v10, %v943_v44 }
  0xbe   :  { %v988_v63 = vadd.f32 %v974_v4, %v944_v38  ;;  %v989_v59 = vadd.f32 %v975_v11, %v945_v7  ;;  %v990_v40 = vadd.f32 %v976_v48, %v946_v57  ;;  %v991_v51 = vadd.f32 %v977_v14, %v947_v53  ;;  %v1047_v14 = vld [vmem:[#allocation5 + $0x4d8] sm:$0xff] }
  0xbf   :  { %v992_v58 = vadd.f32 %v978_v31, %v948_v47  ;;  %v993_v43 = vadd.f32 %v979_v45, %v949_v5  ;;  %v994_v16 = vadd.f32 %v980_v50, %v950_v61  ;;  %v995_v30 = vadd.f32 %v981_v25, %v951_v22  ;;  %v1048_v31 = vld [vmem:[#allocation5 + $0x4e0] sm:$0xff]  ;;  %v1049_v45 = vld [vmem:[#allocation5 + $0x4e8] sm:$0xff] }
  0xc0   :  { %v996_v17 = vadd.f32 %v982_v36, %v952_v54  ;;  %v997_v8 = vadd.f32 %v983_v37, %v953_v20  ;;  %v998_v18 = vadd.f32 %v984_v35, %v954_v9  ;;  %v1017_v1 = vmul.f32 %v2787_v13, %v1002_v42  ;;  %v1046_v9 = vld [vmem:[#allocation5 + $0x4d0] sm:$0xff] }
  0xc1   :  { %v1018_v3 = vmul.f32 %v2787_v13, %v1003_v39  ;;  %v1019_v4 = vmul.f32 %v2787_v13, %v1004_v21  ;;  %v1020_v44 = vmul.f32 %v2787_v13, %v1005_v46  ;;  %v1021_v38 = vmul.f32 %v2787_v13, %v1006_v23  ;;  %v1050_v35 = vld [vmem:[#allocation5 + $0x4f0] sm:$0xff] }
  0xc2   :  { %v1022_v7 = vmul.f32 %v2787_v13, %v1007_v32  ;;  %v1023_v57 = vmul.f32 %v2787_v13, %v1008_v52  ;;  %v1024_v53 = vmul.f32 %v2791_v33, %v1002_v42  ;;  %v1025_v47 = vmul.f32 %v2791_v33, %v1003_v39  ;;  %v1051_v42 = vld [vmem:[#allocation5 + $0x4f8] sm:$0xff] }
  0xc3   :  { %v1026_v5 = vmul.f32 %v2791_v33, %v1004_v21  ;;  %v1027_v61 = vmul.f32 %v2791_v33, %v1005_v46  ;;  %v1028_v0 = vmul.f32 %v2791_v33, %v1006_v23  ;;  %v999_v49 = vadd.f32 %v985_v28, %v955_v12  ;;  %v1052_v12 = vld [vmem:[#allocation5 + $0x500] sm:$0x3] }
  0xc4   :  { %v1000_v22 = vadd.f32 %v986_v56, %v956_v60  ;;  %v1029_v54 = vmul.f32 %v2791_v33, %v1007_v32  ;;  %v1030_v20 = vmul.f32 %v2791_v33, %v1008_v52  ;;  %v1031_v10 = vadd.f32 %v1017_v1, %v987_v62 }
  0xc5   :  { %v1032_v11 = vadd.f32 %v1018_v3, %v988_v63  ;;  %v1033_v13 = vadd.f32 %v1019_v4, %v989_v59  ;;  %v1034_v48 = vadd.f32 %v1020_v44, %v990_v40  ;;  %v1035_v50 = vadd.f32 %v1021_v38, %v991_v51  ;;  %v1090_v38 = vld [vmem:[#allocation5 + $0x508] sm:$0xff] }
  0xc6   :  { %v1036_v25 = vadd.f32 %v1022_v7, %v992_v58  ;;  %v1037_v36 = vadd.f32 %v1023_v57, %v993_v43  ;;  %v1038_v37 = vadd.f32 %v1024_v53, %v994_v16  ;;  %v1039_v60 = vadd.f32 %v1025_v47, %v995_v30 }
  0xc7   :  { %v1040_v28 = vadd.f32 %v1026_v5, %v996_v17  ;;  %v1041_v56 = vadd.f32 %v1027_v61, %v997_v8  ;;  %v1042_v39 = vadd.f32 %v1028_v0, %v998_v18  ;;  %v1061_v33 = vmul.f32 %v2795_v55, %v1046_v9  ;;  %v1091_v5 = vld [vmem:[#allocation5 + $0x510] sm:$0xff]  ;;  %v1092_v61 = vld [vmem:[#allocation5 + $0x518] sm:$0xff]  ;;  %v1093_v0 = vld [vmem:[#allocation5 + $0x520] sm:$0xff] }
  0xc8   :  { %v1062_v62 = vmul.f32 %v2795_v55, %v1047_v14  ;;  %v1063_v63 = vmul.f32 %v2795_v55, %v1048_v31  ;;  %v1064_v59 = vmul.f32 %v2795_v55, %v1049_v45  ;;  %v1043_v40 = vadd.f32 %v1029_v54, %v999_v49 }
  0xc9   :  { %v1065_v21 = vmul.f32 %v2795_v55, %v1050_v35  ;;  %v1066_v46 = vmul.f32 %v2795_v55, %v1051_v42  ;;  %v1067_v51 = vmul.f32 %v2795_v55, %v1052_v12  ;;  %v1044_v58 = vadd.f32 %v1030_v20, %v1000_v22 }
  0xca   :  { %v1068_v43 = vmul.f32 %v2799_v24, %v1046_v9  ;;  %v1069_v16 = vmul.f32 %v2799_v24, %v1047_v14  ;;  %v1070_v23 = vmul.f32 %v2799_v24, %v1048_v31  ;;  %v1071_v32 = vmul.f32 %v2799_v24, %v1049_v45  ;;  %v1094_v9 = vld [vmem:[#allocation5 + $0x528] sm:$0xff]  ;;  %v3243_v14 = vld [vmem:[#allocation24_spill] sm:$0xff] }
  0xcb   :  { %v1072_v52 = vmul.f32 %v2799_v24, %v1050_v35  ;;  %v1073_v30 = vmul.f32 %v2799_v24, %v1051_v42  ;;  %v1074_v17 = vmul.f32 %v2799_v24, %v1052_v12  ;;  %v1075_v8 = vadd.f32 %v1061_v33, %v1031_v10  ;;  %v1095_v10 = vld [vmem:[#allocation5 + $0x530] sm:$0xff] }
  0xcc   :  { %v1076_v18 = vadd.f32 %v1062_v62, %v1032_v11  ;;  %v1077_v1 = vadd.f32 %v1063_v63, %v1033_v13  ;;  %v1078_v3 = vadd.f32 %v1064_v59, %v1034_v48  ;;  %v1079_v55 = vadd.f32 %v1065_v21, %v1035_v50  ;;  %v1096_v11 = vld [vmem:[#allocation5 + $0x538] sm:$0x3]  ;;  %v3242_v13 = vld [vmem:[#allocation18_spill] sm:$0xff] }
  0xcd   :  { %v1080_v4 = vadd.f32 %v1066_v46, %v1036_v25  ;;  %v1081_v44 = vadd.f32 %v1067_v51, %v1037_v36  ;;  %v1100_v7 = vrot.slane %v3239_v6, %v2526_v34  ;;  %v1082_v57 = vadd.f32 %v1068_v43, %v1038_v37 }
  0xce   :  { %v1083_v53 = vadd.f32 %v1069_v16, %v1039_v60  ;;  %v1084_v47 = vadd.f32 %v1070_v23, %v1040_v28  ;;  %v1104_v24 = vrot.slane %v3240_v29, %v2526_v34  ;;  %v1085_v49 = vadd.f32 %v1071_v32, %v1041_v56  ;;  %v1135_v23 = vld [vmem:[#allocation5 + $0x548] sm:$0xff]  ;;  %v1136_v32 = vld [vmem:[#allocation5 + $0x550] sm:$0xff] }
  0xcf   :  { %v1086_v22 = vadd.f32 %v1072_v52, %v1042_v39  ;;  %v1087_v54 = vadd.f32 %v1073_v30, %v1043_v40  ;;  %v1088_v20 = vadd.f32 %v1074_v17, %v1044_v58  ;;  %v1144_v48 = vrot.slane %v3242_v13, %v2491_v15  ;;  %v1134_v40 = vld [vmem:[#allocation5 + $0x540] sm:$0xff]  ;;  %v1137_v52 = vld [vmem:[#allocation5 + $0x558] sm:$0xff] }
  0xd0   :  { %v1148_v31 = vrot.slane %v3243_v14, %v2491_v15  ;;  %v2839_v45 = vrot.slane %v3242_v13, %v2496_v19  ;;  %v2843_v50 = vrot.slane %v3243_v14, %v2496_v19  ;;  %v1105_v25 = vmul.f32 %v1100_v7, %v1090_v38 }
  0xd1   :  { %v1106_v36 = vmul.f32 %v1100_v7, %v1091_v5  ;;  %v1107_v37 = vmul.f32 %v1100_v7, %v1092_v61  ;;  %v1108_v35 = vmul.f32 %v1100_v7, %v1093_v0  ;;  %v1109_v42 = vmul.f32 %v1100_v7, %v1094_v9 }
  0xd2   :  { %v1110_v12 = vmul.f32 %v1100_v7, %v1095_v10  ;;  %v1111_v60 = vmul.f32 %v1100_v7, %v1096_v11  ;;  %v1112_v28 = vmul.f32 %v1104_v24, %v1090_v38  ;;  %v1113_v56 = vmul.f32 %v1104_v24, %v1091_v5  ;;  %v1138_v5 = vld [vmem:[#allocation5 + $0x560] sm:$0xff] }
  0xd3   :  { %v1114_v39 = vmul.f32 %v1104_v24, %v1092_v61  ;;  %v1115_v33 = vmul.f32 %v1104_v24, %v1093_v0  ;;  %v1116_v62 = vmul.f32 %v1104_v24, %v1094_v9  ;;  %v1117_v63 = vmul.f32 %v1104_v24, %v1095_v10  ;;  %v1139_v61 = vld [vmem:[#allocation5 + $0x568] sm:$0xff]  ;;  %v1140_v0 = vld [vmem:[#allocation5 + $0x570] sm:$0x3] }
  0xd4   :  { %v1118_v59 = vmul.f32 %v1104_v24, %v1096_v11  ;;  %v2847_v21 = vrot.slane %v3242_v13, %v3237_v41  ;;  %v2851_v46 = vrot.slane %v3243_v14, %v3237_v41  ;;  %v1119_v51 = vadd.f32 %v1105_v25, %v1075_v8 }
  0xd5   :  { %v1120_v58 = vadd.f32 %v1106_v36, %v1076_v18  ;;  %v1121_v43 = vadd.f32 %v1107_v37, %v1077_v1  ;;  %v1122_v16 = vadd.f32 %v1108_v35, %v1078_v3  ;;  %v1123_v30 = vadd.f32 %v1109_v42, %v1079_v55 }
  0xd6   :  { %v1124_v17 = vadd.f32 %v1110_v12, %v1080_v4  ;;  %v1125_v38 = vadd.f32 %v1111_v60, %v1081_v44  ;;  %v1126_v7 = vadd.f32 %v1112_v28, %v1082_v57  ;;  %v1127_v24 = vadd.f32 %v1113_v56, %v1083_v53  ;;  %v1178_v53 = vld [vmem:[#allocation5 + $0x578] sm:$0xff]  ;;  %v1179_v28 = vld [vmem:[#allocation5 + $0x580] sm:$0xff]  ;;  %v1180_v56 = vld [vmem:[#allocation5 + $0x588] sm:$0xff] }
  0xd7   :  { %v1128_v9 = vadd.f32 %v1114_v39, %v1084_v47  ;;  %v1129_v10 = vadd.f32 %v1115_v33, %v1085_v49  ;;  %v1130_v11 = vadd.f32 %v1116_v62, %v1086_v22  ;;  %v1149_v29 = vmul.f32 %v1144_v48, %v1134_v40  ;;  %v1181_v39 = vld [vmem:[#allocation5 + $0x590] sm:$0xff] }
  0xd8   :  { %v1150_v6 = vmul.f32 %v1144_v48, %v1135_v23  ;;  %v1151_v8 = vmul.f32 %v1144_v48, %v1136_v32  ;;  %v1152_v18 = vmul.f32 %v1144_v48, %v1137_v52  ;;  %v1153_v1 = vmul.f32 %v1144_v48, %v1138_v5 }
  0xd9   :  { %v1154_v3 = vmul.f32 %v1144_v48, %v1139_v61  ;;  %v1155_v25 = vmul.f32 %v1144_v48, %v1140_v0  ;;  %v1156_v36 = vmul.f32 %v1148_v31, %v1134_v40  ;;  %v1157_v37 = vmul.f32 %v1148_v31, %v1135_v23  ;;  %v1182_v23 = vld [vmem:[#allocation5 + $0x598] sm:$0xff] }
  0xda   :  { %v1158_v55 = vmul.f32 %v1148_v31, %v1136_v32  ;;  %v1159_v4 = vmul.f32 %v1148_v31, %v1137_v52  ;;  %v1160_v44 = vmul.f32 %v1148_v31, %v1138_v5  ;;  %v1131_v57 = vadd.f32 %v1117_v63, %v1087_v54  ;;  %v1183_v32 = vld [vmem:[#allocation5 + $0x5a0] sm:$0xff]  ;;  %v1184_v52 = vld [vmem:[#allocation5 + $0x5a8] sm:$0x3] }
  0xdb   :  { %v1132_v35 = vadd.f32 %v1118_v59, %v1088_v20  ;;  %v1161_v42 = vmul.f32 %v1148_v31, %v1139_v61  ;;  %v1162_v12 = vmul.f32 %v1148_v31, %v1140_v0  ;;  %v1163_v47 = vadd.f32 %v1149_v29, %v1119_v51 }
  0xdc   :  { %v1164_v49 = vadd.f32 %v1150_v6, %v1120_v58  ;;  %v1165_v22 = vadd.f32 %v1151_v8, %v1121_v43  ;;  %v1166_v60 = vadd.f32 %v1152_v18, %v1122_v16  ;;  %v1167_v33 = vadd.f32 %v1153_v1, %v1123_v30  ;;  %v1223_v1 = vld [vmem:[#allocation5 + $0x5b8] sm:$0xff] }
  0xdd   :  { %v1168_v62 = vadd.f32 %v1154_v3, %v1124_v17  ;;  %v1169_v48 = vadd.f32 %v1155_v25, %v1125_v38  ;;  %v1170_v40 = vadd.f32 %v1156_v36, %v1126_v7  ;;  %v1171_v5 = vadd.f32 %v1157_v37, %v1127_v24  ;;  %v1224_v3 = vld [vmem:[#allocation5 + $0x5c0] sm:$0xff]  ;;  %v1225_v25 = vld [vmem:[#allocation5 + $0x5c8] sm:$0xff] }
  0xde   :  { %v1172_v54 = vadd.f32 %v1158_v55, %v1128_v9  ;;  %v1173_v20 = vadd.f32 %v1159_v4, %v1129_v10  ;;  %v1174_v63 = vadd.f32 %v1160_v44, %v1130_v11  ;;  %v1193_v31 = vmul.f32 %v2839_v45, %v1178_v53  ;;  %v1222_v10 = vld [vmem:[#allocation5 + $0x5b0] sm:$0xff] }
  0xdf   :  { %v1194_v6 = vmul.f32 %v2839_v45, %v1179_v28  ;;  %v1195_v29 = vmul.f32 %v2839_v45, %v1180_v56  ;;  %v1196_v59 = vmul.f32 %v2839_v45, %v1181_v39  ;;  %v1197_v51 = vmul.f32 %v2839_v45, %v1182_v23  ;;  %v1226_v44 = vld [vmem:[#allocation5 + $0x5d0] sm:$0xff] }
  0xe0   :  { %v1198_v58 = vmul.f32 %v2839_v45, %v1183_v32  ;;  %v1199_v43 = vmul.f32 %v2839_v45, %v1184_v52  ;;  %v1200_v16 = vmul.f32 %v2843_v50, %v1178_v53  ;;  %v1201_v30 = vmul.f32 %v2843_v50, %v1179_v28  ;;  %v1227_v53 = vld [vmem:[#allocation5 + $0x5d8] sm:$0xff] }
  0xe1   :  { %v1202_v17 = vmul.f32 %v2843_v50, %v1180_v56  ;;  %v1203_v38 = vmul.f32 %v2843_v50, %v1181_v39  ;;  %v1204_v7 = vmul.f32 %v2843_v50, %v1182_v23  ;;  %v1175_v61 = vadd.f32 %v1161_v42, %v1131_v57  ;;  %v1228_v57 = vld [vmem:[#allocation5 + $0x5e0] sm:$0x3] }
  0xe2   :  { %v1176_v0 = vadd.f32 %v1162_v12, %v1132_v35  ;;  %v1205_v24 = vmul.f32 %v2843_v50, %v1183_v32  ;;  %v1206_v9 = vmul.f32 %v2843_v50, %v1184_v52  ;;  %v1207_v11 = vadd.f32 %v1193_v31, %v1163_v47 }
  0xe3   :  { %v1208_v8 = vadd.f32 %v1194_v6, %v1164_v49  ;;  %v1209_v45 = vadd.f32 %v1195_v29, %v1165_v22  ;;  %v1210_v18 = vadd.f32 %v1196_v59, %v1166_v60  ;;  %v1211_v36 = vadd.f32 %v1197_v51, %v1167_v33  ;;  %v1266_v51 = vld [vmem:[#allocation5 + $0x5e8] sm:$0xff] }
  0xe4   :  { %v1212_v37 = vadd.f32 %v1198_v58, %v1168_v62  ;;  %v1213_v55 = vadd.f32 %v1199_v43, %v1169_v48  ;;  %v1214_v4 = vadd.f32 %v1200_v16, %v1170_v40  ;;  %v1215_v35 = vadd.f32 %v1201_v30, %v1171_v5 }
  0xe5   :  { %v1216_v42 = vadd.f32 %v1202_v17, %v1172_v54  ;;  %v1217_v12 = vadd.f32 %v1203_v38, %v1173_v20  ;;  %v1218_v28 = vadd.f32 %v1204_v7, %v1174_v63  ;;  %v1237_v50 = vmul.f32 %v2847_v21, %v1222_v10  ;;  %v1267_v17 = vld [vmem:[#allocation5 + $0x5f0] sm:$0xff]  ;;  %v1268_v38 = vld [vmem:[#allocation5 + $0x5f8] sm:$0xff]  ;;  %v1269_v7 = vld [vmem:[#allocation5 + $0x600] sm:$0xff] }
  0xe6   :  { %v1238_v47 = vmul.f32 %v2847_v21, %v1223_v1  ;;  %v1239_v49 = vmul.f32 %v2847_v21, %v1224_v3  ;;  %v1240_v22 = vmul.f32 %v2847_v21, %v1225_v25  ;;  %v1219_v60 = vadd.f32 %v1205_v24, %v1175_v61 }
  0xe7   :  { %v1241_v56 = vmul.f32 %v2847_v21, %v1226_v44  ;;  %v1242_v39 = vmul.f32 %v2847_v21, %v1227_v53  ;;  %v1243_v33 = vmul.f32 %v2847_v21, %v1228_v57  ;;  %v1220_v62 = vadd.f32 %v1206_v9, %v1176_v0 }
  0xe8   :  { %v1244_v48 = vmul.f32 %v2851_v46, %v1222_v10  ;;  %v1245_v40 = vmul.f32 %v2851_v46, %v1223_v1  ;;  %v1246_v23 = vmul.f32 %v2851_v46, %v1224_v3  ;;  %v1247_v32 = vmul.f32 %v2851_v46, %v1225_v25  ;;  %v1270_v10 = vld [vmem:[#allocation5 + $0x608] sm:$0xff] }
  0xe9   :  { %v1248_v52 = vmul.f32 %v2851_v46, %v1226_v44  ;;  %v1249_v5 = vmul.f32 %v2851_v46, %v1227_v53  ;;  %v1250_v54 = vmul.f32 %v2851_v46, %v1228_v57  ;;  %v1251_v20 = vadd.f32 %v1237_v50, %v1207_v11  ;;  %v1271_v11 = vld [vmem:[#allocation5 + $0x610] sm:$0xff] }
  0xea   :  { %v1252_v63 = vadd.f32 %v1238_v47, %v1208_v8  ;;  %v1253_v31 = vadd.f32 %v1239_v49, %v1209_v45  ;;  %v1254_v6 = vadd.f32 %v1240_v22, %v1210_v18  ;;  %v1255_v21 = vadd.f32 %v1241_v56, %v1211_v36  ;;  %v1272_v8 = vld [vmem:[#allocation5 + $0x618] sm:$0x3]  ;;  %v1310_v49 = vld [vmem:[#allocation5 + $0x620] sm:$0xff] }
  0xeb   :  { %v1256_v29 = vadd.f32 %v1242_v39, %v1212_v37  ;;  %v1257_v59 = vadd.f32 %v1243_v33, %v1213_v55  ;;  %v1276_v58 = vrot.slane %v3242_v13, %v3238_v2  ;;  %v1258_v43 = vadd.f32 %v1244_v48, %v1214_v4  ;;  %v3244_v22 = vld [vmem:[#allocation17_spill] sm:$0xff] }
  0xec   :  { %v1259_v16 = vadd.f32 %v1245_v40, %v1215_v35  ;;  %v1260_v30 = vadd.f32 %v1246_v23, %v1216_v42  ;;  %v1280_v46 = vrot.slane %v3243_v14, %v3238_v2  ;;  %v1261_v61 = vadd.f32 %v1247_v32, %v1217_v12  ;;  %v1311_v40 = vld [vmem:[#allocation5 + $0x628] sm:$0xff]  ;;  %v1312_v23 = vld [vmem:[#allocation5 + $0x630] sm:$0xff]  ;;  %v1313_v32 = vld [vmem:[#allocation5 + $0x638] sm:$0xff] }
  0xed   :  { %v1262_v0 = vadd.f32 %v1248_v52, %v1218_v28  ;;  %v1263_v24 = vadd.f32 %v1249_v5, %v1219_v60  ;;  %v1264_v9 = vadd.f32 %v1250_v54, %v1220_v62  ;;  %v1320_v45 = vrot.slane %v3242_v13, %v2507_v26 }
  0xee   :  { %v1324_v18 = vrot.slane %v3243_v14, %v2507_v26  ;;  %v2891_v1 = vrot.slane %v3242_v13, %v2509_v27  ;;  %v2895_v3 = vrot.slane %v3243_v14, %v2509_v27  ;;  %v1281_v25 = vmul.f32 %v1276_v58, %v1266_v51 }
  0xef   :  { %v1282_v36 = vmul.f32 %v1276_v58, %v1267_v17  ;;  %v1283_v37 = vmul.f32 %v1276_v58, %v1268_v38  ;;  %v1284_v55 = vmul.f32 %v1276_v58, %v1269_v7  ;;  %v1285_v4 = vmul.f32 %v1276_v58, %v1270_v10 }
  0xf0   :  { %v1286_v44 = vmul.f32 %v1276_v58, %v1271_v11  ;;  %v1287_v53 = vmul.f32 %v1276_v58, %v1272_v8  ;;  %v1288_v57 = vmul.f32 %v1280_v46, %v1266_v51  ;;  %v1289_v35 = vmul.f32 %v1280_v46, %v1267_v17  ;;  %v1314_v58 = vld [vmem:[#allocation5 + $0x640] sm:$0xff]  ;;  %v1315_v17 = vld [vmem:[#allocation5 + $0x648] sm:$0xff] }
  0xf1   :  { %v1290_v42 = vmul.f32 %v1280_v46, %v1268_v38  ;;  %v1291_v12 = vmul.f32 %v1280_v46, %v1269_v7  ;;  %v1292_v28 = vmul.f32 %v1280_v46, %v1270_v10  ;;  %v1293_v50 = vmul.f32 %v1280_v46, %v1271_v11  ;;  %v1316_v38 = vld [vmem:[#allocation5 + $0x650] sm:$0x3] }
  0xf2   :  { %v1294_v47 = vmul.f32 %v1280_v46, %v1272_v8  ;;  %v2899_v60 = vrot.slane %v3242_v13, %v3244_v22  ;;  %v2903_v56 = vrot.slane %v3243_v14, %v3244_v22  ;;  %v1295_v39 = vadd.f32 %v1281_v25, %v1251_v20 }
  0xf3   :  { %v1296_v33 = vadd.f32 %v1282_v36, %v1252_v63  ;;  %v1297_v62 = vadd.f32 %v1283_v37, %v1253_v31  ;;  %v1298_v48 = vadd.f32 %v1284_v55, %v1254_v6  ;;  %v1299_v52 = vadd.f32 %v1285_v4, %v1255_v21 }
  0xf4   :  { %v1300_v5 = vadd.f32 %v1286_v44, %v1256_v29  ;;  %v1301_v54 = vadd.f32 %v1287_v53, %v1257_v59  ;;  %v1302_v51 = vadd.f32 %v1288_v57, %v1258_v43  ;;  %v1303_v7 = vadd.f32 %v1289_v35, %v1259_v16  ;;  %v1354_v16 = vld [vmem:[#allocation5 + $0x658] sm:$0xff]  ;;  %v1355_v57 = vld [vmem:[#allocation5 + $0x660] sm:$0xff]  ;;  %v1356_v35 = vld [vmem:[#allocation5 + $0x668] sm:$0xff] }
  0xf5   :  { %v1304_v46 = vadd.f32 %v1290_v42, %v1260_v30  ;;  %v1305_v10 = vadd.f32 %v1291_v12, %v1261_v61  ;;  %v1306_v11 = vadd.f32 %v1292_v28, %v1262_v0  ;;  %v1325_v8 = vmul.f32 %v1320_v45, %v1310_v49  ;;  %v1357_v42 = vld [vmem:[#allocation5 + $0x670] sm:$0xff] }
  0xf6   :  { %v1326_v22 = vmul.f32 %v1320_v45, %v1311_v40  ;;  %v1327_v20 = vmul.f32 %v1320_v45, %v1312_v23  ;;  %v1328_v63 = vmul.f32 %v1320_v45, %v1313_v32  ;;  %v1329_v31 = vmul.f32 %v1320_v45, %v1314_v58 }
  0xf7   :  { %v1330_v6 = vmul.f32 %v1320_v45, %v1315_v17  ;;  %v1331_v25 = vmul.f32 %v1320_v45, %v1316_v38  ;;  %v1332_v36 = vmul.f32 %v1324_v18, %v1310_v49  ;;  %v1333_v37 = vmul.f32 %v1324_v18, %v1311_v40  ;;  %v1358_v40 = vld [vmem:[#allocation5 + $0x678] sm:$0xff] }
  0xf8   :  { %v1334_v21 = vmul.f32 %v1324_v18, %v1312_v23  ;;  %v1335_v29 = vmul.f32 %v1324_v18, %v1313_v32  ;;  %v1336_v59 = vmul.f32 %v1324_v18, %v1314_v58  ;;  %v1307_v43 = vadd.f32 %v1293_v50, %v1263_v24  ;;  %v1359_v23 = vld [vmem:[#allocation5 + $0x680] sm:$0xff]  ;;  %v1360_v32 = vld [vmem:[#allocation5 + $0x688] sm:$0x3] }
  0xf9   :  { %v1308_v55 = vadd.f32 %v1294_v47, %v1264_v9  ;;  %v1337_v4 = vmul.f32 %v1324_v18, %v1315_v17  ;;  %v1338_v44 = vmul.f32 %v1324_v18, %v1316_v38  ;;  %v1339_v30 = vadd.f32 %v1325_v8, %v1295_v39 }
  0xfa   :  { %v1340_v61 = vadd.f32 %v1326_v22, %v1296_v33  ;;  %v1341_v0 = vadd.f32 %v1327_v20, %v1297_v62  ;;  %v1342_v53 = vadd.f32 %v1328_v63, %v1298_v48  ;;  %v1343_v12 = vadd.f32 %v1329_v31, %v1299_v52  ;;  %v1399_v31 = vld [vmem:[#allocation5 + $0x698] sm:$0xff] }
  0xfb   :  { %v1344_v28 = vadd.f32 %v1330_v6, %v1300_v5  ;;  %v1345_v45 = vadd.f32 %v1331_v25, %v1301_v54  ;;  %v1346_v49 = vadd.f32 %v1332_v36, %v1302_v51  ;;  %v1347_v58 = vadd.f32 %v1333_v37, %v1303_v7  ;;  %v1400_v6 = vld [vmem:[#allocation5 + $0x6a0] sm:$0xff]  ;;  %v1401_v25 = vld [vmem:[#allocation5 + $0x6a8] sm:$0xff] }
  0xfc   :  { %v1348_v24 = vadd.f32 %v1334_v21, %v1304_v46  ;;  %v1349_v9 = vadd.f32 %v1335_v29, %v1305_v10  ;;  %v1350_v50 = vadd.f32 %v1336_v59, %v1306_v11  ;;  %v1369_v18 = vmul.f32 %v2891_v1, %v1354_v16  ;;  %v1398_v11 = vld [vmem:[#allocation5 + $0x690] sm:$0xff] }
  0xfd   :  { %v1370_v47 = vmul.f32 %v2891_v1, %v1355_v57  ;;  %v1371_v22 = vmul.f32 %v2891_v1, %v1356_v35  ;;  %v1372_v39 = vmul.f32 %v2891_v1, %v1357_v42  ;;  %v1373_v33 = vmul.f32 %v2891_v1, %v1358_v40  ;;  %v1402_v59 = vld [vmem:[#allocation5 + $0x6b0] sm:$0xff] }
  0xfe   :  { %v1374_v62 = vmul.f32 %v2891_v1, %v1359_v23  ;;  %v1375_v48 = vmul.f32 %v2891_v1, %v1360_v32  ;;  %v1376_v52 = vmul.f32 %v2895_v3, %v1354_v16  ;;  %v1377_v5 = vmul.f32 %v2895_v3, %v1355_v57  ;;  %v1403_v16 = vld [vmem:[#allocation5 + $0x6b8] sm:$0xff] }
  0xff   :  { %v1378_v54 = vmul.f32 %v2895_v3, %v1356_v35  ;;  %v1379_v51 = vmul.f32 %v2895_v3, %v1357_v42  ;;  %v1380_v17 = vmul.f32 %v2895_v3, %v1358_v40  ;;  %v1351_v38 = vadd.f32 %v1337_v4, %v1307_v43  ;;  %v1404_v43 = vld [vmem:[#allocation5 + $0x6c0] sm:$0x3] }
 0x100   :  { %v1352_v7 = vadd.f32 %v1338_v44, %v1308_v55  ;;  %v1381_v46 = vmul.f32 %v2895_v3, %v1359_v23  ;;  %v1382_v10 = vmul.f32 %v2895_v3, %v1360_v32  ;;  %v1383_v8 = vadd.f32 %v1369_v18, %v1339_v30 }
 0x101   :  { %v1384_v20 = vadd.f32 %v1370_v47, %v1340_v61  ;;  %v1385_v1 = vadd.f32 %v1371_v22, %v1341_v0  ;;  %v1386_v63 = vadd.f32 %v1372_v39, %v1342_v53  ;;  %v1387_v36 = vadd.f32 %v1373_v33, %v1343_v12  ;;  %v1442_v33 = vld [vmem:[#allocation5 + $0x6c8] sm:$0xff] }
 0x102   :  { %v1388_v37 = vadd.f32 %v1374_v62, %v1344_v28  ;;  %v1389_v21 = vadd.f32 %v1375_v48, %v1345_v45  ;;  %v1390_v29 = vadd.f32 %v1376_v52, %v1346_v49  ;;  %v1391_v55 = vadd.f32 %v1377_v5, %v1347_v58 }
 0x103   :  { %v1392_v4 = vadd.f32 %v1378_v54, %v1348_v24  ;;  %v1393_v44 = vadd.f32 %v1379_v51, %v1349_v9  ;;  %v1394_v57 = vadd.f32 %v1380_v17, %v1350_v50  ;;  %v1413_v3 = vmul.f32 %v2899_v60, %v1398_v11  ;;  %v1443_v54 = vld [vmem:[#allocation5 + $0x6d0] sm:$0xff]  ;;  %v1444_v51 = vld [vmem:[#allocation5 + $0x6d8] sm:$0xff]  ;;  %v1445_v17 = vld [vmem:[#allocation5 + $0x6e0] sm:$0xff] }
 0x104   :  { %v1414_v30 = vmul.f32 %v2899_v60, %v1399_v31  ;;  %v1415_v61 = vmul.f32 %v2899_v60, %v1400_v6  ;;  %v1416_v0 = vmul.f32 %v2899_v60, %v1401_v25  ;;  %v1395_v53 = vadd.f32 %v1381_v46, %v1351_v38 }
 0x105   :  { %v1417_v35 = vmul.f32 %v2899_v60, %v1402_v59  ;;  %v1418_v42 = vmul.f32 %v2899_v60, %v1403_v16  ;;  %v1419_v12 = vmul.f32 %v2899_v60, %v1404_v43  ;;  %v1396_v28 = vadd.f32 %v1382_v10, %v1352_v7 }
 0x106   :  { %v1420_v45 = vmul.f32 %v2903_v56, %v1398_v11  ;;  %v1421_v49 = vmul.f32 %v2903_v56, %v1399_v31  ;;  %v1422_v40 = vmul.f32 %v2903_v56, %v1400_v6  ;;  %v1423_v23 = vmul.f32 %v2903_v56, %v1401_v25  ;;  %v1446_v11 = vld [vmem:[#allocation5 + $0x6e8] sm:$0xff] }
 0x107   :  { %v1424_v32 = vmul.f32 %v2903_v56, %v1402_v59  ;;  %v1425_v58 = vmul.f32 %v2903_v56, %v1403_v16  ;;  %v1426_v24 = vmul.f32 %v2903_v56, %v1404_v43  ;;  %v1427_v9 = vadd.f32 %v1413_v3, %v1383_v8  ;;  %v1447_v8 = vld [vmem:[#allocation5 + $0x6f0] sm:$0xff]  ;;  %v3246_v31 = vld [vmem:[#allocation25_spill] sm:$0xff] }
 0x108   :  { %v1428_v50 = vadd.f32 %v1414_v30, %v1384_v20  ;;  %v1429_v18 = vadd.f32 %v1415_v61, %v1385_v1  ;;  %v1430_v47 = vadd.f32 %v1416_v0, %v1386_v63  ;;  %v1431_v60 = vadd.f32 %v1417_v35, %v1387_v36  ;;  %v1448_v20 = vld [vmem:[#allocation5 + $0x6f8] sm:$0x3] }
 0x109   :  { %v1432_v22 = vadd.f32 %v1418_v42, %v1388_v37  ;;  %v1433_v39 = vadd.f32 %v1419_v12, %v1389_v21  ;;  %v1452_v62 = vrot.slane %v3242_v13, %v2526_v34  ;;  %v1434_v48 = vadd.f32 %v1420_v45, %v1390_v29  ;;  %v3245_v1 = vld [vmem:[#allocation19_spill] sm:$0xff] }
 0x10a   :  { %v1435_v52 = vadd.f32 %v1421_v49, %v1391_v55  ;;  %v1436_v5 = vadd.f32 %v1422_v40, %v1392_v4  ;;  %v1456_v56 = vrot.slane %v3243_v14, %v2526_v34  ;;  %v1437_v38 = vadd.f32 %v1423_v23, %v1393_v44  ;;  %v1487_v40 = vld [vmem:[#allocation5 + $0x708] sm:$0xff]  ;;  %v1488_v23 = vld [vmem:[#allocation5 + $0x710] sm:$0xff] }
 0x10b   :  { %v1438_v7 = vadd.f32 %v1424_v32, %v1394_v57  ;;  %v1439_v46 = vadd.f32 %v1425_v58, %v1395_v53  ;;  %v1440_v10 = vadd.f32 %v1426_v24, %v1396_v28  ;;  %v1496_v63 = vrot.slane %v3245_v1, %v2491_v15  ;;  %v1486_v53 = vld [vmem:[#allocation5 + $0x700] sm:$0xff]  ;;  %v1489_v32 = vld [vmem:[#allocation5 + $0x718] sm:$0xff] }
 0x10c   :  { %v1500_v6 = vrot.slane %v3246_v31, %v2491_v15  ;;  %v2943_v25 = vrot.slane %v3245_v1, %v2496_v19  ;;  %v2947_v36 = vrot.slane %v3246_v31, %v2496_v19  ;;  %v1457_v37 = vmul.f32 %v1452_v62, %v1442_v33 }
 0x10d   :  { %v1458_v21 = vmul.f32 %v1452_v62, %v1443_v54  ;;  %v1459_v29 = vmul.f32 %v1452_v62, %v1444_v51  ;;  %v1460_v59 = vmul.f32 %v1452_v62, %v1445_v17  ;;  %v1461_v16 = vmul.f32 %v1452_v62, %v1446_v11 }
 0x10e   :  { %v1462_v43 = vmul.f32 %v1452_v62, %v1447_v8  ;;  %v1463_v55 = vmul.f32 %v1452_v62, %v1448_v20  ;;  %v1464_v4 = vmul.f32 %v1456_v56, %v1442_v33  ;;  %v1465_v44 = vmul.f32 %v1456_v56, %v1443_v54  ;;  %v1490_v54 = vld [vmem:[#allocation5 + $0x720] sm:$0xff] }
 0x10f   :  { %v1466_v57 = vmul.f32 %v1456_v56, %v1444_v51  ;;  %v1467_v3 = vmul.f32 %v1456_v56, %v1445_v17  ;;  %v1468_v30 = vmul.f32 %v1456_v56, %v1446_v11  ;;  %v1469_v61 = vmul.f32 %v1456_v56, %v1447_v8  ;;  %v1491_v51 = vld [vmem:[#allocation5 + $0x728] sm:$0xff]  ;;  %v1492_v17 = vld [vmem:[#allocation5 + $0x730] sm:$0x3] }
 0x110   :  { %v1470_v0 = vmul.f32 %v1456_v56, %v1448_v20  ;;  %v2951_v35 = vrot.slane %v3245_v1, %v3237_v41  ;;  %v2955_v42 = vrot.slane %v3246_v31, %v3237_v41  ;;  %v1471_v12 = vadd.f32 %v1457_v37, %v1427_v9 }
 0x111   :  { %v1472_v28 = vadd.f32 %v1458_v21, %v1428_v50  ;;  %v1473_v45 = vadd.f32 %v1459_v29, %v1429_v18  ;;  %v1474_v49 = vadd.f32 %v1460_v59, %v1430_v47  ;;  %v1475_v58 = vadd.f32 %v1461_v16, %v1431_v60 }
 0x112   :  { %v1476_v24 = vadd.f32 %v1462_v43, %v1432_v22  ;;  %v1477_v33 = vadd.f32 %v1463_v55, %v1433_v39  ;;  %v1478_v62 = vadd.f32 %v1464_v4, %v1434_v48  ;;  %v1479_v56 = vadd.f32 %v1465_v44, %v1435_v52  ;;  %v1530_v52 = vld [vmem:[#allocation5 + $0x738] sm:$0xff]  ;;  %v1531_v4 = vld [vmem:[#allocation5 + $0x740] sm:$0xff]  ;;  %v1532_v44 = vld [vmem:[#allocation5 + $0x748] sm:$0xff] }
 0x113   :  { %v1480_v11 = vadd.f32 %v1466_v57, %v1436_v5  ;;  %v1481_v8 = vadd.f32 %v1467_v3, %v1437_v38  ;;  %v1482_v20 = vadd.f32 %v1468_v30, %v1438_v7  ;;  %v1501_v14 = vmul.f32 %v1496_v63, %v1486_v53  ;;  %v1533_v57 = vld [vmem:[#allocation5 + $0x750] sm:$0xff] }
 0x114   :  { %v1502_v13 = vmul.f32 %v1496_v63, %v1487_v40  ;;  %v1503_v9 = vmul.f32 %v1496_v63, %v1488_v23  ;;  %v1504_v50 = vmul.f32 %v1496_v63, %v1489_v32  ;;  %v1505_v18 = vmul.f32 %v1496_v63, %v1490_v54 }
 0x115   :  { %v1506_v47 = vmul.f32 %v1496_v63, %v1491_v51  ;;  %v1507_v37 = vmul.f32 %v1496_v63, %v1492_v17  ;;  %v1508_v21 = vmul.f32 %v1500_v6, %v1486_v53  ;;  %v1509_v29 = vmul.f32 %v1500_v6, %v1487_v40  ;;  %v1534_v40 = vld [vmem:[#allocation5 + $0x758] sm:$0xff] }
 0x116   :  { %v1510_v60 = vmul.f32 %v1500_v6, %v1488_v23  ;;  %v1511_v22 = vmul.f32 %v1500_v6, %v1489_v32  ;;  %v1512_v39 = vmul.f32 %v1500_v6, %v1490_v54  ;;  %v1483_v48 = vadd.f32 %v1469_v61, %v1439_v46  ;;  %v1535_v23 = vld [vmem:[#allocation5 + $0x760] sm:$0xff]  ;;  %v1536_v32 = vld [vmem:[#allocation5 + $0x768] sm:$0x3] }
 0x117   :  { %v1484_v59 = vadd.f32 %v1470_v0, %v1440_v10  ;;  %v1513_v16 = vmul.f32 %v1500_v6, %v1491_v51  ;;  %v1514_v43 = vmul.f32 %v1500_v6, %v1492_v17  ;;  %v1515_v5 = vadd.f32 %v1501_v14, %v1471_v12 }
 0x118   :  { %v1516_v38 = vadd.f32 %v1502_v13, %v1472_v28  ;;  %v1517_v7 = vadd.f32 %v1503_v9, %v1473_v45  ;;  %v1518_v55 = vadd.f32 %v1504_v50, %v1474_v49  ;;  %v1519_v3 = vadd.f32 %v1505_v18, %v1475_v58  ;;  %v1575_v18 = vld [vmem:[#allocation5 + $0x778] sm:$0xff] }
 0x119   :  { %v1520_v30 = vadd.f32 %v1506_v47, %v1476_v24  ;;  %v1521_v63 = vadd.f32 %v1507_v37, %v1477_v33  ;;  %v1522_v53 = vadd.f32 %v1508_v21, %v1478_v62  ;;  %v1523_v54 = vadd.f32 %v1509_v29, %v1479_v56  ;;  %v1576_v47 = vld [vmem:[#allocation5 + $0x780] sm:$0xff]  ;;  %v1577_v37 = vld [vmem:[#allocation5 + $0x788] sm:$0xff] }
 0x11a   :  { %v1524_v46 = vadd.f32 %v1510_v60, %v1480_v11  ;;  %v1525_v10 = vadd.f32 %v1511_v22, %v1481_v8  ;;  %v1526_v61 = vadd.f32 %v1512_v39, %v1482_v20  ;;  %v1545_v6 = vmul.f32 %v2943_v25, %v1530_v52  ;;  %v1574_v8 = vld [vmem:[#allocation5 + $0x770] sm:$0xff] }
 0x11b   :  { %v1546_v13 = vmul.f32 %v2943_v25, %v1531_v4  ;;  %v1547_v14 = vmul.f32 %v2943_v25, %v1532_v44  ;;  %v1548_v0 = vmul.f32 %v2943_v25, %v1533_v57  ;;  %v1549_v12 = vmul.f32 %v2943_v25, %v1534_v40  ;;  %v1578_v39 = vld [vmem:[#allocation5 + $0x790] sm:$0xff] }
 0x11c   :  { %v1550_v28 = vmul.f32 %v2943_v25, %v1535_v23  ;;  %v1551_v45 = vmul.f32 %v2943_v25, %v1536_v32  ;;  %v1552_v49 = vmul.f32 %v2947_v36, %v1530_v52  ;;  %v1553_v58 = vmul.f32 %v2947_v36, %v1531_v4  ;;  %v1579_v52 = vld [vmem:[#allocation5 + $0x798] sm:$0xff] }
 0x11d   :  { %v1554_v24 = vmul.f32 %v2947_v36, %v1532_v44  ;;  %v1555_v33 = vmul.f32 %v2947_v36, %v1533_v57  ;;  %v1556_v62 = vmul.f32 %v2947_v36, %v1534_v40  ;;  %v1527_v51 = vadd.f32 %v1513_v16, %v1483_v48  ;;  %v1580_v48 = vld [vmem:[#allocation5 + $0x7a0] sm:$0x3] }
 0x11e   :  { %v1528_v17 = vadd.f32 %v1514_v43, %v1484_v59  ;;  %v1557_v56 = vmul.f32 %v2947_v36, %v1535_v23  ;;  %v1558_v11 = vmul.f32 %v2947_v36, %v1536_v32  ;;  %v1559_v20 = vadd.f32 %v1545_v6, %v1515_v5 }
 0x11f   :  { %v1560_v9 = vadd.f32 %v1546_v13, %v1516_v38  ;;  %v1561_v25 = vadd.f32 %v1547_v14, %v1517_v7  ;;  %v1562_v50 = vadd.f32 %v1548_v0, %v1518_v55  ;;  %v1563_v21 = vadd.f32 %v1549_v12, %v1519_v3  ;;  %v1618_v12 = vld [vmem:[#allocation5 + $0x7a8] sm:$0xff] }
 0x120   :  { %v1564_v29 = vadd.f32 %v1550_v28, %v1520_v30  ;;  %v1565_v60 = vadd.f32 %v1551_v45, %v1521_v63  ;;  %v1566_v22 = vadd.f32 %v1552_v49, %v1522_v53  ;;  %v1567_v59 = vadd.f32 %v1553_v58, %v1523_v54 }
 0x121   :  { %v1568_v16 = vadd.f32 %v1554_v24, %v1524_v46  ;;  %v1569_v43 = vadd.f32 %v1555_v33, %v1525_v10  ;;  %v1570_v4 = vadd.f32 %v1556_v62, %v1526_v61  ;;  %v1589_v36 = vmul.f32 %v2951_v35, %v1574_v8  ;;  %v1619_v24 = vld [vmem:[#allocation5 + $0x7b0] sm:$0xff]  ;;  %v1620_v33 = vld [vmem:[#allocation5 + $0x7b8] sm:$0xff]  ;;  %v1621_v62 = vld [vmem:[#allocation5 + $0x7c0] sm:$0xff] }
 0x122   :  { %v1590_v5 = vmul.f32 %v2951_v35, %v1575_v18  ;;  %v1591_v38 = vmul.f32 %v2951_v35, %v1576_v47  ;;  %v1592_v7 = vmul.f32 %v2951_v35, %v1577_v37  ;;  %v1571_v55 = vadd.f32 %v1557_v56, %v1527_v51 }
 0x123   :  { %v1593_v44 = vmul.f32 %v2951_v35, %v1578_v39  ;;  %v1594_v57 = vmul.f32 %v2951_v35, %v1579_v52  ;;  %v1595_v3 = vmul.f32 %v2951_v35, %v1580_v48  ;;  %v1572_v30 = vadd.f32 %v1558_v11, %v1528_v17 }
 0x124   :  { %v1596_v63 = vmul.f32 %v2955_v42, %v1574_v8  ;;  %v1597_v53 = vmul.f32 %v2955_v42, %v1575_v18  ;;  %v1598_v40 = vmul.f32 %v2955_v42, %v1576_v47  ;;  %v1599_v23 = vmul.f32 %v2955_v42, %v1577_v37  ;;  %v1622_v8 = vld [vmem:[#allocation5 + $0x7c8] sm:$0xff] }
 0x125   :  { %v1600_v32 = vmul.f32 %v2955_v42, %v1578_v39  ;;  %v1601_v54 = vmul.f32 %v2955_v42, %v1579_v52  ;;  %v1602_v46 = vmul.f32 %v2955_v42, %v1580_v48  ;;  %v1603_v10 = vadd.f32 %v1589_v36, %v1559_v20  ;;  %v1623_v20 = vld [vmem:[#allocation5 + $0x7d0] sm:$0xff] }
 0x126   :  { %v1604_v61 = vadd.f32 %v1590_v5, %v1560_v9  ;;  %v1605_v6 = vadd.f32 %v1591_v38, %v1561_v25  ;;  %v1606_v13 = vadd.f32 %v1592_v7, %v1562_v50  ;;  %v1607_v35 = vadd.f32 %v1593_v44, %v1563_v21  ;;  %v1624_v9 = vld [vmem:[#allocation5 + $0x7d8] sm:$0x3]  ;;  %v1662_v38 = vld [vmem:[#allocation5 + $0x7e0] sm:$0xff] }
 0x127   :  { %v1608_v14 = vadd.f32 %v1594_v57, %v1564_v29  ;;  %v1609_v0 = vadd.f32 %v1595_v3, %v1565_v60  ;;  %v1628_v28 = vrot.slane %v3245_v1, %v3238_v2  ;;  %v1610_v45 = vadd.f32 %v1596_v63, %v1566_v22  ;;  %v3247_v7 = vld [vmem:[#allocation17_spill] sm:$0xff] }
 0x128   :  { %v1611_v49 = vadd.f32 %v1597_v53, %v1567_v59  ;;  %v1612_v58 = vadd.f32 %v1598_v40, %v1568_v16  ;;  %v1632_v42 = vrot.slane %v3246_v31, %v3238_v2  ;;  %v1613_v51 = vadd.f32 %v1599_v23, %v1569_v43  ;;  %v1663_v53 = vld [vmem:[#allocation5 + $0x7e8] sm:$0xff]  ;;  %v1664_v40 = vld [vmem:[#allocation5 + $0x7f0] sm:$0xff]  ;;  %v1665_v23 = vld [vmem:[#allocation5 + $0x7f8] sm:$0xff] }
 0x129   :  { %v1614_v17 = vadd.f32 %v1600_v32, %v1570_v4  ;;  %v1615_v56 = vadd.f32 %v1601_v54, %v1571_v55  ;;  %v1616_v11 = vadd.f32 %v1602_v46, %v1572_v30  ;;  %v1672_v25 = vrot.slane %v3245_v1, %v2507_v26 }
 0x12a   :  { %v1676_v50 = vrot.slane %v3246_v31, %v2507_v26  ;;  %v2995_v18 = vrot.slane %v3245_v1, %v2509_v27  ;;  %v2999_v47 = vrot.slane %v3246_v31, %v2509_v27  ;;  %v1633_v37 = vmul.f32 %v1628_v28, %v1618_v12 }
 0x12b   :  { %v1634_v21 = vmul.f32 %v1628_v28, %v1619_v24  ;;  %v1635_v29 = vmul.f32 %v1628_v28, %v1620_v33  ;;  %v1636_v60 = vmul.f32 %v1628_v28, %v1621_v62  ;;  %v1637_v22 = vmul.f32 %v1628_v28, %v1622_v8 }
 0x12c   :  { %v1638_v39 = vmul.f32 %v1628_v28, %v1623_v20  ;;  %v1639_v52 = vmul.f32 %v1628_v28, %v1624_v9  ;;  %v1640_v48 = vmul.f32 %v1632_v42, %v1618_v12  ;;  %v1641_v59 = vmul.f32 %v1632_v42, %v1619_v24  ;;  %v1666_v28 = vld [vmem:[#allocation5 + $0x800] sm:$0xff]  ;;  %v1667_v24 = vld [vmem:[#allocation5 + $0x808] sm:$0xff] }
 0x12d   :  { %v1642_v16 = vmul.f32 %v1632_v42, %v1620_v33  ;;  %v1643_v43 = vmul.f32 %v1632_v42, %v1621_v62  ;;  %v1644_v4 = vmul.f32 %v1632_v42, %v1622_v8  ;;  %v1645_v36 = vmul.f32 %v1632_v42, %v1623_v20  ;;  %v1668_v33 = vld [vmem:[#allocation5 + $0x810] sm:$0x3] }
 0x12e   :  { %v1646_v5 = vmul.f32 %v1632_v42, %v1624_v9  ;;  %v3003_v55 = vrot.slane %v3245_v1, %v3247_v7  ;;  %v3007_v44 = vrot.slane %v3246_v31, %v3247_v7  ;;  %v1647_v57 = vadd.f32 %v1633_v37, %v1603_v10 }
 0x12f   :  { %v1648_v3 = vadd.f32 %v1634_v21, %v1604_v61  ;;  %v1649_v30 = vadd.f32 %v1635_v29, %v1605_v6  ;;  %v1650_v63 = vadd.f32 %v1636_v60, %v1606_v13  ;;  %v1651_v32 = vadd.f32 %v1637_v22, %v1607_v35 }
 0x130   :  { %v1652_v54 = vadd.f32 %v1638_v39, %v1608_v14  ;;  %v1653_v46 = vadd.f32 %v1639_v52, %v1609_v0  ;;  %v1654_v12 = vadd.f32 %v1640_v48, %v1610_v45  ;;  %v1655_v62 = vadd.f32 %v1641_v59, %v1611_v49  ;;  %v1706_v49 = vld [vmem:[#allocation5 + $0x818] sm:$0xff]  ;;  %v1707_v48 = vld [vmem:[#allocation5 + $0x820] sm:$0xff]  ;;  %v1708_v59 = vld [vmem:[#allocation5 + $0x828] sm:$0xff] }
 0x131   :  { %v1656_v42 = vadd.f32 %v1642_v16, %v1612_v58  ;;  %v1657_v8 = vadd.f32 %v1643_v43, %v1613_v51  ;;  %v1658_v20 = vadd.f32 %v1644_v4, %v1614_v17  ;;  %v1677_v9 = vmul.f32 %v1672_v25, %v1662_v38  ;;  %v1709_v16 = vld [vmem:[#allocation5 + $0x830] sm:$0xff] }
 0x132   :  { %v1678_v7 = vmul.f32 %v1672_v25, %v1663_v53  ;;  %v1679_v10 = vmul.f32 %v1672_v25, %v1664_v40  ;;  %v1680_v61 = vmul.f32 %v1672_v25, %v1665_v23  ;;  %v1681_v6 = vmul.f32 %v1672_v25, %v1666_v28 }
 0x133   :  { %v1682_v13 = vmul.f32 %v1672_v25, %v1667_v24  ;;  %v1683_v37 = vmul.f32 %v1672_v25, %v1668_v33  ;;  %v1684_v21 = vmul.f32 %v1676_v50, %v1662_v38  ;;  %v1685_v29 = vmul.f32 %v1676_v50, %v1663_v53  ;;  %v1710_v53 = vld [vmem:[#allocation5 + $0x838] sm:$0xff] }
 0x134   :  { %v1686_v35 = vmul.f32 %v1676_v50, %v1664_v40  ;;  %v1687_v14 = vmul.f32 %v1676_v50, %v1665_v23  ;;  %v1688_v0 = vmul.f32 %v1676_v50, %v1666_v28  ;;  %v1659_v45 = vadd.f32 %v1645_v36, %v1615_v56  ;;  %v1711_v40 = vld [vmem:[#allocation5 + $0x840] sm:$0xff]  ;;  %v1712_v23 = vld [vmem:[#allocation5 + $0x848] sm:$0x3] }
 0x135   :  { %v1660_v60 = vadd.f32 %v1646_v5, %v1616_v11  ;;  %v1689_v22 = vmul.f32 %v1676_v50, %v1667_v24  ;;  %v1690_v39 = vmul.f32 %v1676_v50, %v1668_v33  ;;  %v1691_v58 = vadd.f32 %v1677_v9, %v1647_v57 }
 0x136   :  { %v1692_v51 = vadd.f32 %v1678_v7, %v1648_v3  ;;  %v1693_v17 = vadd.f32 %v1679_v10, %v1649_v30  ;;  %v1694_v52 = vadd.f32 %v1680_v61, %v1650_v63  ;;  %v1695_v43 = vadd.f32 %v1681_v6, %v1651_v32  ;;  %v1751_v6 = vld [vmem:[#allocation5 + $0x858] sm:$0xff] }
 0x137   :  { %v1696_v4 = vadd.f32 %v1682_v13, %v1652_v54  ;;  %v1697_v25 = vadd.f32 %v1683_v37, %v1653_v46  ;;  %v1698_v38 = vadd.f32 %v1684_v21, %v1654_v12  ;;  %v1699_v28 = vadd.f32 %v1685_v29, %v1655_v62  ;;  %v1752_v13 = vld [vmem:[#allocation5 + $0x860] sm:$0xff]  ;;  %v1753_v37 = vld [vmem:[#allocation5 + $0x868] sm:$0xff] }
 0x138   :  { %v1700_v56 = vadd.f32 %v1686_v35, %v1656_v42  ;;  %v1701_v11 = vadd.f32 %v1687_v14, %v1657_v8  ;;  %v1702_v36 = vadd.f32 %v1688_v0, %v1658_v20  ;;  %v1721_v50 = vmul.f32 %v2995_v18, %v1706_v49  ;;  %v1750_v20 = vld [vmem:[#allocation5 + $0x850] sm:$0xff] }
 0x139   :  { %v1722_v5 = vmul.f32 %v2995_v18, %v1707_v48  ;;  %v1723_v7 = vmul.f32 %v2995_v18, %v1708_v59  ;;  %v1724_v57 = vmul.f32 %v2995_v18, %v1709_v16  ;;  %v1725_v3 = vmul.f32 %v2995_v18, %v1710_v53  ;;  %v1754_v0 = vld [vmem:[#allocation5 + $0x870] sm:$0xff] }
 0x13a   :  { %v1726_v30 = vmul.f32 %v2995_v18, %v1711_v40  ;;  %v1727_v63 = vmul.f32 %v2995_v18, %v1712_v23  ;;  %v1728_v32 = vmul.f32 %v2999_v47, %v1706_v49  ;;  %v1729_v54 = vmul.f32 %v2999_v47, %v1707_v48  ;;  %v1755_v49 = vld [vmem:[#allocation5 + $0x878] sm:$0xff] }
 0x13b   :  { %v1730_v46 = vmul.f32 %v2999_v47, %v1708_v59  ;;  %v1731_v12 = vmul.f32 %v2999_v47, %v1709_v16  ;;  %v1732_v24 = vmul.f32 %v2999_v47, %v1710_v53  ;;  %v1703_v33 = vadd.f32 %v1689_v22, %v1659_v45  ;;  %v1756_v45 = vld [vmem:[#allocation5 + $0x880] sm:$0x3] }
 0x13c   :  { %v1704_v62 = vadd.f32 %v1690_v39, %v1660_v60  ;;  %v1733_v42 = vmul.f32 %v2999_v47, %v1711_v40  ;;  %v1734_v8 = vmul.f32 %v2999_v47, %v1712_v23  ;;  %v1735_v9 = vadd.f32 %v1721_v50, %v1691_v58 }
 0x13d   :  { %v1736_v10 = vadd.f32 %v1722_v5, %v1692_v51  ;;  %v1737_v18 = vadd.f32 %v1723_v7, %v1693_v17  ;;  %v1738_v61 = vadd.f32 %v1724_v57, %v1694_v52  ;;  %v1739_v21 = vadd.f32 %v1725_v3, %v1695_v43  ;;  %v1794_v3 = vld [vmem:[#allocation5 + $0x888] sm:$0xff] }
 0x13e   :  { %v1740_v29 = vadd.f32 %v1726_v30, %v1696_v4  ;;  %v1741_v35 = vadd.f32 %v1727_v63, %v1697_v25  ;;  %v1742_v14 = vadd.f32 %v1728_v32, %v1698_v38  ;;  %v1743_v60 = vadd.f32 %v1729_v54, %v1699_v28 }
 0x13f   :  { %v1744_v22 = vadd.f32 %v1730_v46, %v1700_v56  ;;  %v1745_v39 = vadd.f32 %v1731_v12, %v1701_v11  ;;  %v1746_v48 = vadd.f32 %v1732_v24, %v1702_v36  ;;  %v1765_v47 = vmul.f32 %v3003_v55, %v1750_v20  ;;  %v1795_v46 = vld [vmem:[#allocation5 + $0x890] sm:$0xff]  ;;  %v1796_v12 = vld [vmem:[#allocation5 + $0x898] sm:$0xff]  ;;  %v1797_v24 = vld [vmem:[#allocation5 + $0x8a0] sm:$0xff] }
 0x140   :  { %v1766_v58 = vmul.f32 %v3003_v55, %v1751_v6  ;;  %v1767_v51 = vmul.f32 %v3003_v55, %v1752_v13  ;;  %v1768_v17 = vmul.f32 %v3003_v55, %v1753_v37  ;;  %v1747_v52 = vadd.f32 %v1733_v42, %v1703_v33 }
 0x141   :  { %v1769_v59 = vmul.f32 %v3003_v55, %v1754_v0  ;;  %v1770_v16 = vmul.f32 %v3003_v55, %v1755_v49  ;;  %v1771_v43 = vmul.f32 %v3003_v55, %v1756_v45  ;;  %v1748_v4 = vadd.f32 %v1734_v8, %v1704_v62 }
 0x142   :  { %v1772_v25 = vmul.f32 %v3007_v44, %v1750_v20  ;;  %v1773_v38 = vmul.f32 %v3007_v44, %v1751_v6  ;;  %v1774_v53 = vmul.f32 %v3007_v44, %v1752_v13  ;;  %v1775_v40 = vmul.f32 %v3007_v44, %v1753_v37  ;;  %v1798_v20 = vld [vmem:[#allocation5 + $0x8a8] sm:$0xff] }
 0x143   :  { %v1776_v23 = vmul.f32 %v3007_v44, %v1754_v0  ;;  %v1777_v28 = vmul.f32 %v3007_v44, %v1755_v49  ;;  %v1778_v56 = vmul.f32 %v3007_v44, %v1756_v45  ;;  %v1779_v11 = vadd.f32 %v1765_v47, %v1735_v9  ;;  %v1799_v9 = vld [vmem:[#allocation5 + $0x8b0] sm:$0xff] }
 0x144   :  { %v1780_v36 = vadd.f32 %v1766_v58, %v1736_v10  ;;  %v1781_v50 = vadd.f32 %v1767_v51, %v1737_v18  ;;  %v1782_v5 = vadd.f32 %v1768_v17, %v1738_v61  ;;  %v1783_v55 = vadd.f32 %v1769_v59, %v1739_v21  ;;  %v1800_v10 = vld [vmem:[#allocation5 + $0x8b8] sm:$0x3]  ;;  %v3248_v18 = vld [vmem:[#allocation21_spill] sm:$0xff]  ;;  %v3249_v6 = vld [vmem:[#allocation26_spill] sm:$0xff] }
 0x145   :  { %v1784_v7 = vadd.f32 %v1770_v16, %v1740_v29  ;;  %v1785_v57 = vadd.f32 %v1771_v43, %v1741_v35  ;;  %v1804_v30 = vrot.slane %v3245_v1, %v2526_v34  ;;  %v1786_v63 = vadd.f32 %v1772_v25, %v1742_v14 }
 0x146   :  { %v1787_v32 = vadd.f32 %v1773_v38, %v1743_v60  ;;  %v1788_v54 = vadd.f32 %v1774_v53, %v1744_v22  ;;  %v1808_v44 = vrot.slane %v3246_v31, %v2526_v34  ;;  %v1789_v33 = vadd.f32 %v1775_v40, %v1745_v39  ;;  %v1839_v53 = vld [vmem:[#allocation5 + $0x8c8] sm:$0xff]  ;;  %v1840_v40 = vld [vmem:[#allocation5 + $0x8d0] sm:$0xff] }
 0x147   :  { %v1790_v62 = vadd.f32 %v1776_v23, %v1746_v48  ;;  %v1791_v42 = vadd.f32 %v1777_v28, %v1747_v52  ;;  %v1792_v8 = vadd.f32 %v1778_v56, %v1748_v4  ;;  %v1848_v61 = vrot.slane %v3248_v18, %v2491_v15  ;;  %v1838_v52 = vld [vmem:[#allocation5 + $0x8c0] sm:$0xff]  ;;  %v1841_v23 = vld [vmem:[#allocation5 + $0x8d8] sm:$0xff] }
 0x148   :  { %v1852_v13 = vrot.slane %v3249_v6, %v2491_v15  ;;  %v3047_v37 = vrot.slane %v3248_v18, %v2496_v19  ;;  %v3051_v21 = vrot.slane %v3249_v6, %v2496_v19  ;;  %v1809_v29 = vmul.f32 %v1804_v30, %v1794_v3 }
 0x149   :  { %v1810_v35 = vmul.f32 %v1804_v30, %v1795_v46  ;;  %v1811_v14 = vmul.f32 %v1804_v30, %v1796_v12  ;;  %v1812_v0 = vmul.f32 %v1804_v30, %v1797_v24  ;;  %v1813_v49 = vmul.f32 %v1804_v30, %v1798_v20 }
 0x14a   :  { %v1814_v45 = vmul.f32 %v1804_v30, %v1799_v9  ;;  %v1815_v60 = vmul.f32 %v1804_v30, %v1800_v10  ;;  %v1816_v22 = vmul.f32 %v1808_v44, %v1794_v3  ;;  %v1817_v39 = vmul.f32 %v1808_v44, %v1795_v46  ;;  %v1842_v46 = vld [vmem:[#allocation5 + $0x8e0] sm:$0xff] }
 0x14b   :  { %v1818_v48 = vmul.f32 %v1808_v44, %v1796_v12  ;;  %v1819_v47 = vmul.f32 %v1808_v44, %v1797_v24  ;;  %v1820_v58 = vmul.f32 %v1808_v44, %v1798_v20  ;;  %v1821_v51 = vmul.f32 %v1808_v44, %v1799_v9  ;;  %v1843_v12 = vld [vmem:[#allocation5 + $0x8e8] sm:$0xff]  ;;  %v1844_v24 = vld [vmem:[#allocation5 + $0x8f0] sm:$0x3] }
 0x14c   :  { %v1822_v17 = vmul.f32 %v1808_v44, %v1800_v10  ;;  %v3055_v59 = vrot.slane %v3248_v18, %v3237_v41  ;;  %v3059_v16 = vrot.slane %v3249_v6, %v3237_v41  ;;  %v1823_v43 = vadd.f32 %v1809_v29, %v1779_v11 }
 0x14d   :  { %v1824_v4 = vadd.f32 %v1810_v35, %v1780_v36  ;;  %v1825_v25 = vadd.f32 %v1811_v14, %v1781_v50  ;;  %v1826_v38 = vadd.f32 %v1812_v0, %v1782_v5  ;;  %v1827_v28 = vadd.f32 %v1813_v49, %v1783_v55 }
 0x14e   :  { %v1828_v56 = vadd.f32 %v1814_v45, %v1784_v7  ;;  %v1829_v3 = vadd.f32 %v1815_v60, %v1785_v57  ;;  %v1830_v30 = vadd.f32 %v1816_v22, %v1786_v63  ;;  %v1831_v44 = vadd.f32 %v1817_v39, %v1787_v32  ;;  %v1882_v32 = vld [vmem:[#allocation5 + $0x8f8] sm:$0xff]  ;;  %v1883_v22 = vld [vmem:[#allocation5 + $0x900] sm:$0xff]  ;;  %v1884_v39 = vld [vmem:[#allocation5 + $0x908] sm:$0xff] }
 0x14f   :  { %v1832_v20 = vadd.f32 %v1818_v48, %v1788_v54  ;;  %v1833_v9 = vadd.f32 %v1819_v47, %v1789_v33  ;;  %v1834_v10 = vadd.f32 %v1820_v58, %v1790_v62  ;;  %v1853_v41 = vmul.f32 %v1848_v61, %v1838_v52  ;;  %v1885_v48 = vld [vmem:[#allocation5 + $0x910] sm:$0xff] }
 0x150   :  { %v1854_v31 = vmul.f32 %v1848_v61, %v1839_v53  ;;  %v1855_v11 = vmul.f32 %v1848_v61, %v1840_v40  ;;  %v1856_v36 = vmul.f32 %v1848_v61, %v1841_v23  ;;  %v1857_v50 = vmul.f32 %v1848_v61, %v1842_v46 }
 0x151   :  { %v1858_v5 = vmul.f32 %v1848_v61, %v1843_v12  ;;  %v1859_v29 = vmul.f32 %v1848_v61, %v1844_v24  ;;  %v1860_v35 = vmul.f32 %v1852_v13, %v1838_v52  ;;  %v1861_v14 = vmul.f32 %v1852_v13, %v1839_v53  ;;  %v1886_v53 = vld [vmem:[#allocation5 + $0x918] sm:$0xff] }
 0x152   :  { %v1862_v55 = vmul.f32 %v1852_v13, %v1840_v40  ;;  %v1863_v7 = vmul.f32 %v1852_v13, %v1841_v23  ;;  %v1864_v57 = vmul.f32 %v1852_v13, %v1842_v46  ;;  %v1835_v63 = vadd.f32 %v1821_v51, %v1791_v42  ;;  %v1887_v40 = vld [vmem:[#allocation5 + $0x920] sm:$0xff]  ;;  %v1888_v23 = vld [vmem:[#allocation5 + $0x928] sm:$0x3] }
 0x153   :  { %v1836_v0 = vadd.f32 %v1822_v17, %v1792_v8  ;;  %v1865_v49 = vmul.f32 %v1852_v13, %v1843_v12  ;;  %v1866_v45 = vmul.f32 %v1852_v13, %v1844_v24  ;;  %v1867_v54 = vadd.f32 %v1853_v41, %v1823_v43 }
 0x154   :  { %v1868_v33 = vadd.f32 %v1854_v31, %v1824_v4  ;;  %v1869_v62 = vadd.f32 %v1855_v11, %v1825_v25  ;;  %v1870_v60 = vadd.f32 %v1856_v36, %v1826_v38  ;;  %v1871_v47 = vadd.f32 %v1857_v50, %v1827_v28  ;;  %v1927_v50 = vld [vmem:[#allocation5 + $0x938] sm:$0xff] }
 0x155   :  { %v1872_v58 = vadd.f32 %v1858_v5, %v1828_v56  ;;  %v1873_v61 = vadd.f32 %v1859_v29, %v1829_v3  ;;  %v1874_v52 = vadd.f32 %v1860_v35, %v1830_v30  ;;  %v1875_v46 = vadd.f32 %v1861_v14, %v1831_v44  ;;  %v1928_v5 = vld [vmem:[#allocation5 + $0x940] sm:$0xff]  ;;  %v1929_v29 = vld [vmem:[#allocation5 + $0x948] sm:$0xff] }
 0x156   :  { %v1876_v42 = vadd.f32 %v1862_v55, %v1832_v20  ;;  %v1877_v8 = vadd.f32 %v1863_v7, %v1833_v9  ;;  %v1878_v51 = vadd.f32 %v1864_v57, %v1834_v10  ;;  %v1897_v13 = vmul.f32 %v3047_v37, %v1882_v32  ;;  %v1926_v10 = vld [vmem:[#allocation5 + $0x930] sm:$0xff] }
 0x157   :  { %v1898_v31 = vmul.f32 %v3047_v37, %v1883_v22  ;;  %v1899_v17 = vmul.f32 %v3047_v37, %v1884_v39  ;;  %v1900_v43 = vmul.f32 %v3047_v37, %v1885_v48  ;;  %v1901_v4 = vmul.f32 %v3047_v37, %v1886_v53  ;;  %v1930_v57 = vld [vmem:[#allocation5 + $0x950] sm:$0xff] }
 0x158   :  { %v1902_v25 = vmul.f32 %v3047_v37, %v1887_v40  ;;  %v1903_v38 = vmul.f32 %v3047_v37, %v1888_v23  ;;  %v1904_v28 = vmul.f32 %v3051_v21, %v1882_v32  ;;  %v1905_v56 = vmul.f32 %v3051_v21, %v1883_v22  ;;  %v1931_v32 = vld [vmem:[#allocation5 + $0x958] sm:$0xff] }
 0x159   :  { %v1906_v3 = vmul.f32 %v3051_v21, %v1884_v39  ;;  %v1907_v30 = vmul.f32 %v3051_v21, %v1885_v48  ;;  %v1908_v12 = vmul.f32 %v3051_v21, %v1886_v53  ;;  %v1879_v24 = vadd.f32 %v1865_v49, %v1835_v63  ;;  %v1932_v63 = vld [vmem:[#allocation5 + $0x960] sm:$0x3] }
 0x15a   :  { %v1880_v44 = vadd.f32 %v1866_v45, %v1836_v0  ;;  %v1909_v20 = vmul.f32 %v3051_v21, %v1887_v40  ;;  %v1910_v9 = vmul.f32 %v3051_v21, %v1888_v23  ;;  %v1911_v41 = vadd.f32 %v1897_v13, %v1867_v54 }
 0x15b   :  { %v1912_v11 = vadd.f32 %v1898_v31, %v1868_v33  ;;  %v1913_v37 = vadd.f32 %v1899_v17, %v1869_v62  ;;  %v1914_v36 = vadd.f32 %v1900_v43, %v1870_v60  ;;  %v1915_v35 = vadd.f32 %v1901_v4, %v1871_v47  ;;  %v1970_v4 = vld [vmem:[#allocation5 + $0x968] sm:$0xff] }
 0x15c   :  { %v1916_v14 = vadd.f32 %v1902_v25, %v1872_v58  ;;  %v1917_v55 = vadd.f32 %v1903_v38, %v1873_v61  ;;  %v1918_v7 = vadd.f32 %v1904_v28, %v1874_v52  ;;  %v1919_v0 = vadd.f32 %v1905_v56, %v1875_v46 }
 0x15d   :  { %v1920_v49 = vadd.f32 %v1906_v3, %v1876_v42  ;;  %v1921_v45 = vadd.f32 %v1907_v30, %v1877_v8  ;;  %v1922_v22 = vadd.f32 %v1908_v12, %v1878_v51  ;;  %v1941_v21 = vmul.f32 %v3055_v59, %v1926_v10  ;;  %v1971_v3 = vld [vmem:[#allocation5 + $0x970] sm:$0xff]  ;;  %v1972_v30 = vld [vmem:[#allocation5 + $0x978] sm:$0xff]  ;;  %v1973_v12 = vld [vmem:[#allocation5 + $0x980] sm:$0xff] }
 0x15e   :  { %v1942_v54 = vmul.f32 %v3055_v59, %v1927_v50  ;;  %v1943_v33 = vmul.f32 %v3055_v59, %v1928_v5  ;;  %v1944_v62 = vmul.f32 %v3055_v59, %v1929_v29  ;;  %v1923_v60 = vadd.f32 %v1909_v20, %v1879_v24 }
 0x15f   :  { %v1945_v39 = vmul.f32 %v3055_v59, %v1930_v57  ;;  %v1946_v48 = vmul.f32 %v3055_v59, %v1931_v32  ;;  %v1947_v47 = vmul.f32 %v3055_v59, %v1932_v63  ;;  %v1924_v58 = vadd.f32 %v1910_v9, %v1880_v44 }
 0x160   :  { %v1948_v61 = vmul.f32 %v3059_v16, %v1926_v10  ;;  %v1949_v52 = vmul.f32 %v3059_v16, %v1927_v50  ;;  %v1950_v53 = vmul.f32 %v3059_v16, %v1928_v5  ;;  %v1951_v40 = vmul.f32 %v3059_v16, %v1929_v29  ;;  %v1974_v10 = vld [vmem:[#allocation5 + $0x988] sm:$0xff] }
 0x161   :  { %v1952_v23 = vmul.f32 %v3059_v16, %v1930_v57  ;;  %v1953_v46 = vmul.f32 %v3059_v16, %v1931_v32  ;;  %v1954_v42 = vmul.f32 %v3059_v16, %v1932_v63  ;;  %v1955_v8 = vadd.f32 %v1941_v21, %v1911_v41  ;;  %v1975_v41 = vld [vmem:[#allocation5 + $0x990] sm:$0xff]  ;;  %v2014_v21 = vld [vmem:[#allocation5 + $0x9a0] sm:$0xff] }
 0x162   :  { %v1956_v51 = vadd.f32 %v1942_v54, %v1912_v11  ;;  %v1957_v13 = vadd.f32 %v1943_v33, %v1913_v37  ;;  %v1958_v31 = vadd.f32 %v1944_v62, %v1914_v36  ;;  %v1959_v59 = vadd.f32 %v1945_v39, %v1915_v35  ;;  %v1976_v11 = vld [vmem:[#allocation5 + $0x998] sm:$0x3]  ;;  %v3250_v54 = vld [vmem:[#allocation17_spill] sm:$0xff] }
 0x163   :  { %v1960_v17 = vadd.f32 %v1946_v48, %v1916_v14  ;;  %v1961_v43 = vadd.f32 %v1947_v47, %v1917_v55  ;;  %v1980_v25 = vrot.slane %v3248_v18, %v3238_v2  ;;  %v1962_v38 = vadd.f32 %v1948_v61, %v1918_v7  ;;  %v2015_v47 = vld [vmem:[#allocation5 + $0x9a8] sm:$0xff]  ;;  %v2017_v61 = vld [vmem:[#allocation5 + $0x9b8] sm:$0xff] }
 0x164   :  { %v1963_v28 = vadd.f32 %v1949_v52, %v1919_v0  ;;  %v1964_v56 = vadd.f32 %v1950_v53, %v1920_v49  ;;  %v1984_v16 = vrot.slane %v3249_v6, %v3238_v2  ;;  %v1965_v24 = vadd.f32 %v1951_v40, %v1921_v45 }
 0x165   :  { %v1966_v44 = vadd.f32 %v1952_v23, %v1922_v22  ;;  %v1967_v20 = vadd.f32 %v1953_v46, %v1923_v60  ;;  %v1968_v9 = vadd.f32 %v1954_v42, %v1924_v58  ;;  %v2024_v37 = vrot.slane %v3248_v18, %v2507_v26  ;;  %v2016_v58 = vld [vmem:[#allocation5 + $0x9b0] sm:$0xff]  ;;  %v2018_v46 = vld [vmem:[#allocation5 + $0x9c0] sm:$0xff]  ;;  %v2019_v42 = vld [vmem:[#allocation5 + $0x9c8] sm:$0xff] }
 0x166   :  { %v2028_v36 = vrot.slane %v3249_v6, %v2507_v26  ;;  %v3099_v50 = vrot.slane %v3248_v18, %v2509_v27  ;;  %v3103_v2 = vrot.slane %v3249_v6, %v2509_v27  ;;  %v1985_v5 = vmul.f32 %v1980_v25, %v1970_v4 }
 0x167   :  { %v1986_v29 = vmul.f32 %v1980_v25, %v1971_v3  ;;  %v1987_v35 = vmul.f32 %v1980_v25, %v1972_v30  ;;  %v1988_v14 = vmul.f32 %v1980_v25, %v1973_v12  ;;  %v1989_v55 = vmul.f32 %v1980_v25, %v1974_v10 }
 0x168   :  { %v1990_v7 = vmul.f32 %v1980_v25, %v1975_v41  ;;  %v1991_v57 = vmul.f32 %v1980_v25, %v1976_v11  ;;  %v1992_v32 = vmul.f32 %v1984_v16, %v1970_v4  ;;  %v1993_v63 = vmul.f32 %v1984_v16, %v1971_v3  ;;  %v2020_v4 = vld [vmem:[#allocation5 + $0x9d0] sm:$0x3] }
 0x169   :  { %v1994_v0 = vmul.f32 %v1984_v16, %v1972_v30  ;;  %v1995_v49 = vmul.f32 %v1984_v16, %v1973_v12  ;;  %v1996_v26 = vmul.f32 %v1984_v16, %v1974_v10  ;;  %v1997_v45 = vmul.f32 %v1984_v16, %v1975_v41 }
 0x16a   :  { %v1998_v22 = vmul.f32 %v1984_v16, %v1976_v11  ;;  %v3107_v33 = vrot.slane %v3248_v18, %v3250_v54  ;;  %v3111_v27 = vrot.slane %v3249_v6, %v3250_v54  ;;  %v1999_v62 = vadd.f32 %v1985_v5, %v1955_v8  ;;  %v2064_v54 = vld [vmem:[#allocation5 + $0xa08] sm:$0x3] }
 0x16b   :  { %v2000_v60 = vadd.f32 %v1986_v29, %v1956_v51  ;;  %v2001_v39 = vadd.f32 %v1987_v35, %v1957_v13  ;;  %v2002_v48 = vadd.f32 %v1988_v14, %v1958_v31  ;;  %v2003_v52 = vadd.f32 %v1989_v55, %v1959_v59 }
 0x16c   :  { %v2004_v53 = vadd.f32 %v1990_v7, %v1960_v17  ;;  %v2005_v40 = vadd.f32 %v1991_v57, %v1961_v43  ;;  %v2006_v23 = vadd.f32 %v1992_v32, %v1962_v38  ;;  %v2007_v25 = vadd.f32 %v1993_v63, %v1963_v28  ;;  %v2058_v28 = vld [vmem:[#allocation5 + $0x9d8] sm:$0xff]  ;;  %v2059_v7 = vld [vmem:[#allocation5 + $0x9e0] sm:$0xff]  ;;  %v2060_v57 = vld [vmem:[#allocation5 + $0x9e8] sm:$0xff] }
 0x16d   :  { %v2008_v3 = vadd.f32 %v1994_v0, %v1964_v56  ;;  %v2009_v30 = vadd.f32 %v1995_v49, %v1965_v24  ;;  %v2010_v12 = vadd.f32 %v1996_v26, %v1966_v44  ;;  %v2029_v16 = vmul.f32 %v2024_v37, %v2014_v21  ;;  %v2061_v32 = vld [vmem:[#allocation5 + $0x9f0] sm:$0xff]  ;;  %v2062_v26 = vld [vmem:[#allocation5 + $0x9f8] sm:$0xff] }
 0x16e   :  { %v2030_v10 = vmul.f32 %v2024_v37, %v2015_v47  ;;  %v2031_v8 = vmul.f32 %v2024_v37, %v2016_v58  ;;  %v2032_v51 = vmul.f32 %v2024_v37, %v2017_v61  ;;  %v2033_v13 = vmul.f32 %v2024_v37, %v2018_v46 }
 0x16f   :  { %v2034_v31 = vmul.f32 %v2024_v37, %v2019_v42  ;;  %v2035_v41 = vmul.f32 %v2024_v37, %v2020_v4  ;;  %v2036_v11 = vmul.f32 %v2028_v36, %v2014_v21  ;;  %v2037_v5 = vmul.f32 %v2028_v36, %v2015_v47  ;;  %v2063_v21 = vld [vmem:[#allocation5 + $0xa00] sm:$0xff] }
 0x170   :  { %v2038_v59 = vmul.f32 %v2028_v36, %v2016_v58  ;;  %v2039_v17 = vmul.f32 %v2028_v36, %v2017_v61  ;;  %v2040_v43 = vmul.f32 %v2028_v36, %v2018_v46  ;;  %v2011_v38 = vadd.f32 %v1997_v45, %v1967_v20 }
 0x171   :  { %v2012_v29 = vadd.f32 %v1998_v22, %v1968_v9  ;;  %v2041_v35 = vmul.f32 %v2028_v36, %v2019_v42  ;;  %v2042_v14 = vmul.f32 %v2028_v36, %v2020_v4  ;;  %v2043_v56 = vadd.f32 %v2029_v16, %v1999_v62 }
 0x172   :  { %v2044_v24 = vadd.f32 %v2030_v10, %v2000_v60  ;;  %v2045_v44 = vadd.f32 %v2031_v8, %v2001_v39  ;;  %v2046_v55 = vadd.f32 %v2032_v51, %v2002_v48  ;;  %v2047_v63 = vadd.f32 %v2033_v13, %v2003_v52  ;;  %v2103_v10 = vld [vmem:[#allocation5 + $0xa18] sm:$0xff]  ;;  %v2104_v8 = vld [vmem:[#allocation5 + $0xa20] sm:$0xff]  ;;  %v2105_v51 = vld [vmem:[#allocation5 + $0xa28] sm:$0xff] }
 0x173   :  { %v2048_v0 = vadd.f32 %v2034_v31, %v2004_v53  ;;  %v2049_v37 = vadd.f32 %v2035_v41, %v2005_v40  ;;  %v2050_v49 = vadd.f32 %v2036_v11, %v2006_v23  ;;  %v2051_v47 = vadd.f32 %v2037_v5, %v2007_v25  ;;  %v2106_v5 = vld [vmem:[#allocation5 + $0xa30] sm:$0xff] }
 0x174   :  { %v2052_v20 = vadd.f32 %v2038_v59, %v2008_v3  ;;  %v2053_v9 = vadd.f32 %v2039_v17, %v2009_v30  ;;  %v2054_v45 = vadd.f32 %v2040_v43, %v2010_v12  ;;  %v2073_v36 = vmul.f32 %v3099_v50, %v2058_v28  ;;  %v2102_v3 = vld [vmem:[#allocation5 + $0xa10] sm:$0xff]  ;;  %v2107_v59 = vld [vmem:[#allocation5 + $0xa38] sm:$0xff]  ;;  %v2108_v17 = vld [vmem:[#allocation5 + $0xa40] sm:$0x3] }
 0x175   :  { %v2074_v22 = vmul.f32 %v3099_v50, %v2059_v7  ;;  %v2075_v62 = vmul.f32 %v3099_v50, %v2060_v57  ;;  %v2076_v60 = vmul.f32 %v3099_v50, %v2061_v32  ;;  %v2077_v39 = vmul.f32 %v3099_v50, %v2062_v26 }
 0x176   :  { %v2078_v48 = vmul.f32 %v3099_v50, %v2063_v21  ;;  %v2079_v58 = vmul.f32 %v3099_v50, %v2064_v54  ;;  %v2080_v61 = vmul.f32 %v3103_v2, %v2058_v28  ;;  %v2081_v52 = vmul.f32 %v3103_v2, %v2059_v7 }
 0x177   :  { %v2082_v53 = vmul.f32 %v3103_v2, %v2060_v57  ;;  %v2083_v40 = vmul.f32 %v3103_v2, %v2061_v32  ;;  %v2084_v23 = vmul.f32 %v3103_v2, %v2062_v26  ;;  %v2055_v46 = vadd.f32 %v2041_v35, %v2011_v38 }
 0x178   :  { %v2056_v42 = vadd.f32 %v2042_v14, %v2012_v29  ;;  %v2085_v4 = vmul.f32 %v3103_v2, %v2063_v21  ;;  %v2086_v25 = vmul.f32 %v3103_v2, %v2064_v54  ;;  %v2087_v30 = vadd.f32 %v2073_v36, %v2043_v56 }
 0x179   :  { %v2088_v12 = vadd.f32 %v2074_v22, %v2044_v24  ;;  %v2089_v50 = vadd.f32 %v2075_v62, %v2045_v44  ;;  %v2090_v16 = vadd.f32 %v2076_v60, %v2046_v55  ;;  %v2091_v13 = vadd.f32 %v2077_v39, %v2047_v63  ;;  %v2146_v22 = vld [vmem:[#allocation5 + $0xa48] sm:$0xff]  ;;  %v2147_v62 = vld [vmem:[#allocation5 + $0xa50] sm:$0xff]  ;;  %v2148_v60 = vld [vmem:[#allocation5 + $0xa58] sm:$0xff] }
 0x17a   :  { %v2092_v31 = vadd.f32 %v2078_v48, %v2048_v0  ;;  %v2093_v41 = vadd.f32 %v2079_v58, %v2049_v37  ;;  %v2094_v11 = vadd.f32 %v2080_v61, %v2050_v49  ;;  %v2095_v43 = vadd.f32 %v2081_v52, %v2051_v47  ;;  %v2149_v52 = vld [vmem:[#allocation5 + $0xa60] sm:$0xff] }
 0x17b   :  { %v2096_v38 = vadd.f32 %v2082_v53, %v2052_v20  ;;  %v2097_v29 = vadd.f32 %v2083_v40, %v2053_v9  ;;  %v2098_v35 = vadd.f32 %v2084_v23, %v2054_v45  ;;  %v2117_v2 = vmul.f32 %v3107_v33, %v2102_v3  ;;  %v2150_v53 = vld [vmem:[#allocation5 + $0xa68] sm:$0xff]  ;;  %v2151_v40 = vld [vmem:[#allocation5 + $0xa70] sm:$0xff] }
 0x17c   :  { %v2118_v14 = vmul.f32 %v3107_v33, %v2103_v10  ;;  %v2119_v28 = vmul.f32 %v3107_v33, %v2104_v8  ;;  %v2120_v56 = vmul.f32 %v3107_v33, %v2105_v51  ;;  %v2099_v24 = vadd.f32 %v2085_v4, %v2055_v46 }
 0x17d   :  { %v2121_v44 = vmul.f32 %v3107_v33, %v2106_v5  ;;  %v2122_v55 = vmul.f32 %v3107_v33, %v2107_v59  ;;  %v2123_v7 = vmul.f32 %v3107_v33, %v2108_v17  ;;  %v2100_v57 = vadd.f32 %v2086_v25, %v2056_v42  ;;  %v2152_v25 = vld [vmem:[#allocation5 + $0xa78] sm:$0x3] }
 0x17e   :  { %v2124_v32 = vmul.f32 %v3111_v27, %v2102_v3  ;;  %v2125_v63 = vmul.f32 %v3111_v27, %v2103_v10  ;;  %v2126_v0 = vmul.f32 %v3111_v27, %v2104_v8  ;;  %v2127_v37 = vmul.f32 %v3111_v27, %v2105_v51 }
 0x17f   :  { %v2128_v49 = vmul.f32 %v3111_v27, %v2106_v5  ;;  %v2129_v26 = vmul.f32 %v3111_v27, %v2107_v59  ;;  %v2130_v21 = vmul.f32 %v3111_v27, %v2108_v17  ;;  %v2131_v54 = vadd.f32 %v2117_v2, %v2087_v30 }
 0x180   :  { %v2132_v47 = vadd.f32 %v2118_v14, %v2088_v12  ;;  %v2133_v20 = vadd.f32 %v2119_v28, %v2089_v50  ;;  %v2134_v9 = vadd.f32 %v2120_v56, %v2090_v16  ;;  %v2135_v33 = vadd.f32 %v2121_v44, %v2091_v13  ;;  %v3251_v12 = vld [vmem:[#allocation22_spill] sm:$0xff]  ;;  %v3252_v16 = vld [vmem:[#allocation27_spill] sm:$0xff]  ;;  %v2190_v14 = vld [vmem:[#allocation5 + $0xa80] sm:$0xff] }
 0x181   :  { %v2136_v45 = vadd.f32 %v2122_v55, %v2092_v31  ;;  %v2137_v36 = vadd.f32 %v2123_v7, %v2093_v41  ;;  %v2156_v39 = vrot.slane %v3248_v18, %v2526_v34  ;;  %v2138_v48 = vadd.f32 %v2124_v32, %v2094_v11  ;;  %v2191_v28 = vld [vmem:[#allocation5 + $0xa88] sm:$0xff]  ;;  %v2192_v56 = vld [vmem:[#allocation5 + $0xa90] sm:$0xff]  ;;  %v2194_v32 = vld [vmem:[#allocation5 + $0xaa0] sm:$0xff] }
 0x182   :  { %v2139_v58 = vadd.f32 %v2125_v63, %v2095_v43  ;;  %v2140_v61 = vadd.f32 %v2126_v0, %v2096_v38  ;;  %v2160_v27 = vrot.slane %v3249_v6, %v2526_v34  ;;  %v2141_v23 = vadd.f32 %v2127_v37, %v2097_v29  ;;  %v2195_v63 = vld [vmem:[#allocation5 + $0xaa8] sm:$0xff] }
 0x183   :  { %v2142_v46 = vadd.f32 %v2128_v49, %v2098_v35  ;;  %v2143_v42 = vadd.f32 %v2129_v26, %v2099_v24  ;;  %v2144_v4 = vadd.f32 %v2130_v21, %v2100_v57  ;;  %v2161_v3 = vmul.f32 %v2156_v39, %v2146_v22  ;;  %v2193_v57 = vld [vmem:[#allocation5 + $0xa98] sm:$0xff] }
 0x184   :  { %v2162_v30 = vmul.f32 %v2156_v39, %v2147_v62  ;;  %v2200_v50 = vrot.slane %v3251_v12, %v2491_v15  ;;  %v2204_v10 = vrot.slane %v3252_v16, %v2491_v15  ;;  %v2163_v8 = vmul.f32 %v2156_v39, %v2148_v60 }
 0x185   :  { %v2164_v51 = vmul.f32 %v2156_v39, %v2149_v52  ;;  %v2165_v13 = vmul.f32 %v2156_v39, %v2150_v53  ;;  %v2166_v31 = vmul.f32 %v2156_v39, %v2151_v40  ;;  %v2167_v41 = vmul.f32 %v2156_v39, %v2152_v25 }
 0x186   :  { %v2168_v11 = vmul.f32 %v2160_v27, %v2146_v22  ;;  %v2169_v34 = vmul.f32 %v2160_v27, %v2147_v62  ;;  %v2170_v5 = vmul.f32 %v2160_v27, %v2148_v60  ;;  %v2171_v59 = vmul.f32 %v2160_v27, %v2149_v52 }
 0x187   :  { %v2172_v17 = vmul.f32 %v2160_v27, %v2150_v53  ;;  %v3151_v43 = vrot.slane %v3251_v12, %v2496_v19  ;;  %v3155_v38 = vrot.slane %v3252_v16, %v2496_v19  ;;  %v2173_v29 = vmul.f32 %v2160_v27, %v2151_v40  ;;  %v2196_v19 = vld [vmem:[#allocation5 + $0xab0] sm:$0x3] }
 0x188   :  { %v2174_v15 = vmul.f32 %v2160_v27, %v2152_v25  ;;  %v2175_v35 = vadd.f32 %v2161_v3, %v2131_v54  ;;  %v2176_v2 = vadd.f32 %v2162_v30, %v2132_v47  ;;  %v2177_v24 = vadd.f32 %v2163_v8, %v2133_v20 }
 0x189   :  { %v2178_v44 = vadd.f32 %v2164_v51, %v2134_v9  ;;  %v2179_v55 = vadd.f32 %v2165_v13, %v2135_v33  ;;  %v2180_v7 = vadd.f32 %v2166_v31, %v2136_v45  ;;  %v2181_v0 = vadd.f32 %v2167_v41, %v2137_v36  ;;  %v2237_v31 = vld [vmem:[#allocation5 + $0xad0] sm:$0xff] }
 0x18a   :  { %v2182_v37 = vadd.f32 %v2168_v11, %v2138_v48  ;;  %v2183_v49 = vadd.f32 %v2169_v34, %v2139_v58  ;;  %v2184_v26 = vadd.f32 %v2170_v5, %v2140_v61  ;;  %v2185_v21 = vadd.f32 %v2171_v59, %v2141_v23  ;;  %v2234_v48 = vld [vmem:[#allocation5 + $0xab8] sm:$0xff]  ;;  %v2235_v58 = vld [vmem:[#allocation5 + $0xac0] sm:$0xff]  ;;  %v2236_v61 = vld [vmem:[#allocation5 + $0xac8] sm:$0xff] }
 0x18b   :  { %v2186_v22 = vadd.f32 %v2172_v17, %v2142_v46  ;;  %v2205_v62 = vmul.f32 %v2200_v50, %v2190_v14  ;;  %v2206_v54 = vmul.f32 %v2200_v50, %v2191_v28  ;;  %v2207_v47 = vmul.f32 %v2200_v50, %v2192_v56  ;;  %v2238_v59 = vld [vmem:[#allocation5 + $0xad8] sm:$0xff]  ;;  %v2240_v17 = vld [vmem:[#allocation5 + $0xae8] sm:$0x3] }
 0x18c   :  { %v2208_v60 = vmul.f32 %v2200_v50, %v2193_v57  ;;  %v2209_v39 = vmul.f32 %v2200_v50, %v2194_v32  ;;  %v2210_v52 = vmul.f32 %v2200_v50, %v2195_v63  ;;  %v2187_v20 = vadd.f32 %v2173_v29, %v2143_v42 }
 0x18d   :  { %v2188_v9 = vadd.f32 %v2174_v15, %v2144_v4  ;;  %v2211_v33 = vmul.f32 %v2200_v50, %v2196_v19  ;;  %v2212_v45 = vmul.f32 %v2204_v10, %v2190_v14  ;;  %v2213_v53 = vmul.f32 %v2204_v10, %v2191_v28  ;;  %v2239_v28 = vld [vmem:[#allocation5 + $0xae0] sm:$0xff] }
 0x18e   :  { %v2214_v40 = vmul.f32 %v2204_v10, %v2192_v56  ;;  %v2215_v27 = vmul.f32 %v2204_v10, %v2193_v57  ;;  %v2216_v36 = vmul.f32 %v2204_v10, %v2194_v32  ;;  %v2217_v25 = vmul.f32 %v2204_v10, %v2195_v63 }
 0x18f   :  { %v2218_v23 = vmul.f32 %v2204_v10, %v2196_v19  ;;  %v2219_v46 = vadd.f32 %v2205_v62, %v2175_v35  ;;  %v2220_v3 = vadd.f32 %v2206_v54, %v2176_v2  ;;  %v2221_v30 = vadd.f32 %v2207_v47, %v2177_v24  ;;  %v3253_v47 = vld [vmem:[#allocation11_spill] sm:$0xff] }
 0x190   :  { %v2222_v8 = vadd.f32 %v2208_v60, %v2178_v44  ;;  %v2223_v51 = vadd.f32 %v2209_v39, %v2179_v55  ;;  %v2224_v13 = vadd.f32 %v2210_v52, %v2180_v7  ;;  %v2225_v42 = vadd.f32 %v2211_v33, %v2181_v0  ;;  %v3254_v39 = vld [vmem:[#allocation15_spill] sm:$0xff]  ;;  %v3255_v33 = vld [vmem:[#allocation16_spill] sm:$0xff] }
 0x191   :  { %v2249_v4 = vmul.f32 %v3151_v43, %v2234_v48  ;;  %v2250_v50 = vmul.f32 %v3151_v43, %v2235_v58  ;;  %v2251_v41 = vmul.f32 %v3151_v43, %v2236_v61  ;;  %v2226_v11 = vadd.f32 %v2212_v45, %v2182_v37 }
 0x192   :  { %v2227_v34 = vadd.f32 %v2213_v53, %v2183_v49  ;;  %v2228_v5 = vadd.f32 %v2214_v40, %v2184_v26  ;;  %v2256_v10 = vmul.f32 %v3155_v38, %v2234_v48  ;;  %v2229_v29 = vadd.f32 %v2215_v27, %v2185_v21  ;;  %v3256_v53 = vld [vmem:[#allocation14_spill] sm:$0xff] }
 0x193   :  { %v2252_v15 = vmul.f32 %v3151_v43, %v2237_v31  ;;  %v2257_v35 = vmul.f32 %v3155_v38, %v2235_v58  ;;  %v2258_v2 = vmul.f32 %v3155_v38, %v2236_v61  ;;  %v2230_v14 = vadd.f32 %v2216_v36, %v2186_v22 }
 0x194   :  { %v2259_v56 = vmul.f32 %v3155_v38, %v2237_v31  ;;  %v2263_v24 = vadd.f32 %v2249_v4, %v2219_v46  ;;  %v2264_v44 = vadd.f32 %v2250_v50, %v2220_v3  ;;  %v2231_v55 = vadd.f32 %v2217_v25, %v2187_v20 }
 0x195   :  { %v2253_v7 = vmul.f32 %v3151_v43, %v2238_v59  ;;  %v2255_v57 = vmul.f32 %v3151_v43, %v2240_v17  ;;  %v2265_v32 = vadd.f32 %v2251_v41, %v2221_v30  ;;  %v2260_v63 = vmul.f32 %v3155_v38, %v2238_v59  ;;  %v3260_v30 = vld [vmem:[#allocation24_spill] sm:$0xff] }
 0x196   :  { %v2270_v0 = vadd.f32 %v2256_v10, %v2226_v11  ;;  %v2271_v37 = vadd.f32 %v2257_v35, %v2227_v34  ;;  %v2272_v49 = vadd.f32 %v2258_v2, %v2228_v5  ;;  %v2232_v26 = vadd.f32 %v2218_v23, %v2188_v9  ;;  %v3257_v9 = vld [vmem:[#allocation20_spill] sm:$0xff]  ;;  %v3259_v23 = vld [vmem:[#allocation18_spill] sm:$0xff] }
 0x197   :  { %v2254_v19 = vmul.f32 %v3151_v43, %v2239_v28  ;;  %v2262_v21 = vmul.f32 %v3155_v38, %v2240_v17  ;;  %v2266_v22 = vadd.f32 %v2252_v15, %v2222_v8  ;;  %v2261_v62 = vmul.f32 %v3155_v38, %v2239_v28  ;;  %v3258_v43 = vld [vmem:[#allocation23_spill] sm:$0xff] }
 0x198   :  { %v2273_v54 = vadd.f32 %v2259_v56, %v2229_v29  ;;  %v2277_v60 = vmul.f32 %v2263_v24, %v3253_v47  ;;  %v2278_v52 = vmul.f32 %v2264_v44, %v3254_v39  ;;  %v2267_v20 = vadd.f32 %v2253_v7, %v2223_v51 }
 0x199   :  { %v2279_v45 = vmul.f32 %v2265_v32, %v3255_v33  ;;  %v2284_v40 = vmul.f32 %v2270_v0, %v3256_v53  ;;  %v2269_v27 = vadd.f32 %v2255_v57, %v2225_v42  ;;  %v2274_v36 = vadd.f32 %v2260_v63, %v2230_v14  ;;  %v3261_v42 = vld [vmem:[#allocation25_spill] sm:$0xff] }
 0x19a   :  { %v2285_v48 = vmul.f32 %v2271_v37, %v3257_v9  ;;  %v2286_v58 = vmul.f32 %v2272_v49, %v3258_v43  ;;  %v2268_v61 = vadd.f32 %v2254_v19, %v2224_v13  ;;  %v2276_v25 = vadd.f32 %v2262_v21, %v2232_v26 }
 0x19b   :  { %v2280_v38 = vmul.f32 %v2266_v22, %v3259_v23  ;;  %v2291_v46 = vadd.f32 %v2278_v52, %v2277_v60  ;;  %v2275_v3 = vadd.f32 %v2261_v62, %v2231_v55  ;;  %v2287_v8 = vmul.f32 %v2273_v54, %v3260_v30 }
 0x19c   :  { %v2305_v31 = vadd.f32 %v2285_v48, %v2284_v40  ;;  %v2281_v51 = vmul.f32 %v2267_v20, %v3245_v1  ;;  %v2283_v50 = vmul.f32 %v2269_v27, %v3251_v12  ;;  %v2288_v41 = vmul.f32 %v2274_v36, %v3261_v42 }
 0x19d   :  { %v2292_v4 = vadd.f32 %v2291_v46, %v2279_v45  ;;  %v2282_v34 = vmul.f32 %v2268_v61, %v3248_v18  ;;  %v2290_v13 = vmul.f32 %v2276_v25, %v3252_v16  ;;  %v2289_v59 = vmul.f32 %v2275_v3, %v3249_v6 }
 0x19e   :  { %v2306_v11 = vadd.f32 %v2305_v31, %v2286_v58  ;;  %v2297_v29 = vsel %vm2296_vm0, %v2283_v50, 0.0 }
 0x19f   :  { %v2293_v5 = vadd.f32 %v2292_v4, %v2280_v38  ;;  %v2310_v1 = vsel %vm2296_vm0, %v2290_v13, 0.0 }
 0x1a0   :  { %v2307_v17 = vadd.f32 %v2306_v11, %v2287_v8 }
 0x1a1   :  { %v2294_v10 = vadd.f32 %v2293_v5, %v2281_v51 }
 0x1a2   :  { %v2308_v15 = vadd.f32 %v2307_v17, %v2288_v41 }
 0x1a3   :  { %v2295_v35 = vadd.f32 %v2294_v10, %v2282_v34 }
 0x1a4   :  { %v2309_v2 = vadd.f32 %v2308_v15, %v2289_v59 }
 0x1a5   :  { %v2298_v14 = vadd.f32 %v2297_v29, %v2295_v35 }
 0x1a6   :  { %v2311_v12 = vadd.f32 %v2310_v1, %v2309_v2 }
 0x1a7   :  { %v2299_v28 = vrot.slane %v2298_v14, 4 }
 0x1a8   :  { %v2312_v56 = vrot.slane %v2311_v12, 4 }
 0x1a9   :  { %v2300_v24 = vadd.f32 %v2299_v28, %v2298_v14 }
 0x1aa   :  { %v2313_v44 = vadd.f32 %v2312_v56, %v2311_v12 }
 0x1ab   :  { %v2301_v18 = vrot.slane %v2300_v24, 2 }
 0x1ac   :  { %v2314_v55 = vrot.slane %v2313_v44, 2 }
 0x1ad   :  { %v2302_v16 = vadd.f32 %v2301_v18, %v2300_v24 }
 0x1ae   :  { %v2315_v7 = vadd.f32 %v2314_v55, %v2313_v44 }
 0x1af   :  { %v2303_v57 = vrot.slane %v2302_v16, 1 }
 0x1b0   :  { %v2316_v32 = vrot.slane %v2315_v7, 1 }
 0x1b1   :  { %v2304_v6 = vadd.f32 %v2303_v57, %v2302_v16 }
 0x1b2   :  { %v2317_v63 = vadd.f32 %v2316_v32, %v2315_v7 }
 0x1b3   :  { %v2318_v0 = vmax.f32 %v2304_v6, 0.0 }
 0x1b4   :  { %v2319_v37 = vmax.f32 %v2317_v63, 0.0 }
 0x1b5   :  { %2361 = vrsqrt.f32 %v2318_v0  ;;  %vm2322_vm1 = vcmp.eq.f32.partialorder %v2318_v0, inf  ;;  %v2325_v26 = vand.u32 2147483648, %v2318_v0  ;;  %vm2324_vm2 = vcmp.eq.f32.partialorder %v2318_v0, 0.0 }
 0x1b6   :  { %2363 = vrsqrt.f32 %v2319_v37  ;;  %vm2329_vm3 = vcmp.eq.f32.partialorder %v2319_v37, inf  ;;  %v2332_v22 = vand.u32 2147483648, %v2319_v37  ;;  %vm2331_vm4 = vcmp.eq.f32.partialorder %v2319_v37, 0.0 }
 0x1c2   :  { %v2362_v49 = vpop.eup %2361 }
 0x1c3   :  { %v2364_v19 = vpop.eup %2363  ;;  %v2321_v21 = vmul.f32 %v2362_v49, %v2318_v0 }
 0x1c4   :  { %v2328_v62 = vmul.f32 %v2364_v19, %v2319_v37 }
 0x1c5   :  { %v2323_v54 = vsel %vm2322_vm1, %v2318_v0, %v2321_v21 }
 0x1c6   :  { %v2326_v47 = vsel %vm2324_vm2, %v2325_v26, %v2323_v54  ;;  %v2330_v60 = vsel %vm2329_vm3, %v2319_v37, %v2328_v62 }
 0x1c7   :  { %v2333_v39 = vsel %vm2331_vm4, %v2332_v22, %v2330_v60 }
 0x1c8   :  { %v2337_v52 = vsel %vm2336_vm5, %v2333_v39, %v2326_v47 }
 0x1c9   :  { %2339 = vst [vmem:[#allocation7] sm:$0x3] %v2337_v52 }
 0x1ca   :  { %2416 = shalt.err (!%p2413_p0)
}
 0x1cb   :  { %2349 = dma.vmem_to_hbm [thread:$0]  %s2347_s23, 32, %s3191_s3, [#allocation4]  }
 0x1cc   :  { %2429 = dma.done.wait [#allocation4], 32  }
 0x1cd   :  { %2430 = vsyncadd [#allocation4], 4294967264 }
 0x1ce   :  { %2353 = vsyncpa [#allocation3], 1 }
 0x1cf   :  { %2354 = vsyncpa [#allocation6], 1 }
 0x1d0   :  { %2355 = vsyncpa [#allocation4], 1 }

</bundles_post_ra>
